<compile_context>
chip_gen: v5e
topology: v5e:2x2
jax: 0.10.0
libtpu: 0.0.40
codegen_flags: <defaults>
</compile_context>

<pallas_src>
import functools
import math

import jax
import jax.numpy as jnp
from jax.experimental import pallas as pl
from jax.experimental.pallas import tpu as pltpu

APPROX_RECIP = True   # pl.reciprocal(approx=True) in softmax / attention epilogue


# ------------------------------- small helpers -------------------------------

def _tile(dim, target, align):
    """Largest divisor of `dim` that is <= target and `align`-aligned.

    If dim <= target the full dim is used (full-dim blocks are always legal).
    Otherwise raise instead of silently returning a single giant block.
    """
    if dim <= target:
        return dim
    for t in range(min(target, dim), 0, -1):
        if dim % t == 0 and t % align == 0:
            return t
    raise ValueError(
        f"_tile: no divisor of {dim} <= {target} aligned to {align}; "
        f"pad the dimension or adjust the tile target.")


@functools.lru_cache(maxsize=None)
def _vmem_limit_bytes():
    """Per-generation scoped-VMEM limit (v5e/v6e: ~90 MiB, v7x: ~44 MiB)."""
    limit = 48 * 1024 * 1024  # conservative fallback, safe on all generations
    try:
        cap = int(pltpu.get_tpu_info().vmem_capacity_bytes)
        limit = max(32 * 1024 * 1024, min(int(cap * 0.7), 96 * 1024 * 1024))
    except Exception:
        pass
    return limit


# --------------------------- fused tiled linear ------------------------------
# y = act(x @ w + b) ; optionally y = y + residual ; optionally y = LayerNorm(y)
# bf16 MXU inputs (weights already bf16 in HBM), f32 accumulation + f32 stats.

def _fused_linear_kernel(*refs, act, has_res, has_ln, eps):
    x_ref, w_ref, b_ref = refs[0], refs[1], refs[2]
    pos = 3
    res_ref = None
    if has_res:
        res_ref = refs[pos]; pos += 1
    if has_ln:
        g_ref, be_ref = refs[pos], refs[pos + 1]; pos += 2
    o_ref = refs[pos]
    acc_ref = refs[pos + 1]

    k = pl.program_id(2)

    @pl.when(k == 0)
    def _init():
        acc_ref[...] = jnp.zeros_like(acc_ref)

    xb = x_ref[...]
    if xb.dtype != jnp.bfloat16:
        xb = xb.astype(jnp.bfloat16)
    wb = w_ref[...]
    if wb.dtype != jnp.bfloat16:
        wb = wb.astype(jnp.bfloat16)
    acc_ref[...] += jnp.dot(xb, wb, preferred_element_type=jnp.float32)

    @pl.when(k == pl.num_programs(2) - 1)
    def _finalize():
        y = acc_ref[...] + b_ref[...]
        if act == "relu":
            y = jnp.maximum(y, 0.0)
        elif act == "leaky_relu":
            y = jnp.where(y >= 0.0, y, 0.01 * y)
        if has_res:
            y = y + res_ref[...]
        if has_ln:
            mu = jnp.mean(y, axis=-1, keepdims=True)
            yc = y - mu
            var = jnp.mean(yc * yc, axis=-1, keepdims=True)
            y = yc * jax.lax.rsqrt(var + eps) * g_ref[...] + be_ref[...]
        o_ref[...] = y.astype(o_ref.dtype)


def fused_linear(x, w, b, res=None, ln=None, act="none", eps=1e-5,
                 out_dtype=jnp.float32, alias_res=True,
                 tm_target=512, tn_target=512, tk_target=512):
    M, K = x.shape
    N = w.shape[1]
    tm = _tile(M, tm_target, 16)          # 16-row alignment for bf16 sublane packing
    tk = _tile(K, tk_target, 128)
    # LayerNorm epilogue needs the full feature dim resident in one tile.
    tn = N if ln is not None else _tile(N, tn_target, 128)

    in_specs = [
        pl.BlockSpec((tm, tk), lambda i, j, k: (i, k)),
        pl.BlockSpec((tk, tn), lambda i, j, k: (k, j)),
        pl.BlockSpec((1, tn), lambda i, j, k: (0, j)),
    ]
    args = [x, w, b.reshape(1, N)]
    io_aliases = {}
    if res is not None:
        in_specs.append(pl.BlockSpec((tm, tn), lambda i, j, k: (i, j)))
        args.append(res)
        if (alias_res and res.dtype == jnp.dtype(out_dtype)
                and res.shape == (M, N)):
            io_aliases = {3: 0}           # reuse the residual buffer for the output
    if ln is not None:
        g, be = ln
        in_specs.append(pl.BlockSpec((1, tn), lambda i, j, k: (0, j)))
        in_specs.append(pl.BlockSpec((1, tn), lambda i, j, k: (0, j)))
        args += [g.reshape(1, N), be.reshape(1, N)]

    bytes_accessed = (M * K * x.dtype.itemsize + K * N * w.dtype.itemsize
                      + M * N * jnp.dtype(out_dtype).itemsize)
    if res is not None:
        bytes_accessed += M * N * res.dtype.itemsize

    return pl.pallas_call(
        functools.partial(_fused_linear_kernel, act=act, has_res=res is not None,
                          has_ln=ln is not None, eps=eps),
        grid=(M // tm, N // tn, K // tk),
        in_specs=in_specs,
        out_specs=pl.BlockSpec((tm, tn), lambda i, j, k: (i, j)),
        out_shape=jax.ShapeDtypeStruct((M, N), out_dtype),
        scratch_shapes=[pltpu.VMEM((tm, tn), jnp.float32)],
        input_output_aliases=io_aliases,
        cost_estimate=pl.CostEstimate(flops=2 * M * N * K, transcendentals=0,
                                      bytes_accessed=bytes_accessed),
        compiler_params=pltpu.CompilerParams(
            dimension_semantics=("parallel", "parallel", "arbitrary"),
            vmem_limit_bytes=_vmem_limit_bytes()),
    )(*args)


# -------------------- ContinuousValueEncoder (fully fused) -------------------
# clamp(max) -> Linear(1,D) -> ReLU -> Linear(D,D) -> LayerNorm   (dropout = id)

def _value_enc_kernel(v_ref, w1_ref, b1_ref, w2_ref, b2_ref, g_ref, be_ref, o_ref,
                      *, max_value, eps):
    v = jnp.minimum(v_ref[...], max_value)                  # [tm, 1]
    h = jnp.maximum(v * w1_ref[...] + b1_ref[...], 0.0)     # [tm, D]
    y = jnp.dot(h.astype(jnp.bfloat16), w2_ref[...],
                preferred_element_type=jnp.float32) + b2_ref[...]
    mu = jnp.mean(y, axis=-1, keepdims=True)
    yc = y - mu
    var = jnp.mean(yc * yc, axis=-1, keepdims=True)
    o_ref[...] = yc * jax.lax.rsqrt(var + eps) * g_ref[...] + be_ref[...]


def value_encoder(values_flat, p, eps=1e-5, max_value=512.0):
    M = values_flat.shape[0]
    D = p["val_w1"].shape[-1]
    tm = _tile(M, 256, 8)
    r = lambda a: a.reshape(1, -1)
    vec = pl.BlockSpec((1, D), lambda i: (0, 0))
    return pl.pallas_call(
        functools.partial(_value_enc_kernel, max_value=max_value, eps=eps),
        grid=(M // tm,),
        in_specs=[pl.BlockSpec((tm, 1), lambda i: (i, 0)),
                  vec, vec,
                  pl.BlockSpec((D, D), lambda i: (0, 0)),
                  vec, vec, vec],
        out_specs=pl.BlockSpec((tm, D), lambda i: (i, 0)),
        out_shape=jax.ShapeDtypeStruct((M, D), jnp.float32),
        compiler_params=pltpu.CompilerParams(dimension_semantics=("parallel",)),
    )(values_flat, r(p["val_w1"]), r(p["val_b1"]), p["val_w2"], r(p["val_b2"]),
      r(p["val_ln_g"]), r(p["val_ln_b"]))


# ---- gene-LN + drug-LN + embedding sum + BatchNorm1d (eval stats), fused -----

def _embed_bn_kernel(gene_ref, gg_ref, gb_ref, drug_ref, dg_ref, db_ref,
                     val_ref, pert_ref, bng_ref, bnb_ref, bnm_ref, bnv_ref,
                     o_ref, *, ln_eps, bn_eps):
    def ln(x, g, b):
        mu = jnp.mean(x, axis=-1, keepdims=True)
        xc = x - mu
        var = jnp.mean(xc * xc, axis=-1, keepdims=True)
        return xc * jax.lax.rsqrt(var + ln_eps) * g + b

    gene_ln = ln(gene_ref[...], gg_ref[...], gb_ref[...])          # [1, ts, D]
    drug_ln = ln(drug_ref[...], dg_ref[...], db_ref[...])          # [1, 1, D]
    total = gene_ln + drug_ln + val_ref[...] + pert_ref[...]
    inv = jax.lax.rsqrt(bnv_ref[...] + bn_eps)
    o_ref[...] = (total - bnm_ref[...]) * inv * bng_ref[...] + bnb_ref[...]


def embed_batchnorm(gene_emb, drug_raw, val_emb, pert_emb, p,
                    ln_eps=1e-5, bn_eps=6.1e-5):
    B, S, D = gene_emb.shape
    ts = _tile(S, 512, 8)
    blk = pl.BlockSpec((1, ts, D), lambda b, s: (b, s, 0))
    vec = pl.BlockSpec((1, 1, D), lambda b, s: (0, 0, 0))
    drug_spec = pl.BlockSpec((1, 1, D), lambda b, s: (b, 0, 0))
    r = lambda a: a.reshape(1, 1, D)
    return pl.pallas_call(
        functools.partial(_embed_bn_kernel, ln_eps=ln_eps, bn_eps=bn_eps),
        grid=(B, S // ts),
        in_specs=[blk, vec, vec, drug_spec, vec, vec, blk, blk,
                  vec, vec, vec, vec],
        out_specs=blk,
        out_shape=jax.ShapeDtypeStruct((B, S, D), jnp.float32),
        compiler_params=pltpu.CompilerParams(
            dimension_semantics=("parallel", "parallel")),
    )(gene_emb, r(p["gene_ln_g"]), r(p["gene_ln_b"]),
      drug_raw, r(p["drug_ln_g"]), r(p["drug_ln_b"]),
      val_emb, pert_emb,
      r(p["bn_gamma"]), r(p["bn_beta"]), r(p["bn_mean"]), r(p["bn_var"]))


# ------------------------------- attention -----------------------------------
# qkv stays in the [B, S, 3D] bf16 layout produced by the qkv projection.
# grid = (B, S//tq): per step we hold the resident [S,3D] bf16 KV block (fetched
# once per batch element since its block index is constant across q-tiles), a
# [tq, Dh] Q slice per head (ref-level slicing, no host transposes), per-head
# [tq, S] f32 scores, and write per-head results straight into the lane-dense
# [tq, D] output block. bf16 MXU inputs, f32 softmax statistics.
# Note: fully-masked rows produce a uniform softmax here (PyTorch would emit NaN).

def _attn_kernel(mask_ref, qkv_ref, o_ref, *, H, Dh, scale):
    tq = o_ref.shape[1]
    D = H * Dh
    qi = pl.program_id(1)
    row0 = pl.multiple_of(qi * tq, tq)
    mask = mask_ref[0]                                       # [1, S] additive f32
    for h in range(H):
        q = qkv_ref[0, pl.ds(row0, tq), pl.ds(h * Dh, Dh)]           # [tq, Dh]
        k = qkv_ref[0, :, pl.ds(D + h * Dh, Dh)]                     # [S, Dh]
        v = qkv_ref[0, :, pl.ds(2 * D + h * Dh, Dh)]                 # [S, Dh]
        if q.dtype != jnp.bfloat16:
            q = q.astype(jnp.bfloat16)
            k = k.astype(jnp.bfloat16)
            v = v.astype(jnp.bfloat16)
        # NOTE: Dh < 128 under-fills the MXU columns; unavoidable for this
        # model config, kept cheap by the bf16 inputs.
        s = jax.lax.dot_general(q, k, (((1,), (1,)), ((), ())),
                                preferred_element_type=jnp.float32)  # [tq, S]
        s = s * scale + mask
        s = s - jnp.max(s, axis=-1, keepdims=True)
        e = jnp.exp(s)
        denom = jnp.sum(e, axis=-1, keepdims=True)
        if APPROX_RECIP:
            p = e * pl.reciprocal(denom, approx=True)
        else:
            p = e / denom
        o_ref[0, :, pl.ds(h * Dh, Dh)] = jnp.dot(
            p.astype(jnp.bfloat16), v,
            preferred_element_type=jnp.float32).astype(o_ref.dtype)


def mha_attention(qkv, mask_add, nhead, tq_target=256):
    B, S, threeD = qkv.shape
    D = threeD // 3
    Dh = D // nhead
    scale = 1.0 / math.sqrt(Dh)
    tq = _tile(S, tq_target, 16)
    return pl.pallas_call(
        functools.partial(_attn_kernel, H=nhead, Dh=Dh, scale=scale),
        grid=(B, S // tq),
        in_specs=[pl.BlockSpec((1, 1, S), lambda b, qi: (b, 0, 0)),
                  pl.BlockSpec((1, S, threeD), lambda b, qi: (b, 0, 0))],
        out_specs=pl.BlockSpec((1, tq, D), lambda b, qi: (b, qi, 0)),
        out_shape=jax.ShapeDtypeStruct((B, S, D), jnp.bfloat16),
        compiler_params=pltpu.CompilerParams(
            dimension_semantics=("parallel", "parallel"),
            vmem_limit_bytes=_vmem_limit_bytes()),
    )(mask_add, qkv)


# ------------------------------ ExprDecoder (fused) ---------------------------
# Linear -> LeakyReLU -> Linear -> LeakyReLU -> Linear(D,1)
# (final Linear is a VPU multiply + lane reduction, no MXU pass)

def _expr_decoder_kernel(x_ref, w1_ref, b1_ref, w2_ref, b2_ref, w3_ref, b3_ref,
                         o_ref):
    def mm(a, w):
        return jnp.dot(a.astype(jnp.bfloat16), w,
                       preferred_element_type=jnp.float32)

    h = mm(x_ref[...], w1_ref[...]) + b1_ref[...]
    h = jnp.where(h >= 0.0, h, 0.01 * h)
    h = mm(h, w2_ref[...]) + b2_ref[...]
    h = jnp.where(h >= 0.0, h, 0.01 * h)
    o_ref[...] = jnp.sum(h * w3_ref[...], axis=-1, keepdims=True) + b3_ref[...]


def expr_decoder(x, p):
    M, D = x.shape
    tm = _tile(M, 512, 8)
    vec = pl.BlockSpec((1, D), lambda i: (0, 0))
    mat = pl.BlockSpec((D, D), lambda i: (0, 0))
    return pl.pallas_call(
        _expr_decoder_kernel,
        grid=(M // tm,),
        in_specs=[pl.BlockSpec((tm, D), lambda i: (i, 0)),
                  mat, vec, mat, vec, vec,
                  pl.BlockSpec((1, 1), lambda i: (0, 0))],
        out_specs=pl.BlockSpec((tm, 1), lambda i: (i, 0)),
        out_shape=jax.ShapeDtypeStruct((M, 1), jnp.float32),
        compiler_params=pltpu.CompilerParams(dimension_semantics=("parallel",)),
    )(x, p["dec_w1"], p["dec_b1"].reshape(1, D),
      p["dec_w2"], p["dec_b2"].reshape(1, D),
      p["dec_w3"].reshape(1, D), p["dec_b3"].reshape(1, 1))


# --------------------------------- ECS loss ----------------------------------
# Matches torch: mask diagonal to 0, relu, then mean(1-(cos-thresh)^2) over all
# B^2 entries (diagonal included in the denominator).

def _ecs_kernel(x_ref, o_ref, *, thresh):
    x = x_ref[...]                                          # [B, D]
    nrm = jnp.sqrt(jnp.sum(x * x, axis=-1, keepdims=True))
    xn = x / jnp.maximum(nrm, 1e-12)
    cos = jax.lax.dot_general(xn, xn, (((1,), (1,)), ((), ())),
                              preferred_element_type=jnp.float32)  # [B, B]
    Bn = cos.shape[0]
    row = jax.lax.broadcasted_iota(jnp.int32, (Bn, Bn), 0)
    col = jax.lax.broadcasted_iota(jnp.int32, (Bn, Bn), 1)
    cos = jnp.where(row == col, 0.0, cos)                   # masked_fill(eye, 0)
    cos = jnp.maximum(cos, 0.0)
    t = 1.0 - (cos - thresh) ** 2
    s = jnp.sum(t, axis=-1, keepdims=True)
    s = jnp.sum(s, axis=0, keepdims=True)
    o_ref[...] = s / float(Bn * Bn)


def ecs_loss(cell_emb, thresh):
    out = pl.pallas_call(
        functools.partial(_ecs_kernel, thresh=thresh),
        out_shape=jax.ShapeDtypeStruct((1, 1), jnp.float32),
    )(cell_emb)
    return out[0, 0]


# --------------------------- parameter initialization ------------------------

def init_params(key, *, ntoken, n_drug, D, d_hid, nlayers, nlayers_cls,
                n_cls, pad_token_id, pert_pad_id):
    keys = list(jax.random.split(key, 256))
    it = iter(keys)
    bf16 = jnp.bfloat16

    def n(shape, s=0.05):
        return s * jax.random.normal(next(it), shape, jnp.float32)

    p = {}
    # GeneEncoder (init_weights: uniform(-0.1,0.1)), padding_idx row zeroed
    p["gene_emb"] = jax.random.uniform(next(it), (ntoken, D), jnp.float32, -0.1, 0.1)
    p["gene_emb"] = p["gene_emb"].at[pad_token_id].set(0.0)
    p["gene_ln_g"] = 1.0 + n((D,)); p["gene_ln_b"] = n((D,))
    # DrugEncoder
    p["drug_emb"] = n((n_drug, D))
    p["drug_ln_g"] = 1.0 + n((D,)); p["drug_ln_b"] = n((D,))
    # ContinuousValueEncoder
    p["val_w1"] = n((1, D)); p["val_b1"] = n((D,))
    p["val_w2"] = n((D, D)).astype(bf16); p["val_b2"] = n((D,))
    p["val_ln_g"] = 1.0 + n((D,)); p["val_ln_b"] = n((D,))
    # pert encoder: Embedding(3, D, padding_idx=pert_pad_id)
    pert = n((3, D))
    p["pert_emb"] = pert.at[pert_pad_id].set(0.0)
    # BatchNorm1d(d_model, eps=6.1e-5), eval-mode running stats
    p["bn_gamma"] = 1.0 + n((D,)); p["bn_beta"] = n((D,))
    p["bn_mean"] = n((D,)); p["bn_var"] = 1.0 + jnp.abs(n((D,)))
    # TransformerEncoder (post-norm, relu FFN); matmul weights stored bf16
    layers = []
    for _ in range(nlayers):
        layers.append({
            "qkv_w": n((D, 3 * D)).astype(bf16), "qkv_b": n((3 * D,)),
            "out_w": n((D, D)).astype(bf16), "out_b": n((D,)),
            "ln1_g": 1.0 + n((D,)), "ln1_b": n((D,)),
            "ff1_w": n((D, d_hid)).astype(bf16), "ff1_b": n((d_hid,)),
            "ff2_w": n((d_hid, D)).astype(bf16), "ff2_b": n((D,)),
            "ln2_g": 1.0 + n((D,)), "ln2_b": n((D,)),
        })
    p["layers"] = layers
    # ExprDecoder
    p["dec_w1"] = n((D, D)).astype(bf16); p["dec_b1"] = n((D,))
    p["dec_w2"] = n((D, D)).astype(bf16); p["dec_b2"] = n((D,))
    p["dec_w3"] = n((D, 1)); p["dec_b3"] = n((1,))
    # ClsDecoder
    cls_layers = []
    for _ in range(nlayers_cls - 1):
        cls_layers.append({"w": n((D, D)).astype(bf16), "b": n((D,)),
                           "ln_g": 1.0 + n((D,)), "ln_b": n((D,))})
    p["cls_layers"] = cls_layers
    p["cls_out_w"] = n((D, n_cls)).astype(bf16); p["cls_out_b"] = n((n_cls,))
    return p


# ------------------------------- forward pass --------------------------------

@functools.partial(jax.jit, static_argnames=("nhead", "CLS", "ECS", "ecs_threshold"))
def forward(params, src, drug_ids, values, input_pert_flags,
            src_key_padding_mask, *, nhead, CLS=True, ECS=True,
            ecs_threshold=0.3):
    B, S = src.shape
    D = params["gene_emb"].shape[1]
    M = B * S

    # --- _encode ---
    # embedding gathers are XLA glue (data-dependent gather).
    gene_emb = jnp.take(params["gene_emb"], src, axis=0)                 # [B,S,D]
    drug_raw = jnp.take(params["drug_emb"], drug_ids, axis=0)[:, None, :]  # [B,1,D]
    val_emb = value_encoder(values.reshape(M, 1), params).reshape(B, S, D)
    pert_emb = jnp.take(params["pert_emb"], input_pert_flags, axis=0)    # [B,S,D]

    # gene-LN + drug-LN + sum + BatchNorm1d(eval), fused and row-tiled
    x = embed_batchnorm(gene_emb, drug_raw, val_emb, pert_emb, params)

    # key-padding mask -> additive attention bias [B,1,S]
    mask_add = jnp.where(src_key_padding_mask, -1e9, 0.0).astype(
        jnp.float32).reshape(B, 1, S)

    # TransformerEncoder (post-norm, relu FFN, dropout = identity)
    for lp in params["layers"]:
        x2 = x.reshape(M, D)
        qkv = fused_linear(x2, lp["qkv_w"], lp["qkv_b"],
                           out_dtype=jnp.bfloat16)                       # [M,3D] bf16
        attn = mha_attention(qkv.reshape(B, S, 3 * D), mask_add, nhead)  # [B,S,D] bf16
        x2 = fused_linear(attn.reshape(M, D), lp["out_w"], lp["out_b"],
                          res=x2, ln=(lp["ln1_g"], lp["ln1_b"]))         # LN(x+attn)
        ff = fused_linear(x2, lp["ff1_w"], lp["ff1_b"], act="relu",
                          out_dtype=jnp.bfloat16)                        # [M,d_hid] bf16
        x2 = fused_linear(ff, lp["ff2_w"], lp["ff2_b"],
                          res=x2, ln=(lp["ln2_g"], lp["ln2_b"]))         # LN(x+ff)
        x = x2.reshape(B, S, D)

    transformer_output = x

    # --- ExprDecoder -> mlm_output ---
    pred = expr_decoder(transformer_output.reshape(M, D), params).reshape(B, S)
    output = {"mlm_output": pred}

    # --- cell embedding (cell_emb_style == 'cls') ---
    cell_emb = transformer_output[:, 0, :]                               # [B,D]

    if CLS:
        c = cell_emb
        for lp in params["cls_layers"]:
            c = fused_linear(c, lp["w"], lp["b"], act="relu",
                             ln=(lp["ln_g"], lp["ln_b"]))
        output["cls_output"] = fused_linear(c, params["cls_out_w"],
                                            params["cls_out_b"])

    if ECS:
        output["loss_ecs"] = ecs_loss(cell_emb, ecs_threshold)

    return output


# ----------------------------------- main ------------------------------------

if __name__ == "__main__":
    B, S, D, H = 2, 8, 128, 4
    ntoken, n_drug = 100, 10
    d_hid, nlayers = 256, 2
    nlayers_cls, n_cls = 3, 5
    pad_token_id, pert_pad_id = 0, 2

    key = jax.random.PRNGKey(0)
    kp, k1, k2, k3, k4 = jax.random.split(key, 5)

    params = init_params(
        kp, ntoken=ntoken, n_drug=n_drug, D=D, d_hid=d_hid, nlayers=nlayers,
        nlayers_cls=nlayers_cls, n_cls=n_cls, pad_token_id=pad_token_id,
        pert_pad_id=pert_pad_id)

    src = jax.random.randint(k1, (B, S), 1, ntoken, dtype=jnp.int32)
    drug_ids = jax.random.randint(k2, (B,), 0, n_drug, dtype=jnp.int32)
    values = jax.random.uniform(k3, (B, S), jnp.float32, 0.0, 5.0)
    input_pert_flags = jax.random.randint(k4, (B, S), 0, 2, dtype=jnp.int32)
    # last position of each row is padding (True = pad, PyTorch convention)
    src_key_padding_mask = jnp.zeros((B, S), dtype=bool).at[:, -1].set(True)
    src = src.at[:, -1].set(pad_token_id)

    out = forward(params, src, drug_ids, values, input_pert_flags,
                  src_key_padding_mask, nhead=H, CLS=True, ECS=True)
    out = jax.block_until_ready(out)

    assert out["mlm_output"].shape == (B, S)
    assert out["cls_output"].shape == (B, n_cls)
    assert out["loss_ecs"].shape == ()
    assert all(bool(jnp.all(jnp.isfinite(v.astype(jnp.float32))))
               for v in out.values())

    print("KERNEL_OK")
</pallas_src>

<mosaic_0001>
module attributes {stable_mosaic.version = 11 : i64} {
  func.func @_attn_kernel(%arg0: i32, %arg1: i32, %arg2: memref<1x1x8xf32, #tpu.memory_space<vmem>>, %arg3: memref<1x8x384xbf16, #tpu.memory_space<vmem>>, %arg4: memref<1x8x128xbf16, #tpu.memory_space<vmem>>) attributes {dimension_semantics = [#tpu.dimension_semantics<parallel>, #tpu.dimension_semantics<parallel>], iteration_bounds = array<i64: 2, 1>, scalar_prefetch = 0 : i64, scratch_operands = 0 : i64, tpu.core_type = #tpu.core_type<tc>, window_params = [{transform_indices = @transform_0, window_bounds = array<i64: 1, 1, 8>}, {transform_indices = @transform_1, window_bounds = array<i64: 1, 8, 384>}, {transform_indices = @transform_2, window_bounds = array<i64: 1, 8, 128>}]} {
    %c8_i32 = arith.constant 8 : i32
    %0 = arith.muli %arg1, %c8_i32 : i32
    %1 = tpu.assume_multiple %0, 8 : i32
    %c0 = arith.constant 0 : index
    %c0_0 = arith.constant 0 : index
    %c0_1 = arith.constant 0 : index
    %2 = vector.load %arg2[%c0, %c0_0, %c0_1] : memref<1x1x8xf32, #tpu.memory_space<vmem>>, vector<1x1x8xf32>
    %3 = vector.shape_cast %2 : vector<1x1x8xf32> to vector<1x8xf32>
    %c0_2 = arith.constant 0 : index
    %4 = arith.index_cast %1 : i32 to index
    %c0_3 = arith.constant 0 : index
    %5 = vector.load %arg3[%c0_2, %4, %c0_3] : memref<1x8x384xbf16, #tpu.memory_space<vmem>>, vector<1x8x32xbf16>
    %6 = vector.shape_cast %5 : vector<1x8x32xbf16> to vector<8x32xbf16>
    %c0_4 = arith.constant 0 : index
    %c0_5 = arith.constant 0 : index
    %c128 = arith.constant 128 : index
    %7 = vector.load %arg3[%c0_4, %c0_5, %c128] : memref<1x8x384xbf16, #tpu.memory_space<vmem>>, vector<1x8x32xbf16>
    %8 = vector.shape_cast %7 : vector<1x8x32xbf16> to vector<8x32xbf16>
    %c0_6 = arith.constant 0 : index
    %c0_7 = arith.constant 0 : index
    %c256 = arith.constant 256 : index
    %9 = vector.load %arg3[%c0_6, %c0_7, %c256] : memref<1x8x384xbf16, #tpu.memory_space<vmem>>, vector<1x8x32xbf16>
    %10 = vector.shape_cast %9 : vector<1x8x32xbf16> to vector<8x32xbf16>
    %cst = arith.constant dense<0.000000e+00> : vector<8x8xf32>
    %11 = tpu.matmul %6, %8, %cst {dimension_numbers = #tpu.dot_dimension_numbers<[1], [1], [0], [0], [0, 0, 1, 0], [], []>} : vector<8x32xbf16>, vector<8x32xbf16>, vector<8x8xf32> -> vector<8x8xf32>
    %cst_8 = arith.constant 0.176776692 : f32
    %12 = vector.broadcast %cst_8 : f32 to vector<8x8xf32>
    %13 = arith.mulf %11, %12 : vector<8x8xf32>
    %14 = vector.broadcast %3 : vector<1x8xf32> to vector<8x8xf32>
    %15 = arith.addf %13, %14 : vector<8x8xf32>
    %cst_9 = arith.constant dense<0xFF800000> : vector<8xf32>
    %16 = vector.multi_reduction <maximumf>, %15, %cst_9 [1] : vector<8x8xf32> to vector<8xf32>
    %17 = vector.shape_cast %16 : vector<8xf32> to vector<8x1xf32>
    %18 = vector.broadcast %17 : vector<8x1xf32> to vector<8x8xf32>
    %19 = arith.subf %15, %18 : vector<8x8xf32>
    %20 = math.exp %19 : vector<8x8xf32>
    %cst_10 = arith.constant dense<0.000000e+00> : vector<8xf32>
    %21 = vector.multi_reduction <add>, %20, %cst_10 [1] : vector<8x8xf32> to vector<8xf32>
    %22 = vector.shape_cast %21 : vector<8xf32> to vector<8x1xf32>
    %23 = tpu.reciprocal %22 {approx = true} : vector<8x1xf32> -> vector<8x1xf32>
    %24 = vector.broadcast %23 : vector<8x1xf32> to vector<8x8xf32>
    %25 = arith.mulf %20, %24 : vector<8x8xf32>
    %26 = arith.truncf %25 : vector<8x8xf32> to vector<8x8xbf16>
    %cst_11 = arith.constant dense<0.000000e+00> : vector<8x32xf32>
    %27 = tpu.matmul %26, %10, %cst_11 {dimension_numbers = #tpu.dot_dimension_numbers<[1], [0], [0], [1], [0, 0, 1, 1], [], []>} : vector<8x8xbf16>, vector<8x32xbf16>, vector<8x32xf32> -> vector<8x32xf32>
    %28 = arith.truncf %27 : vector<8x32xf32> to vector<8x32xbf16>
    %c0_12 = arith.constant 0 : index
    %c0_13 = arith.constant 0 : index
    %c0_14 = arith.constant 0 : index
    %29 = vector.load %arg4[%c0_12, %c0_13, %c0_14] : memref<1x8x128xbf16, #tpu.memory_space<vmem>>, vector<1x8x32xbf16>
    %30 = vector.shape_cast %29 : vector<1x8x32xbf16> to vector<8x32xbf16>
    %31 = vector.shape_cast %28 : vector<8x32xbf16> to vector<1x8x32xbf16>
    tpu.vector_store %arg4[%c0_12, %c0_13, %c0_14], %31 {strides = array<i32>} : memref<1x8x128xbf16, #tpu.memory_space<vmem>>, vector<1x8x32xbf16>,
    %c0_15 = arith.constant 0 : index
    %32 = arith.index_cast %1 : i32 to index
    %c32 = arith.constant 32 : index
    %33 = vector.load %arg3[%c0_15, %32, %c32] : memref<1x8x384xbf16, #tpu.memory_space<vmem>>, vector<1x8x32xbf16>
    %34 = vector.shape_cast %33 : vector<1x8x32xbf16> to vector<8x32xbf16>
    %c0_16 = arith.constant 0 : index
    %c0_17 = arith.constant 0 : index
    %c160 = arith.constant 160 : index
    %35 = vector.load %arg3[%c0_16, %c0_17, %c160] : memref<1x8x384xbf16, #tpu.memory_space<vmem>>, vector<1x8x32xbf16>
    %36 = vector.shape_cast %35 : vector<1x8x32xbf16> to vector<8x32xbf16>
    %c0_18 = arith.constant 0 : index
    %c0_19 = arith.constant 0 : index
    %c288 = arith.constant 288 : index
    %37 = vector.load %arg3[%c0_18, %c0_19, %c288] : memref<1x8x384xbf16, #tpu.memory_space<vmem>>, vector<1x8x32xbf16>
    %38 = vector.shape_cast %37 : vector<1x8x32xbf16> to vector<8x32xbf16>
    %cst_20 = arith.constant dense<0.000000e+00> : vector<8x8xf32>
    %39 = tpu.matmul %34, %36, %cst_20 {dimension_numbers = #tpu.dot_dimension_numbers<[1], [1], [0], [0], [0, 0, 1, 0], [], []>} : vector<8x32xbf16>, vector<8x32xbf16>, vector<8x8xf32> -> vector<8x8xf32>
    %cst_21 = arith.constant 0.176776692 : f32
    %40 = vector.broadcast %cst_21 : f32 to vector<8x8xf32>
    %41 = arith.mulf %39, %40 : vector<8x8xf32>
    %42 = vector.broadcast %3 : vector<1x8xf32> to vector<8x8xf32>
    %43 = arith.addf %41, %42 : vector<8x8xf32>
    %cst_22 = arith.constant dense<0xFF800000> : vector<8xf32>
    %44 = vector.multi_reduction <maximumf>, %43, %cst_22 [1] : vector<8x8xf32> to vector<8xf32>
    %45 = vector.shape_cast %44 : vector<8xf32> to vector<8x1xf32>
    %46 = vector.broadcast %45 : vector<8x1xf32> to vector<8x8xf32>
    %47 = arith.subf %43, %46 : vector<8x8xf32>
    %48 = math.exp %47 : vector<8x8xf32>
    %cst_23 = arith.constant dense<0.000000e+00> : vector<8xf32>
    %49 = vector.multi_reduction <add>, %48, %cst_23 [1] : vector<8x8xf32> to vector<8xf32>
    %50 = vector.shape_cast %49 : vector<8xf32> to vector<8x1xf32>
    %51 = tpu.reciprocal %50 {approx = true} : vector<8x1xf32> -> vector<8x1xf32>
    %52 = vector.broadcast %51 : vector<8x1xf32> to vector<8x8xf32>
    %53 = arith.mulf %48, %52 : vector<8x8xf32>
    %54 = arith.truncf %53 : vector<8x8xf32> to vector<8x8xbf16>
    %cst_24 = arith.constant dense<0.000000e+00> : vector<8x32xf32>
    %55 = tpu.matmul %54, %38, %cst_24 {dimension_numbers = #tpu.dot_dimension_numbers<[1], [0], [0], [1], [0, 0, 1, 1], [], []>} : vector<8x8xbf16>, vector<8x32xbf16>, vector<8x32xf32> -> vector<8x32xf32>
    %56 = arith.truncf %55 : vector<8x32xf32> to vector<8x32xbf16>
    %c0_25 = arith.constant 0 : index
    %c0_26 = arith.constant 0 : index
    %c32_27 = arith.constant 32 : index
    %57 = vector.load %arg4[%c0_25, %c0_26, %c32_27] : memref<1x8x128xbf16, #tpu.memory_space<vmem>>, vector<1x8x32xbf16>
    %58 = vector.shape_cast %57 : vector<1x8x32xbf16> to vector<8x32xbf16>
    %59 = vector.shape_cast %56 : vector<8x32xbf16> to vector<1x8x32xbf16>
    tpu.vector_store %arg4[%c0_25, %c0_26, %c32_27], %59 {strides = array<i32>} : memref<1x8x128xbf16, #tpu.memory_space<vmem>>, vector<1x8x32xbf16>,
    %c0_28 = arith.constant 0 : index
    %60 = arith.index_cast %1 : i32 to index
    %c64 = arith.constant 64 : index
    %61 = vector.load %arg3[%c0_28, %60, %c64] : memref<1x8x384xbf16, #tpu.memory_space<vmem>>, vector<1x8x32xbf16>
    %62 = vector.shape_cast %61 : vector<1x8x32xbf16> to vector<8x32xbf16>
    %c0_29 = arith.constant 0 : index
    %c0_30 = arith.constant 0 : index
    %c192 = arith.constant 192 : index
    %63 = vector.load %arg3[%c0_29, %c0_30, %c192] : memref<1x8x384xbf16, #tpu.memory_space<vmem>>, vector<1x8x32xbf16>
    %64 = vector.shape_cast %63 : vector<1x8x32xbf16> to vector<8x32xbf16>
    %c0_31 = arith.constant 0 : index
    %c0_32 = arith.constant 0 : index
    %c320 = arith.constant 320 : index
    %65 = vector.load %arg3[%c0_31, %c0_32, %c320] : memref<1x8x384xbf16, #tpu.memory_space<vmem>>, vector<1x8x32xbf16>
    %66 = vector.shape_cast %65 : vector<1x8x32xbf16> to vector<8x32xbf16>
    %cst_33 = arith.constant dense<0.000000e+00> : vector<8x8xf32>
    %67 = tpu.matmul %62, %64, %cst_33 {dimension_numbers = #tpu.dot_dimension_numbers<[1], [1], [0], [0], [0, 0, 1, 0], [], []>} : vector<8x32xbf16>, vector<8x32xbf16>, vector<8x8xf32> -> vector<8x8xf32>
    %cst_34 = arith.constant 0.176776692 : f32
    %68 = vector.broadcast %cst_34 : f32 to vector<8x8xf32>
    %69 = arith.mulf %67, %68 : vector<8x8xf32>
    %70 = vector.broadcast %3 : vector<1x8xf32> to vector<8x8xf32>
    %71 = arith.addf %69, %70 : vector<8x8xf32>
    %cst_35 = arith.constant dense<0xFF800000> : vector<8xf32>
    %72 = vector.multi_reduction <maximumf>, %71, %cst_35 [1] : vector<8x8xf32> to vector<8xf32>
    %73 = vector.shape_cast %72 : vector<8xf32> to vector<8x1xf32>
    %74 = vector.broadcast %73 : vector<8x1xf32> to vector<8x8xf32>
    %75 = arith.subf %71, %74 : vector<8x8xf32>
    %76 = math.exp %75 : vector<8x8xf32>
    %cst_36 = arith.constant dense<0.000000e+00> : vector<8xf32>
    %77 = vector.multi_reduction <add>, %76, %cst_36 [1] : vector<8x8xf32> to vector<8xf32>
    %78 = vector.shape_cast %77 : vector<8xf32> to vector<8x1xf32>
    %79 = tpu.reciprocal %78 {approx = true} : vector<8x1xf32> -> vector<8x1xf32>
    %80 = vector.broadcast %79 : vector<8x1xf32> to vector<8x8xf32>
    %81 = arith.mulf %76, %80 : vector<8x8xf32>
    %82 = arith.truncf %81 : vector<8x8xf32> to vector<8x8xbf16>
    %cst_37 = arith.constant dense<0.000000e+00> : vector<8x32xf32>
    %83 = tpu.matmul %82, %66, %cst_37 {dimension_numbers = #tpu.dot_dimension_numbers<[1], [0], [0], [1], [0, 0, 1, 1], [], []>} : vector<8x8xbf16>, vector<8x32xbf16>, vector<8x32xf32> -> vector<8x32xf32>
    %84 = arith.truncf %83 : vector<8x32xf32> to vector<8x32xbf16>
    %c0_38 = arith.constant 0 : index
    %c0_39 = arith.constant 0 : index
    %c64_40 = arith.constant 64 : index
    %85 = vector.load %arg4[%c0_38, %c0_39, %c64_40] : memref<1x8x128xbf16, #tpu.memory_space<vmem>>, vector<1x8x32xbf16>
    %86 = vector.shape_cast %85 : vector<1x8x32xbf16> to vector<8x32xbf16>
    %87 = vector.shape_cast %84 : vector<8x32xbf16> to vector<1x8x32xbf16>
    tpu.vector_store %arg4[%c0_38, %c0_39, %c64_40], %87 {strides = array<i32>} : memref<1x8x128xbf16, #tpu.memory_space<vmem>>, vector<1x8x32xbf16>,
    %c0_41 = arith.constant 0 : index
    %88 = arith.index_cast %1 : i32 to index
    %c96 = arith.constant 96 : index
    %89 = vector.load %arg3[%c0_41, %88, %c96] : memref<1x8x384xbf16, #tpu.memory_space<vmem>>, vector<1x8x32xbf16>
    %90 = vector.shape_cast %89 : vector<1x8x32xbf16> to vector<8x32xbf16>
    %c0_42 = arith.constant 0 : index
    %c0_43 = arith.constant 0 : index
    %c224 = arith.constant 224 : index
    %91 = vector.load %arg3[%c0_42, %c0_43, %c224] : memref<1x8x384xbf16, #tpu.memory_space<vmem>>, vector<1x8x32xbf16>
    %92 = vector.shape_cast %91 : vector<1x8x32xbf16> to vector<8x32xbf16>
    %c0_44 = arith.constant 0 : index
    %c0_45 = arith.constant 0 : index
    %c352 = arith.constant 352 : index
    %93 = vector.load %arg3[%c0_44, %c0_45, %c352] : memref<1x8x384xbf16, #tpu.memory_space<vmem>>, vector<1x8x32xbf16>
    %94 = vector.shape_cast %93 : vector<1x8x32xbf16> to vector<8x32xbf16>
    %cst_46 = arith.constant dense<0.000000e+00> : vector<8x8xf32>
    %95 = tpu.matmul %90, %92, %cst_46 {dimension_numbers = #tpu.dot_dimension_numbers<[1], [1], [0], [0], [0, 0, 1, 0], [], []>} : vector<8x32xbf16>, vector<8x32xbf16>, vector<8x8xf32> -> vector<8x8xf32>
    %cst_47 = arith.constant 0.176776692 : f32
    %96 = vector.broadcast %cst_47 : f32 to vector<8x8xf32>
    %97 = arith.mulf %95, %96 : vector<8x8xf32>
    %98 = vector.broadcast %3 : vector<1x8xf32> to vector<8x8xf32>
    %99 = arith.addf %97, %98 : vector<8x8xf32>
    %cst_48 = arith.constant dense<0xFF800000> : vector<8xf32>
    %100 = vector.multi_reduction <maximumf>, %99, %cst_48 [1] : vector<8x8xf32> to vector<8xf32>
    %101 = vector.shape_cast %100 : vector<8xf32> to vector<8x1xf32>
    %102 = vector.broadcast %101 : vector<8x1xf32> to vector<8x8xf32>
    %103 = arith.subf %99, %102 : vector<8x8xf32>
    %104 = math.exp %103 : vector<8x8xf32>
    %cst_49 = arith.constant dense<0.000000e+00> : vector<8xf32>
    %105 = vector.multi_reduction <add>, %104, %cst_49 [1] : vector<8x8xf32> to vector<8xf32>
    %106 = vector.shape_cast %105 : vector<8xf32> to vector<8x1xf32>
    %107 = tpu.reciprocal %106 {approx = true} : vector<8x1xf32> -> vector<8x1xf32>
    %108 = vector.broadcast %107 : vector<8x1xf32> to vector<8x8xf32>
    %109 = arith.mulf %104, %108 : vector<8x8xf32>
    %110 = arith.truncf %109 : vector<8x8xf32> to vector<8x8xbf16>
    %cst_50 = arith.constant dense<0.000000e+00> : vector<8x32xf32>
    %111 = tpu.matmul %110, %94, %cst_50 {dimension_numbers = #tpu.dot_dimension_numbers<[1], [0], [0], [1], [0, 0, 1, 1], [], []>} : vector<8x8xbf16>, vector<8x32xbf16>, vector<8x32xf32> -> vector<8x32xf32>
    %112 = arith.truncf %111 : vector<8x32xf32> to vector<8x32xbf16>
    %c0_51 = arith.constant 0 : index
    %c0_52 = arith.constant 0 : index
    %c96_53 = arith.constant 96 : index
    %113 = vector.load %arg4[%c0_51, %c0_52, %c96_53] : memref<1x8x128xbf16, #tpu.memory_space<vmem>>, vector<1x8x32xbf16>
    %114 = vector.shape_cast %113 : vector<1x8x32xbf16> to vector<8x32xbf16>
    %115 = vector.shape_cast %112 : vector<8x32xbf16> to vector<1x8x32xbf16>
    tpu.vector_store %arg4[%c0_51, %c0_52, %c96_53], %115 {strides = array<i32>} : memref<1x8x128xbf16, #tpu.memory_space<vmem>>, vector<1x8x32xbf16>,
    return
  }
  func.func @transform_0(%arg0: i32, %arg1: i32) -> (i32, i32, i32) {
    %c0_i32 = arith.constant 0 : i32
    %c0_i32_0 = arith.constant 0 : i32
    %c0_i32_1 = arith.constant 0 : i32
    return %arg0, %c0_i32, %c0_i32_0 : i32, i32, i32
  }
  func.func @transform_1(%arg0: i32, %arg1: i32) -> (i32, i32, i32) {
    %c0_i32 = arith.constant 0 : i32
    %c0_i32_0 = arith.constant 0 : i32
    %c0_i32_1 = arith.constant 0 : i32
    return %arg0, %c0_i32, %c0_i32_0 : i32, i32, i32
  }
  func.func @transform_2(%arg0: i32, %arg1: i32) -> (i32, i32, i32) {
    %c0_i32 = arith.constant 0 : i32
    %c0_i32_0 = arith.constant 0 : i32
    return %arg0, %arg1, %c0_i32 : i32, i32, i32
  }
}

module attributes {stable_mosaic.version = 11 : i64} {
  func.func @_value_enc_kernel(%arg0: i32, %arg1: memref<16x1xf32, #tpu.memory_space<vmem>>, %arg2: memref<1x128xf32, #tpu.memory_space<vmem>>, %arg3: memref<1x128xf32, #tpu.memory_space<vmem>>, %arg4: memref<128x128xbf16, #tpu.memory_space<vmem>>, %arg5: memref<1x128xf32, #tpu.memory_space<vmem>>, %arg6: memref<1x128xf32, #tpu.memory_space<vmem>>, %arg7: memref<1x128xf32, #tpu.memory_space<vmem>>, %arg8: memref<16x128xf32, #tpu.memory_space<vmem>>) attributes {dimension_semantics = [#tpu.dimension_semantics<parallel>], iteration_bounds = array<i64: 1>, scalar_prefetch = 0 : i64, scratch_operands = 0 : i64, tpu.core_type = #tpu.core_type<tc>, window_params = [{transform_indices = @transform_0, window_bounds = array<i64: 16, 1>}, {pipeline_mode = #tpu.pipeline_mode<synchronous>, transform_indices = @transform_1, window_bounds = array<i64: 1, 128>}, {pipeline_mode = #tpu.pipeline_mode<synchronous>, transform_indices = @transform_2, window_bounds = array<i64: 1, 128>}, {pipeline_mode = #tpu.pipeline_mode<synchronous>, transform_indices = @transform_3, window_bounds = array<i64: 128, 128>}, {pipeline_mode = #tpu.pipeline_mode<synchronous>, transform_indices = @transform_4, window_bounds = array<i64: 1, 128>}, {pipeline_mode = #tpu.pipeline_mode<synchronous>, transform_indices = @transform_5, window_bounds = array<i64: 1, 128>}, {pipeline_mode = #tpu.pipeline_mode<synchronous>, transform_indices = @transform_6, window_bounds = array<i64: 1, 128>}, {transform_indices = @transform_7, window_bounds = array<i64: 16, 128>}]} {
    %c0 = arith.constant 0 : index
    %c0_0 = arith.constant 0 : index
    %0 = vector.load %arg1[%c0, %c0_0] : memref<16x1xf32, #tpu.memory_space<vmem>>, vector<16x1xf32>
    %cst = arith.constant 5.120000e+02 : f32
    %1 = vector.broadcast %cst : f32 to vector<16x1xf32>
    %2 = arith.minimumf %0, %1 : vector<16x1xf32>
    %c0_1 = arith.constant 0 : index
    %c0_2 = arith.constant 0 : index
    %3 = vector.load %arg2[%c0_1, %c0_2] : memref<1x128xf32, #tpu.memory_space<vmem>>, vector<1x128xf32>
    %4 = vector.broadcast %2 : vector<16x1xf32> to vector<16x128xf32>
    %5 = vector.broadcast %3 : vector<1x128xf32> to vector<16x128xf32>
    %6 = arith.mulf %4, %5 : vector<16x128xf32>
    %c0_3 = arith.constant 0 : index
    %c0_4 = arith.constant 0 : index
    %7 = vector.load %arg3[%c0_3, %c0_4] : memref<1x128xf32, #tpu.memory_space<vmem>>, vector<1x128xf32>
    %8 = vector.broadcast %7 : vector<1x128xf32> to vector<16x128xf32>
    %9 = arith.addf %6, %8 : vector<16x128xf32>
    %cst_5 = arith.constant 0.000000e+00 : f32
    %10 = vector.broadcast %cst_5 : f32 to vector<16x128xf32>
    %11 = arith.maximumf %9, %10 : vector<16x128xf32>
    %12 = arith.truncf %11 : vector<16x128xf32> to vector<16x128xbf16>
    %c0_6 = arith.constant 0 : index
    %c0_7 = arith.constant 0 : index
    %13 = vector.load %arg4[%c0_6, %c0_7] : memref<128x128xbf16, #tpu.memory_space<vmem>>, vector<128x128xbf16>
    %cst_8 = arith.constant dense<0.000000e+00> : vector<16x128xf32>
    %14 = tpu.matmul %12, %13, %cst_8 {dimension_numbers = #tpu.dot_dimension_numbers<[1], [0], [0], [1], [0, 0, 1, 1], [], []>} : vector<16x128xbf16>, vector<128x128xbf16>, vector<16x128xf32> -> vector<16x128xf32>
    %c0_9 = arith.constant 0 : index
    %c0_10 = arith.constant 0 : index
    %15 = vector.load %arg5[%c0_9, %c0_10] : memref<1x128xf32, #tpu.memory_space<vmem>>, vector<1x128xf32>
    %16 = vector.broadcast %15 : vector<1x128xf32> to vector<16x128xf32>
    %17 = arith.addf %14, %16 : vector<16x128xf32>
    %cst_11 = arith.constant dense<0.000000e+00> : vector<16xf32>
    %18 = vector.multi_reduction <add>, %17, %cst_11 [1] : vector<16x128xf32> to vector<16xf32>
    %19 = vector.shape_cast %18 : vector<16xf32> to vector<16x1xf32>
    %cst_12 = arith.constant 1.280000e+02 : f32
    %20 = vector.broadcast %cst_12 : f32 to vector<16x1xf32>
    %21 = arith.divf %19, %20 : vector<16x1xf32>
    %22 = vector.broadcast %21 : vector<16x1xf32> to vector<16x128xf32>
    %23 = arith.subf %17, %22 : vector<16x128xf32>
    %24 = arith.mulf %23, %23 : vector<16x128xf32>
    %cst_13 = arith.constant dense<0.000000e+00> : vector<16xf32>
    %25 = vector.multi_reduction <add>, %24, %cst_13 [1] : vector<16x128xf32> to vector<16xf32>
    %26 = vector.shape_cast %25 : vector<16xf32> to vector<16x1xf32>
    %cst_14 = arith.constant 1.280000e+02 : f32
    %27 = vector.broadcast %cst_14 : f32 to vector<16x1xf32>
    %28 = arith.divf %26, %27 : vector<16x1xf32>
    %cst_15 = arith.constant 9.99999974E-6 : f32
    %29 = vector.broadcast %cst_15 : f32 to vector<16x1xf32>
    %30 = arith.addf %28, %29 : vector<16x1xf32>
    %31 = math.rsqrt %30 : vector<16x1xf32>
    %32 = vector.broadcast %31 : vector<16x1xf32> to vector<16x128xf32>
    %33 = arith.mulf %23, %32 : vector<16x128xf32>
    %c0_16 = arith.constant 0 : index
    %c0_17 = arith.constant 0 : index
    %34 = vector.load %arg6[%c0_16, %c0_17] : memref<1x128xf32, #tpu.memory_space<vmem>>, vector<1x128xf32>
    %35 = vector.broadcast %34 : vector<1x128xf32> to vector<16x128xf32>
    %36 = arith.mulf %33, %35 : vector<16x128xf32>
    %c0_18 = arith.constant 0 : index
    %c0_19 = arith.constant 0 : index
    %37 = vector.load %arg7[%c0_18, %c0_19] : memref<1x128xf32, #tpu.memory_space<vmem>>, vector<1x128xf32>
    %38 = vector.broadcast %37 : vector<1x128xf32> to vector<16x128xf32>
    %39 = arith.addf %36, %38 : vector<16x128xf32>
    %c0_20 = arith.constant 0 : index
    %c0_21 = arith.constant 0 : index
    %40 = vector.load %arg8[%c0_20, %c0_21] : memref<16x128xf32, #tpu.memory_space<vmem>>, vector<16x128xf32>
    tpu.vector_store %arg8[%c0_20, %c0_21], %39 {strides = array<i32>} : memref<16x128xf32, #tpu.memory_space<vmem>>, vector<16x128xf32>,
    return
  }
  func.func @transform_0(%arg0: i32) -> (i32, i32) {
    %c0_i32 = arith.constant 0 : i32
    %c0_i32_0 = arith.constant 0 : i32
    return %arg0, %c0_i32 : i32, i32
  }
  func.func @transform_1(%arg0: i32) -> (i32, i32) {
    %c0_i32 = arith.constant 0 : i32
    %c0_i32_0 = arith.constant 0 : i32
    %c0_i32_1 = arith.constant 0 : i32
    return %c0_i32, %c0_i32_0 : i32, i32
  }
  func.func @transform_2(%arg0: i32) -> (i32, i32) {
    %c0_i32 = arith.constant 0 : i32
    %c0_i32_0 = arith.constant 0 : i32
    %c0_i32_1 = arith.constant 0 : i32
    return %c0_i32, %c0_i32_0 : i32, i32
  }
  func.func @transform_3(%arg0: i32) -> (i32, i32) {
    %c0_i32 = arith.constant 0 : i32
    %c0_i32_0 = arith.constant 0 : i32
    %c0_i32_1 = arith.constant 0 : i32
    return %c0_i32, %c0_i32_0 : i32, i32
  }
  func.func @transform_4(%arg0: i32) -> (i32, i32) {
    %c0_i32 = arith.constant 0 : i32
    %c0_i32_0 = arith.constant 0 : i32
    %c0_i32_1 = arith.constant 0 : i32
    return %c0_i32, %c0_i32_0 : i32, i32
  }
  func.func @transform_5(%arg0: i32) -> (i32, i32) {
    %c0_i32 = arith.constant 0 : i32
    %c0_i32_0 = arith.constant 0 : i32
    %c0_i32_1 = arith.constant 0 : i32
    return %c0_i32, %c0_i32_0 : i32, i32
  }
  func.func @transform_6(%arg0: i32) -> (i32, i32) {
    %c0_i32 = arith.constant 0 : i32
    %c0_i32_0 = arith.constant 0 : i32
    %c0_i32_1 = arith.constant 0 : i32
    return %c0_i32, %c0_i32_0 : i32, i32
  }
  func.func @transform_7(%arg0: i32) -> (i32, i32) {
    %c0_i32 = arith.constant 0 : i32
    %c0_i32_0 = arith.constant 0 : i32
    return %arg0, %c0_i32 : i32, i32
  }
}

module attributes {stable_mosaic.version = 11 : i64} {
  func.func @_fused_linear_kernel(%arg0: i32, %arg1: i32, %arg2: i32, %arg3: memref<16x128xf32, #tpu.memory_space<vmem>>, %arg4: memref<128x384xbf16, #tpu.memory_space<vmem>>, %arg5: memref<1x384xf32, #tpu.memory_space<vmem>>, %arg6: memref<16x384xbf16, #tpu.memory_space<vmem>>, %arg7: memref<16x384xf32, #tpu.memory_space<vmem>>) attributes {dimension_semantics = [#tpu.dimension_semantics<parallel>, #tpu.dimension_semantics<parallel>, #tpu.dimension_semantics<arbitrary>], iteration_bounds = array<i64: 1, 1, 1>, scalar_prefetch = 0 : i64, scratch_operands = 1 : i64, tpu.core_type = #tpu.core_type<tc>, window_params = [{transform_indices = @transform_0, window_bounds = array<i64: 16, 128>}, {transform_indices = @transform_1, window_bounds = array<i64: 128, 384>}, {transform_indices = @transform_2, window_bounds = array<i64: 1, 384>}, {transform_indices = @transform_3, window_bounds = array<i64: 16, 384>}]} {
    %c0_i32 = arith.constant 0 : i32
    %0 = arith.cmpi eq, %arg2, %c0_i32 : i32
    %1 = arith.extui %0 : i1 to i32
    %c0_i32_0 = arith.constant 0 : i32
    %2 = arith.cmpi ne, %1, %c0_i32_0 : i32
    scf.if %2 {
      %cst_10 = arith.constant 0.000000e+00 : f32
      %13 = vector.broadcast %cst_10 : f32 to vector<16x384xf32>
      %c0_11 = arith.constant 0 : index
      %c0_12 = arith.constant 0 : index
      %14 = vector.load %arg7[%c0_11, %c0_12] : memref<16x384xf32, #tpu.memory_space<vmem>>, vector<16x384xf32>
      tpu.vector_store %arg7[%c0_11, %c0_12], %13 {strides = array<i32>} : memref<16x384xf32, #tpu.memory_space<vmem>>, vector<16x384xf32>,
    } else {
    }
    %c0 = arith.constant 0 : index
    %c0_1 = arith.constant 0 : index
    %3 = vector.load %arg3[%c0, %c0_1] : memref<16x128xf32, #tpu.memory_space<vmem>>, vector<16x128xf32>
    %4 = arith.truncf %3 : vector<16x128xf32> to vector<16x128xbf16>
    %c0_2 = arith.constant 0 : index
    %c0_3 = arith.constant 0 : index
    %5 = vector.load %arg4[%c0_2, %c0_3] : memref<128x384xbf16, #tpu.memory_space<vmem>>, vector<128x384xbf16>
    %c0_4 = arith.constant 0 : index
    %c0_5 = arith.constant 0 : index
    %6 = vector.load %arg7[%c0_4, %c0_5] : memref<16x384xf32, #tpu.memory_space<vmem>>, vector<16x384xf32>
    %cst = arith.constant dense<0.000000e+00> : vector<16x384xf32>
    %7 = tpu.matmul %4, %5, %cst {dimension_numbers = #tpu.dot_dimension_numbers<[1], [0], [0], [1], [0, 0, 1, 1], [], []>} : vector<16x128xbf16>, vector<128x384xbf16>, vector<16x384xf32> -> vector<16x384xf32>
    %8 = arith.addf %6, %7 : vector<16x384xf32>
    %c0_6 = arith.constant 0 : index
    %c0_7 = arith.constant 0 : index
    %9 = vector.load %arg7[%c0_6, %c0_7] : memref<16x384xf32, #tpu.memory_space<vmem>>, vector<16x384xf32>
    tpu.vector_store %arg7[%c0_6, %c0_7], %8 {strides = array<i32>} : memref<16x384xf32, #tpu.memory_space<vmem>>, vector<16x384xf32>,
    %c0_i32_8 = arith.constant 0 : i32
    %10 = arith.cmpi eq, %arg2, %c0_i32_8 : i32
    %11 = arith.extui %10 : i1 to i32
    %c0_i32_9 = arith.constant 0 : i32
    %12 = arith.cmpi ne, %11, %c0_i32_9 : i32
    scf.if %12 {
      %c0_10 = arith.constant 0 : index
      %c0_11 = arith.constant 0 : index
      %13 = vector.load %arg7[%c0_10, %c0_11] : memref<16x384xf32, #tpu.memory_space<vmem>>, vector<16x384xf32>
      %c0_12 = arith.constant 0 : index
      %c0_13 = arith.constant 0 : index
      %14 = vector.load %arg5[%c0_12, %c0_13] : memref<1x384xf32, #tpu.memory_space<vmem>>, vector<1x384xf32>
      %15 = vector.broadcast %14 : vector<1x384xf32> to vector<16x384xf32>
      %16 = arith.addf %13, %15 : vector<16x384xf32>
      %17 = arith.truncf %16 : vector<16x384xf32> to vector<16x384xbf16>
      %c0_14 = arith.constant 0 : index
      %c0_15 = arith.constant 0 : index
      %18 = vector.load %arg6[%c0_14, %c0_15] : memref<16x384xbf16, #tpu.memory_space<vmem>>, vector<16x384xbf16>
      tpu.vector_store %arg6[%c0_14, %c0_15], %17 {strides = array<i32>} : memref<16x384xbf16, #tpu.memory_space<vmem>>, vector<16x384xbf16>,
    } else {
    }
    return
  }
  func.func @transform_0(%arg0: i32, %arg1: i32, %arg2: i32) -> (i32, i32) {
    %c0_i32 = arith.constant 0 : i32
    return %arg0, %arg2 : i32, i32
  }
  func.func @transform_1(%arg0: i32, %arg1: i32, %arg2: i32) -> (i32, i32) {
    %c0_i32 = arith.constant 0 : i32
    return %arg2, %arg1 : i32, i32
  }
  func.func @transform_2(%arg0: i32, %arg1: i32, %arg2: i32) -> (i32, i32) {
    %c0_i32 = arith.constant 0 : i32
    %c0_i32_0 = arith.constant 0 : i32
    return %c0_i32, %arg1 : i32, i32
  }
  func.func @transform_3(%arg0: i32, %arg1: i32, %arg2: i32) -> (i32, i32) {
    %c0_i32 = arith.constant 0 : i32
    return %arg0, %arg1 : i32, i32
  }
}

module attributes {stable_mosaic.version = 11 : i64} {
  func.func @_embed_bn_kernel(%arg0: i32, %arg1: i32, %arg2: memref<1x8x128xf32, #tpu.memory_space<vmem>>, %arg3: memref<1x1x128xf32, #tpu.memory_space<vmem>>, %arg4: memref<1x1x128xf32, #tpu.memory_space<vmem>>, %arg5: memref<1x1x128xf32, #tpu.memory_space<vmem>>, %arg6: memref<1x1x128xf32, #tpu.memory_space<vmem>>, %arg7: memref<1x1x128xf32, #tpu.memory_space<vmem>>, %arg8: memref<1x8x128xf32, #tpu.memory_space<vmem>>, %arg9: memref<1x8x128xf32, #tpu.memory_space<vmem>>, %arg10: memref<1x1x128xf32, #tpu.memory_space<vmem>>, %arg11: memref<1x1x128xf32, #tpu.memory_space<vmem>>, %arg12: memref<1x1x128xf32, #tpu.memory_space<vmem>>, %arg13: memref<1x1x128xf32, #tpu.memory_space<vmem>>, %arg14: memref<1x8x128xf32, #tpu.memory_space<vmem>>) attributes {dimension_semantics = [#tpu.dimension_semantics<parallel>, #tpu.dimension_semantics<parallel>], iteration_bounds = array<i64: 2, 1>, scalar_prefetch = 0 : i64, scratch_operands = 0 : i64, tpu.core_type = #tpu.core_type<tc>, window_params = [{transform_indices = @transform_0, window_bounds = array<i64: 1, 8, 128>}, {pipeline_mode = #tpu.pipeline_mode<synchronous>, transform_indices = @transform_1, window_bounds = array<i64: 1, 1, 128>}, {pipeline_mode = #tpu.pipeline_mode<synchronous>, transform_indices = @transform_2, window_bounds = array<i64: 1, 1, 128>}, {transform_indices = @transform_3, window_bounds = array<i64: 1, 1, 128>}, {pipeline_mode = #tpu.pipeline_mode<synchronous>, transform_indices = @transform_4, window_bounds = array<i64: 1, 1, 128>}, {pipeline_mode = #tpu.pipeline_mode<synchronous>, transform_indices = @transform_5, window_bounds = array<i64: 1, 1, 128>}, {transform_indices = @transform_6, window_bounds = array<i64: 1, 8, 128>}, {transform_indices = @transform_7, window_bounds = array<i64: 1, 8, 128>}, {pipeline_mode = #tpu.pipeline_mode<synchronous>, transform_indices = @transform_8, window_bounds = array<i64: 1, 1, 128>}, {pipeline_mode = #tpu.pipeline_mode<synchronous>, transform_indices = @transform_9, window_bounds = array<i64: 1, 1, 128>}, {pipeline_mode = #tpu.pipeline_mode<synchronous>, transform_indices = @transform_10, window_bounds = array<i64: 1, 1, 128>}, {pipeline_mode = #tpu.pipeline_mode<synchronous>, transform_indices = @transform_11, window_bounds = array<i64: 1, 1, 128>}, {transform_indices = @transform_12, window_bounds = array<i64: 1, 8, 128>}]} {
    %c0 = arith.constant 0 : index
    %c0_0 = arith.constant 0 : index
    %c0_1 = arith.constant 0 : index
    %0 = vector.load %arg2[%c0, %c0_0, %c0_1] : memref<1x8x128xf32, #tpu.memory_space<vmem>>, vector<1x8x128xf32>
    %c0_2 = arith.constant 0 : index
    %c0_3 = arith.constant 0 : index
    %c0_4 = arith.constant 0 : index
    %1 = vector.load %arg3[%c0_2, %c0_3, %c0_4] : memref<1x1x128xf32, #tpu.memory_space<vmem>>, vector<1x1x128xf32>
    %c0_5 = arith.constant 0 : index
    %c0_6 = arith.constant 0 : index
    %c0_7 = arith.constant 0 : index
    %2 = vector.load %arg4[%c0_5, %c0_6, %c0_7] : memref<1x1x128xf32, #tpu.memory_space<vmem>>, vector<1x1x128xf32>
    %cst = arith.constant dense<0.000000e+00> : vector<1x8xf32>
    %3 = vector.multi_reduction <add>, %0, %cst [2] : vector<1x8x128xf32> to vector<1x8xf32>
    %4 = vector.shape_cast %3 : vector<1x8xf32> to vector<1x8x1xf32>
    %cst_8 = arith.constant 1.280000e+02 : f32
    %5 = vector.broadcast %cst_8 : f32 to vector<1x8x1xf32>
    %6 = arith.divf %4, %5 : vector<1x8x1xf32>
    %7 = vector.broadcast %6 : vector<1x8x1xf32> to vector<1x8x128xf32>
    %8 = arith.subf %0, %7 : vector<1x8x128xf32>
    %9 = arith.mulf %8, %8 : vector<1x8x128xf32>
    %cst_9 = arith.constant dense<0.000000e+00> : vector<1x8xf32>
    %10 = vector.multi_reduction <add>, %9, %cst_9 [2] : vector<1x8x128xf32> to vector<1x8xf32>
    %11 = vector.shape_cast %10 : vector<1x8xf32> to vector<1x8x1xf32>
    %cst_10 = arith.constant 1.280000e+02 : f32
    %12 = vector.broadcast %cst_10 : f32 to vector<1x8x1xf32>
    %13 = arith.divf %11, %12 : vector<1x8x1xf32>
    %cst_11 = arith.constant 9.99999974E-6 : f32
    %14 = vector.broadcast %cst_11 : f32 to vector<1x8x1xf32>
    %15 = arith.addf %13, %14 : vector<1x8x1xf32>
    %16 = math.rsqrt %15 : vector<1x8x1xf32>
    %17 = vector.broadcast %16 : vector<1x8x1xf32> to vector<1x8x128xf32>
    %18 = arith.mulf %8, %17 : vector<1x8x128xf32>
    %19 = vector.broadcast %1 : vector<1x1x128xf32> to vector<1x8x128xf32>
    %20 = arith.mulf %18, %19 : vector<1x8x128xf32>
    %21 = vector.broadcast %2 : vector<1x1x128xf32> to vector<1x8x128xf32>
    %22 = arith.addf %20, %21 : vector<1x8x128xf32>
    %c0_12 = arith.constant 0 : index
    %c0_13 = arith.constant 0 : index
    %c0_14 = arith.constant 0 : index
    %23 = vector.load %arg5[%c0_12, %c0_13, %c0_14] : memref<1x1x128xf32, #tpu.memory_space<vmem>>, vector<1x1x128xf32>
    %c0_15 = arith.constant 0 : index
    %c0_16 = arith.constant 0 : index
    %c0_17 = arith.constant 0 : index
    %24 = vector.load %arg6[%c0_15, %c0_16, %c0_17] : memref<1x1x128xf32, #tpu.memory_space<vmem>>, vector<1x1x128xf32>
    %c0_18 = arith.constant 0 : index
    %c0_19 = arith.constant 0 : index
    %c0_20 = arith.constant 0 : index
    %25 = vector.load %arg7[%c0_18, %c0_19, %c0_20] : memref<1x1x128xf32, #tpu.memory_space<vmem>>, vector<1x1x128xf32>
    %cst_21 = arith.constant dense<0.000000e+00> : vector<1x1xf32>
    %26 = vector.multi_reduction <add>, %23, %cst_21 [2] : vector<1x1x128xf32> to vector<1x1xf32>
    %27 = vector.shape_cast %26 : vector<1x1xf32> to vector<1x1x1xf32>
    %cst_22 = arith.constant 1.280000e+02 : f32
    %28 = vector.broadcast %cst_22 : f32 to vector<1x1x1xf32>
    %29 = arith.divf %27, %28 : vector<1x1x1xf32>
    %30 = vector.broadcast %29 : vector<1x1x1xf32> to vector<1x1x128xf32>
    %31 = arith.subf %23, %30 : vector<1x1x128xf32>
    %32 = arith.mulf %31, %31 : vector<1x1x128xf32>
    %cst_23 = arith.constant dense<0.000000e+00> : vector<1x1xf32>
    %33 = vector.multi_reduction <add>, %32, %cst_23 [2] : vector<1x1x128xf32> to vector<1x1xf32>
    %34 = vector.shape_cast %33 : vector<1x1xf32> to vector<1x1x1xf32>
    %cst_24 = arith.constant 1.280000e+02 : f32
    %35 = vector.broadcast %cst_24 : f32 to vector<1x1x1xf32>
    %36 = arith.divf %34, %35 : vector<1x1x1xf32>
    %cst_25 = arith.constant 9.99999974E-6 : f32
    %37 = vector.broadcast %cst_25 : f32 to vector<1x1x1xf32>
    %38 = arith.addf %36, %37 : vector<1x1x1xf32>
    %39 = math.rsqrt %38 : vector<1x1x1xf32>
    %40 = vector.broadcast %39 : vector<1x1x1xf32> to vector<1x1x128xf32>
    %41 = arith.mulf %31, %40 : vector<1x1x128xf32>
    %42 = arith.mulf %41, %24 : vector<1x1x128xf32>
    %43 = arith.addf %42, %25 : vector<1x1x128xf32>
    %44 = vector.broadcast %43 : vector<1x1x128xf32> to vector<1x8x128xf32>
    %45 = arith.addf %22, %44 : vector<1x8x128xf32>
    %c0_26 = arith.constant 0 : index
    %c0_27 = arith.constant 0 : index
    %c0_28 = arith.constant 0 : index
    %46 = vector.load %arg8[%c0_26, %c0_27, %c0_28] : memref<1x8x128xf32, #tpu.memory_space<vmem>>, vector<1x8x128xf32>
    %47 = arith.addf %45, %46 : vector<1x8x128xf32>
    %c0_29 = arith.constant 0 : index
    %c0_30 = arith.constant 0 : index
    %c0_31 = arith.constant 0 : index
    %48 = vector.load %arg9[%c0_29, %c0_30, %c0_31] : memref<1x8x128xf32, #tpu.memory_space<vmem>>, vector<1x8x128xf32>
    %49 = arith.addf %47, %48 : vector<1x8x128xf32>
    %c0_32 = arith.constant 0 : index
    %c0_33 = arith.constant 0 : index
    %c0_34 = arith.constant 0 : index
    %50 = vector.load %arg13[%c0_32, %c0_33, %c0_34] : memref<1x1x128xf32, #tpu.memory_space<vmem>>, vector<1x1x128xf32>
    %cst_35 = arith.constant 6.100000e-05 : f32
    %51 = vector.broadcast %cst_35 : f32 to vector<1x1x128xf32>
    %52 = arith.addf %50, %51 : vector<1x1x128xf32>
    %53 = math.rsqrt %52 : vector<1x1x128xf32>
    %c0_36 = arith.constant 0 : index
    %c0_37 = arith.constant 0 : index
    %c0_38 = arith.constant 0 : index
    %54 = vector.load %arg12[%c0_36, %c0_37, %c0_38] : memref<1x1x128xf32, #tpu.memory_space<vmem>>, vector<1x1x128xf32>
    %55 = vector.broadcast %54 : vector<1x1x128xf32> to vector<1x8x128xf32>
    %56 = arith.subf %49, %55 : vector<1x8x128xf32>
    %57 = vector.broadcast %53 : vector<1x1x128xf32> to vector<1x8x128xf32>
    %58 = arith.mulf %56, %57 : vector<1x8x128xf32>
    %c0_39 = arith.constant 0 : index
    %c0_40 = arith.constant 0 : index
    %c0_41 = arith.constant 0 : index
    %59 = vector.load %arg10[%c0_39, %c0_40, %c0_41] : memref<1x1x128xf32, #tpu.memory_space<vmem>>, vector<1x1x128xf32>
    %60 = vector.broadcast %59 : vector<1x1x128xf32> to vector<1x8x128xf32>
    %61 = arith.mulf %58, %60 : vector<1x8x128xf32>
    %c0_42 = arith.constant 0 : index
    %c0_43 = arith.constant 0 : index
    %c0_44 = arith.constant 0 : index
    %62 = vector.load %arg11[%c0_42, %c0_43, %c0_44] : memref<1x1x128xf32, #tpu.memory_space<vmem>>, vector<1x1x128xf32>
    %63 = vector.broadcast %62 : vector<1x1x128xf32> to vector<1x8x128xf32>
    %64 = arith.addf %61, %63 : vector<1x8x128xf32>
    %c0_45 = arith.constant 0 : index
    %c0_46 = arith.constant 0 : index
    %c0_47 = arith.constant 0 : index
    %65 = vector.load %arg14[%c0_45, %c0_46, %c0_47] : memref<1x8x128xf32, #tpu.memory_space<vmem>>, vector<1x8x128xf32>
    tpu.vector_store %arg14[%c0_45, %c0_46, %c0_47], %64 {strides = array<i32>} : memref<1x8x128xf32, #tpu.memory_space<vmem>>, vector<1x8x128xf32>,
    return
  }
  func.func @transform_0(%arg0: i32, %arg1: i32) -> (i32, i32, i32) {
    %c0_i32 = arith.constant 0 : i32
    %c0_i32_0 = arith.constant 0 : i32
    return %arg0, %arg1, %c0_i32 : i32, i32, i32
  }
  func.func @transform_1(%arg0: i32, %arg1: i32) -> (i32, i32, i32) {
    %c0_i32 = arith.constant 0 : i32
    %c0_i32_0 = arith.constant 0 : i32
    %c0_i32_1 = arith.constant 0 : i32
    %c0_i32_2 = arith.constant 0 : i32
    return %c0_i32, %c0_i32_0, %c0_i32_1 : i32, i32, i32
  }
  func.func @transform_2(%arg0: i32, %arg1: i32) -> (i32, i32, i32) {
    %c0_i32 = arith.constant 0 : i32
    %c0_i32_0 = arith.constant 0 : i32
    %c0_i32_1 = arith.constant 0 : i32
    %c0_i32_2 = arith.constant 0 : i32
    return %c0_i32, %c0_i32_0, %c0_i32_1 : i32, i32, i32
  }
  func.func @transform_3(%arg0: i32, %arg1: i32) -> (i32, i32, i32) {
    %c0_i32 = arith.constant 0 : i32
    %c0_i32_0 = arith.constant 0 : i32
    %c0_i32_1 = arith.constant 0 : i32
    return %arg0, %c0_i32, %c0_i32_0 : i32, i32, i32
  }
  func.func @transform_4(%arg0: i32, %arg1: i32) -> (i32, i32, i32) {
    %c0_i32 = arith.constant 0 : i32
    %c0_i32_0 = arith.constant 0 : i32
    %c0_i32_1 = arith.constant 0 : i32
    %c0_i32_2 = arith.constant 0 : i32
    return %c0_i32, %c0_i32_0, %c0_i32_1 : i32, i32, i32
  }
  func.func @transform_5(%arg0: i32, %arg1: i32) -> (i32, i32, i32) {
    %c0_i32 = arith.constant 0 : i32
    %c0_i32_0 = arith.constant 0 : i32
    %c0_i32_1 = arith.constant 0 : i32
    %c0_i32_2 = arith.constant 0 : i32
    return %c0_i32, %c0_i32_0, %c0_i32_1 : i32, i32, i32
  }
  func.func @transform_6(%arg0: i32, %arg1: i32) -> (i32, i32, i32) {
    %c0_i32 = arith.constant 0 : i32
    %c0_i32_0 = arith.constant 0 : i32
    return %arg0, %arg1, %c0_i32 : i32, i32, i32
  }
  func.func @transform_7(%arg0: i32, %arg1: i32) -> (i32, i32, i32) {
    %c0_i32 = arith.constant 0 : i32
    %c0_i32_0 = arith.constant 0 : i32
    return %arg0, %arg1, %c0_i32 : i32, i32, i32
  }
  func.func @transform_8(%arg0: i32, %arg1: i32) -> (i32, i32, i32) {
    %c0_i32 = arith.constant 0 : i32
    %c0_i32_0 = arith.constant 0 : i32
    %c0_i32_1 = arith.constant 0 : i32
    %c0_i32_2 = arith.constant 0 : i32
    return %c0_i32, %c0_i32_0, %c0_i32_1 : i32, i32, i32
  }
  func.func @transform_9(%arg0: i32, %arg1: i32) -> (i32, i32, i32) {
    %c0_i32 = arith.constant 0 : i32
    %c0_i32_0 = arith.constant 0 : i32
    %c0_i32_1 = arith.constant 0 : i32
    %c0_i32_2 = arith.constant 0 : i32
    return %c0_i32, %c0_i32_0, %c0_i32_1 : i32, i32, i32
  }
  func.func @transform_10(%arg0: i32, %arg1: i32) -> (i32, i32, i32) {
    %c0_i32 = arith.constant 0 : i32
    %c0_i32_0 = arith.constant 0 : i32
    %c0_i32_1 = arith.constant 0 : i32
    %c0_i32_2 = arith.constant 0 : i32
    return %c0_i32, %c0_i32_0, %c0_i32_1 : i32, i32, i32
  }
  func.func @transform_11(%arg0: i32, %arg1: i32) -> (i32, i32, i32) {
    %c0_i32 = arith.constant 0 : i32
    %c0_i32_0 = arith.constant 0 : i32
    %c0_i32_1 = arith.constant 0 : i32
    %c0_i32_2 = arith.constant 0 : i32
    return %c0_i32, %c0_i32_0, %c0_i32_1 : i32, i32, i32
  }
  func.func @transform_12(%arg0: i32, %arg1: i32) -> (i32, i32, i32) {
    %c0_i32 = arith.constant 0 : i32
    %c0_i32_0 = arith.constant 0 : i32
    return %arg0, %arg1, %c0_i32 : i32, i32, i32
  }
}

module attributes {stable_mosaic.version = 11 : i64} {
  func.func @_fused_linear_kernel(%arg0: i32, %arg1: i32, %arg2: i32, %arg3: memref<16x128xbf16, #tpu.memory_space<vmem>>, %arg4: memref<128x128xbf16, #tpu.memory_space<vmem>>, %arg5: memref<1x128xf32, #tpu.memory_space<vmem>>, %arg6: memref<16x128xf32, #tpu.memory_space<vmem>>, %arg7: memref<1x128xf32, #tpu.memory_space<vmem>>, %arg8: memref<1x128xf32, #tpu.memory_space<vmem>>, %arg9: memref<16x128xf32, #tpu.memory_space<vmem>>, %arg10: memref<16x128xf32, #tpu.memory_space<vmem>>) attributes {dimension_semantics = [#tpu.dimension_semantics<parallel>, #tpu.dimension_semantics<parallel>, #tpu.dimension_semantics<arbitrary>], iteration_bounds = array<i64: 1, 1, 1>, scalar_prefetch = 0 : i64, scratch_operands = 1 : i64, tpu.core_type = #tpu.core_type<tc>, window_params = [{transform_indices = @transform_0, window_bounds = array<i64: 16, 128>}, {transform_indices = @transform_1, window_bounds = array<i64: 128, 128>}, {transform_indices = @transform_2, window_bounds = array<i64: 1, 128>}, {transform_indices = @transform_3, window_bounds = array<i64: 16, 128>}, {transform_indices = @transform_4, window_bounds = array<i64: 1, 128>}, {transform_indices = @transform_5, window_bounds = array<i64: 1, 128>}, {transform_indices = @transform_6, window_bounds = array<i64: 16, 128>}]} {
    %c0_i32 = arith.constant 0 : i32
    %0 = arith.cmpi eq, %arg2, %c0_i32 : i32
    %1 = arith.extui %0 : i1 to i32
    %c0_i32_0 = arith.constant 0 : i32
    %2 = arith.cmpi ne, %1, %c0_i32_0 : i32
    scf.if %2 {
      %cst_10 = arith.constant 0.000000e+00 : f32
      %12 = vector.broadcast %cst_10 : f32 to vector<16x128xf32>
      %c0_11 = arith.constant 0 : index
      %c0_12 = arith.constant 0 : index
      %13 = vector.load %arg10[%c0_11, %c0_12] : memref<16x128xf32, #tpu.memory_space<vmem>>, vector<16x128xf32>
      tpu.vector_store %arg10[%c0_11, %c0_12], %12 {strides = array<i32>} : memref<16x128xf32, #tpu.memory_space<vmem>>, vector<16x128xf32>,
    } else {
    }
    %c0 = arith.constant 0 : index
    %c0_1 = arith.constant 0 : index
    %3 = vector.load %arg3[%c0, %c0_1] : memref<16x128xbf16, #tpu.memory_space<vmem>>, vector<16x128xbf16>
    %c0_2 = arith.constant 0 : index
    %c0_3 = arith.constant 0 : index
    %4 = vector.load %arg4[%c0_2, %c0_3] : memref<128x128xbf16, #tpu.memory_space<vmem>>, vector<128x128xbf16>
    %c0_4 = arith.constant 0 : index
    %c0_5 = arith.constant 0 : index
    %5 = vector.load %arg10[%c0_4, %c0_5] : memref<16x128xf32, #tpu.memory_space<vmem>>, vector<16x128xf32>
    %cst = arith.constant dense<0.000000e+00> : vector<16x128xf32>
    %6 = tpu.matmul %3, %4, %cst {dimension_numbers = #tpu.dot_dimension_numbers<[1], [0], [0], [1], [0, 0, 1, 1], [], []>} : vector<16x128xbf16>, vector<128x128xbf16>, vector<16x128xf32> -> vector<16x128xf32>
    %7 = arith.addf %5, %6 : vector<16x128xf32>
    %c0_6 = arith.constant 0 : index
    %c0_7 = arith.constant 0 : index
    %8 = vector.load %arg10[%c0_6, %c0_7] : memref<16x128xf32, #tpu.memory_space<vmem>>, vector<16x128xf32>
    tpu.vector_store %arg10[%c0_6, %c0_7], %7 {strides = array<i32>} : memref<16x128xf32, #tpu.memory_space<vmem>>, vector<16x128xf32>,
    %c0_i32_8 = arith.constant 0 : i32
    %9 = arith.cmpi eq, %arg2, %c0_i32_8 : i32
    %10 = arith.extui %9 : i1 to i32
    %c0_i32_9 = arith.constant 0 : i32
    %11 = arith.cmpi ne, %10, %c0_i32_9 : i32
    scf.if %11 {
      %c0_10 = arith.constant 0 : index
      %c0_11 = arith.constant 0 : index
      %12 = vector.load %arg10[%c0_10, %c0_11] : memref<16x128xf32, #tpu.memory_space<vmem>>, vector<16x128xf32>
      %c0_12 = arith.constant 0 : index
      %c0_13 = arith.constant 0 : index
      %13 = vector.load %arg5[%c0_12, %c0_13] : memref<1x128xf32, #tpu.memory_space<vmem>>, vector<1x128xf32>
      %14 = vector.broadcast %13 : vector<1x128xf32> to vector<16x128xf32>
      %15 = arith.addf %12, %14 : vector<16x128xf32>
      %c0_14 = arith.constant 0 : index
      %c0_15 = arith.constant 0 : index
      %16 = vector.load %arg6[%c0_14, %c0_15] : memref<16x128xf32, #tpu.memory_space<vmem>>, vector<16x128xf32>
      %17 = arith.addf %15, %16 : vector<16x128xf32>
      %cst_16 = arith.constant dense<0.000000e+00> : vector<16xf32>
      %18 = vector.multi_reduction <add>, %17, %cst_16 [1] : vector<16x128xf32> to vector<16xf32>
      %19 = vector.shape_cast %18 : vector<16xf32> to vector<16x1xf32>
      %cst_17 = arith.constant 1.280000e+02 : f32
      %20 = vector.broadcast %cst_17 : f32 to vector<16x1xf32>
      %21 = arith.divf %19, %20 : vector<16x1xf32>
      %22 = vector.broadcast %21 : vector<16x1xf32> to vector<16x128xf32>
      %23 = arith.subf %17, %22 : vector<16x128xf32>
      %24 = arith.mulf %23, %23 : vector<16x128xf32>
      %cst_18 = arith.constant dense<0.000000e+00> : vector<16xf32>
      %25 = vector.multi_reduction <add>, %24, %cst_18 [1] : vector<16x128xf32> to vector<16xf32>
      %26 = vector.shape_cast %25 : vector<16xf32> to vector<16x1xf32>
      %cst_19 = arith.constant 1.280000e+02 : f32
      %27 = vector.broadcast %cst_19 : f32 to vector<16x1xf32>
      %28 = arith.divf %26, %27 : vector<16x1xf32>
      %cst_20 = arith.constant 9.99999974E-6 : f32
      %29 = vector.broadcast %cst_20 : f32 to vector<16x1xf32>
      %30 = arith.addf %28, %29 : vector<16x1xf32>
      %31 = math.rsqrt %30 : vector<16x1xf32>
      %32 = vector.broadcast %31 : vector<16x1xf32> to vector<16x128xf32>
      %33 = arith.mulf %23, %32 : vector<16x128xf32>
      %c0_21 = arith.constant 0 : index
      %c0_22 = arith.constant 0 : index
      %34 = vector.load %arg7[%c0_21, %c0_22] : memref<1x128xf32, #tpu.memory_space<vmem>>, vector<1x128xf32>
      %35 = vector.broadcast %34 : vector<1x128xf32> to vector<16x128xf32>
      %36 = arith.mulf %33, %35 : vector<16x128xf32>
      %c0_23 = arith.constant 0 : index
      %c0_24 = arith.constant 0 : index
      %37 = vector.load %arg8[%c0_23, %c0_24] : memref<1x128xf32, #tpu.memory_space<vmem>>, vector<1x128xf32>
      %38 = vector.broadcast %37 : vector<1x128xf32> to vector<16x128xf32>
      %39 = arith.addf %36, %38 : vector<16x128xf32>
      %c0_25 = arith.constant 0 : index
      %c0_26 = arith.constant 0 : index
      %40 = vector.load %arg9[%c0_25, %c0_26] : memref<16x128xf32, #tpu.memory_space<vmem>>, vector<16x128xf32>
      tpu.vector_store %arg9[%c0_25, %c0_26], %39 {strides = array<i32>} : memref<16x128xf32, #tpu.memory_space<vmem>>, vector<16x128xf32>,
    } else {
    }
    return
  }
  func.func @transform_0(%arg0: i32, %arg1: i32, %arg2: i32) -> (i32, i32) {
    %c0_i32 = arith.constant 0 : i32
    return %arg0, %arg2 : i32, i32
  }
  func.func @transform_1(%arg0: i32, %arg1: i32, %arg2: i32) -> (i32, i32) {
    %c0_i32 = arith.constant 0 : i32
    return %arg2, %arg1 : i32, i32
  }
  func.func @transform_2(%arg0: i32, %arg1: i32, %arg2: i32) -> (i32, i32) {
    %c0_i32 = arith.constant 0 : i32
    %c0_i32_0 = arith.constant 0 : i32
    return %c0_i32, %arg1 : i32, i32
  }
  func.func @transform_3(%arg0: i32, %arg1: i32, %arg2: i32) -> (i32, i32) {
    %c0_i32 = arith.constant 0 : i32
    return %arg0, %arg1 : i32, i32
  }
  func.func @transform_4(%arg0: i32, %arg1: i32, %arg2: i32) -> (i32, i32) {
    %c0_i32 = arith.constant 0 : i32
    %c0_i32_0 = arith.constant 0 : i32
    return %c0_i32, %arg1 : i32, i32
  }
  func.func @transform_5(%arg0: i32, %arg1: i32, %arg2: i32) -> (i32, i32) {
    %c0_i32 = arith.constant 0 : i32
    %c0_i32_0 = arith.constant 0 : i32
    return %c0_i32, %arg1 : i32, i32
  }
  func.func @transform_6(%arg0: i32, %arg1: i32, %arg2: i32) -> (i32, i32) {
    %c0_i32 = arith.constant 0 : i32
    return %arg0, %arg1 : i32, i32
  }
}

module attributes {stable_mosaic.version = 11 : i64} {
  func.func @_fused_linear_kernel(%arg0: i32, %arg1: i32, %arg2: i32, %arg3: memref<16x128xf32, #tpu.memory_space<vmem>>, %arg4: memref<128x256xbf16, #tpu.memory_space<vmem>>, %arg5: memref<1x256xf32, #tpu.memory_space<vmem>>, %arg6: memref<16x256xbf16, #tpu.memory_space<vmem>>, %arg7: memref<16x256xf32, #tpu.memory_space<vmem>>) attributes {dimension_semantics = [#tpu.dimension_semantics<parallel>, #tpu.dimension_semantics<parallel>, #tpu.dimension_semantics<arbitrary>], iteration_bounds = array<i64: 1, 1, 1>, scalar_prefetch = 0 : i64, scratch_operands = 1 : i64, tpu.core_type = #tpu.core_type<tc>, window_params = [{transform_indices = @transform_0, window_bounds = array<i64: 16, 128>}, {transform_indices = @transform_1, window_bounds = array<i64: 128, 256>}, {transform_indices = @transform_2, window_bounds = array<i64: 1, 256>}, {transform_indices = @transform_3, window_bounds = array<i64: 16, 256>}]} {
    %c0_i32 = arith.constant 0 : i32
    %0 = arith.cmpi eq, %arg2, %c0_i32 : i32
    %1 = arith.extui %0 : i1 to i32
    %c0_i32_0 = arith.constant 0 : i32
    %2 = arith.cmpi ne, %1, %c0_i32_0 : i32
    scf.if %2 {
      %cst_10 = arith.constant 0.000000e+00 : f32
      %13 = vector.broadcast %cst_10 : f32 to vector<16x256xf32>
      %c0_11 = arith.constant 0 : index
      %c0_12 = arith.constant 0 : index
      %14 = vector.load %arg7[%c0_11, %c0_12] : memref<16x256xf32, #tpu.memory_space<vmem>>, vector<16x256xf32>
      tpu.vector_store %arg7[%c0_11, %c0_12], %13 {strides = array<i32>} : memref<16x256xf32, #tpu.memory_space<vmem>>, vector<16x256xf32>,
    } else {
    }
    %c0 = arith.constant 0 : index
    %c0_1 = arith.constant 0 : index
    %3 = vector.load %arg3[%c0, %c0_1] : memref<16x128xf32, #tpu.memory_space<vmem>>, vector<16x128xf32>
    %4 = arith.truncf %3 : vector<16x128xf32> to vector<16x128xbf16>
    %c0_2 = arith.constant 0 : index
    %c0_3 = arith.constant 0 : index
    %5 = vector.load %arg4[%c0_2, %c0_3] : memref<128x256xbf16, #tpu.memory_space<vmem>>, vector<128x256xbf16>
    %c0_4 = arith.constant 0 : index
    %c0_5 = arith.constant 0 : index
    %6 = vector.load %arg7[%c0_4, %c0_5] : memref<16x256xf32, #tpu.memory_space<vmem>>, vector<16x256xf32>
    %cst = arith.constant dense<0.000000e+00> : vector<16x256xf32>
    %7 = tpu.matmul %4, %5, %cst {dimension_numbers = #tpu.dot_dimension_numbers<[1], [0], [0], [1], [0, 0, 1, 1], [], []>} : vector<16x128xbf16>, vector<128x256xbf16>, vector<16x256xf32> -> vector<16x256xf32>
    %8 = arith.addf %6, %7 : vector<16x256xf32>
    %c0_6 = arith.constant 0 : index
    %c0_7 = arith.constant 0 : index
    %9 = vector.load %arg7[%c0_6, %c0_7] : memref<16x256xf32, #tpu.memory_space<vmem>>, vector<16x256xf32>
    tpu.vector_store %arg7[%c0_6, %c0_7], %8 {strides = array<i32>} : memref<16x256xf32, #tpu.memory_space<vmem>>, vector<16x256xf32>,
    %c0_i32_8 = arith.constant 0 : i32
    %10 = arith.cmpi eq, %arg2, %c0_i32_8 : i32
    %11 = arith.extui %10 : i1 to i32
    %c0_i32_9 = arith.constant 0 : i32
    %12 = arith.cmpi ne, %11, %c0_i32_9 : i32
    scf.if %12 {
      %c0_10 = arith.constant 0 : index
      %c0_11 = arith.constant 0 : index
      %13 = vector.load %arg7[%c0_10, %c0_11] : memref<16x256xf32, #tpu.memory_space<vmem>>, vector<16x256xf32>
      %c0_12 = arith.constant 0 : index
      %c0_13 = arith.constant 0 : index
      %14 = vector.load %arg5[%c0_12, %c0_13] : memref<1x256xf32, #tpu.memory_space<vmem>>, vector<1x256xf32>
      %15 = vector.broadcast %14 : vector<1x256xf32> to vector<16x256xf32>
      %16 = arith.addf %13, %15 : vector<16x256xf32>
      %cst_14 = arith.constant 0.000000e+00 : f32
      %17 = vector.broadcast %cst_14 : f32 to vector<16x256xf32>
      %18 = arith.maximumf %16, %17 : vector<16x256xf32>
      %19 = arith.truncf %18 : vector<16x256xf32> to vector<16x256xbf16>
      %c0_15 = arith.constant 0 : index
      %c0_16 = arith.constant 0 : index
      %20 = vector.load %arg6[%c0_15, %c0_16] : memref<16x256xbf16, #tpu.memory_space<vmem>>, vector<16x256xbf16>
      tpu.vector_store %arg6[%c0_15, %c0_16], %19 {strides = array<i32>} : memref<16x256xbf16, #tpu.memory_space<vmem>>, vector<16x256xbf16>,
    } else {
    }
    return
  }
  func.func @transform_0(%arg0: i32, %arg1: i32, %arg2: i32) -> (i32, i32) {
    %c0_i32 = arith.constant 0 : i32
    return %arg0, %arg2 : i32, i32
  }
  func.func @transform_1(%arg0: i32, %arg1: i32, %arg2: i32) -> (i32, i32) {
    %c0_i32 = arith.constant 0 : i32
    return %arg2, %arg1 : i32, i32
  }
  func.func @transform_2(%arg0: i32, %arg1: i32, %arg2: i32) -> (i32, i32) {
    %c0_i32 = arith.constant 0 : i32
    %c0_i32_0 = arith.constant 0 : i32
    return %c0_i32, %arg1 : i32, i32
  }
  func.func @transform_3(%arg0: i32, %arg1: i32, %arg2: i32) -> (i32, i32) {
    %c0_i32 = arith.constant 0 : i32
    return %arg0, %arg1 : i32, i32
  }
}

module attributes {stable_mosaic.version = 11 : i64} {
  func.func @_fused_linear_kernel(%arg0: i32, %arg1: i32, %arg2: i32, %arg3: memref<16x256xbf16, #tpu.memory_space<vmem>>, %arg4: memref<256x128xbf16, #tpu.memory_space<vmem>>, %arg5: memref<1x128xf32, #tpu.memory_space<vmem>>, %arg6: memref<16x128xf32, #tpu.memory_space<vmem>>, %arg7: memref<1x128xf32, #tpu.memory_space<vmem>>, %arg8: memref<1x128xf32, #tpu.memory_space<vmem>>, %arg9: memref<16x128xf32, #tpu.memory_space<vmem>>, %arg10: memref<16x128xf32, #tpu.memory_space<vmem>>) attributes {dimension_semantics = [#tpu.dimension_semantics<parallel>, #tpu.dimension_semantics<parallel>, #tpu.dimension_semantics<arbitrary>], iteration_bounds = array<i64: 1, 1, 1>, scalar_prefetch = 0 : i64, scratch_operands = 1 : i64, tpu.core_type = #tpu.core_type<tc>, window_params = [{transform_indices = @transform_0, window_bounds = array<i64: 16, 256>}, {transform_indices = @transform_1, window_bounds = array<i64: 256, 128>}, {transform_indices = @transform_2, window_bounds = array<i64: 1, 128>}, {transform_indices = @transform_3, window_bounds = array<i64: 16, 128>}, {transform_indices = @transform_4, window_bounds = array<i64: 1, 128>}, {transform_indices = @transform_5, window_bounds = array<i64: 1, 128>}, {transform_indices = @transform_6, window_bounds = array<i64: 16, 128>}]} {
    %c0_i32 = arith.constant 0 : i32
    %0 = arith.cmpi eq, %arg2, %c0_i32 : i32
    %1 = arith.extui %0 : i1 to i32
    %c0_i32_0 = arith.constant 0 : i32
    %2 = arith.cmpi ne, %1, %c0_i32_0 : i32
    scf.if %2 {
      %cst_10 = arith.constant 0.000000e+00 : f32
      %12 = vector.broadcast %cst_10 : f32 to vector<16x128xf32>
      %c0_11 = arith.constant 0 : index
      %c0_12 = arith.constant 0 : index
      %13 = vector.load %arg10[%c0_11, %c0_12] : memref<16x128xf32, #tpu.memory_space<vmem>>, vector<16x128xf32>
      tpu.vector_store %arg10[%c0_11, %c0_12], %12 {strides = array<i32>} : memref<16x128xf32, #tpu.memory_space<vmem>>, vector<16x128xf32>,
    } else {
    }
    %c0 = arith.constant 0 : index
    %c0_1 = arith.constant 0 : index
    %3 = vector.load %arg3[%c0, %c0_1] : memref<16x256xbf16, #tpu.memory_space<vmem>>, vector<16x256xbf16>
    %c0_2 = arith.constant 0 : index
    %c0_3 = arith.constant 0 : index
    %4 = vector.load %arg4[%c0_2, %c0_3] : memref<256x128xbf16, #tpu.memory_space<vmem>>, vector<256x128xbf16>
    %c0_4 = arith.constant 0 : index
    %c0_5 = arith.constant 0 : index
    %5 = vector.load %arg10[%c0_4, %c0_5] : memref<16x128xf32, #tpu.memory_space<vmem>>, vector<16x128xf32>
    %cst = arith.constant dense<0.000000e+00> : vector<16x128xf32>
    %6 = tpu.matmul %3, %4, %cst {dimension_numbers = #tpu.dot_dimension_numbers<[1], [0], [0], [1], [0, 0, 1, 1], [], []>} : vector<16x256xbf16>, vector<256x128xbf16>, vector<16x128xf32> -> vector<16x128xf32>
    %7 = arith.addf %5, %6 : vector<16x128xf32>
    %c0_6 = arith.constant 0 : index
    %c0_7 = arith.constant 0 : index
    %8 = vector.load %arg10[%c0_6, %c0_7] : memref<16x128xf32, #tpu.memory_space<vmem>>, vector<16x128xf32>
    tpu.vector_store %arg10[%c0_6, %c0_7], %7 {strides = array<i32>} : memref<16x128xf32, #tpu.memory_space<vmem>>, vector<16x128xf32>,
    %c0_i32_8 = arith.constant 0 : i32
    %9 = arith.cmpi eq, %arg2, %c0_i32_8 : i32
    %10 = arith.extui %9 : i1 to i32
    %c0_i32_9 = arith.constant 0 : i32
    %11 = arith.cmpi ne, %10, %c0_i32_9 : i32
    scf.if %11 {
      %c0_10 = arith.constant 0 : index
      %c0_11 = arith.constant 0 : index
      %12 = vector.load %arg10[%c0_10, %c0_11] : memref<16x128xf32, #tpu.memory_space<vmem>>, vector<16x128xf32>
      %c0_12 = arith.constant 0 : index
      %c0_13 = arith.constant 0 : index
      %13 = vector.load %arg5[%c0_12, %c0_13] : memref<1x128xf32, #tpu.memory_space<vmem>>, vector<1x128xf32>
      %14 = vector.broadcast %13 : vector<1x128xf32> to vector<16x128xf32>
      %15 = arith.addf %12, %14 : vector<16x128xf32>
      %c0_14 = arith.constant 0 : index
      %c0_15 = arith.constant 0 : index
      %16 = vector.load %arg6[%c0_14, %c0_15] : memref<16x128xf32, #tpu.memory_space<vmem>>, vector<16x128xf32>
      %17 = arith.addf %15, %16 : vector<16x128xf32>
      %cst_16 = arith.constant dense<0.000000e+00> : vector<16xf32>
      %18 = vector.multi_reduction <add>, %17, %cst_16 [1] : vector<16x128xf32> to vector<16xf32>
      %19 = vector.shape_cast %18 : vector<16xf32> to vector<16x1xf32>
      %cst_17 = arith.constant 1.280000e+02 : f32
      %20 = vector.broadcast %cst_17 : f32 to vector<16x1xf32>
      %21 = arith.divf %19, %20 : vector<16x1xf32>
      %22 = vector.broadcast %21 : vector<16x1xf32> to vector<16x128xf32>
      %23 = arith.subf %17, %22 : vector<16x128xf32>
      %24 = arith.mulf %23, %23 : vector<16x128xf32>
      %cst_18 = arith.constant dense<0.000000e+00> : vector<16xf32>
      %25 = vector.multi_reduction <add>, %24, %cst_18 [1] : vector<16x128xf32> to vector<16xf32>
      %26 = vector.shape_cast %25 : vector<16xf32> to vector<16x1xf32>
      %cst_19 = arith.constant 1.280000e+02 : f32
      %27 = vector.broadcast %cst_19 : f32 to vector<16x1xf32>
      %28 = arith.divf %26, %27 : vector<16x1xf32>
      %cst_20 = arith.constant 9.99999974E-6 : f32
      %29 = vector.broadcast %cst_20 : f32 to vector<16x1xf32>
      %30 = arith.addf %28, %29 : vector<16x1xf32>
      %31 = math.rsqrt %30 : vector<16x1xf32>
      %32 = vector.broadcast %31 : vector<16x1xf32> to vector<16x128xf32>
      %33 = arith.mulf %23, %32 : vector<16x128xf32>
      %c0_21 = arith.constant 0 : index
      %c0_22 = arith.constant 0 : index
      %34 = vector.load %arg7[%c0_21, %c0_22] : memref<1x128xf32, #tpu.memory_space<vmem>>, vector<1x128xf32>
      %35 = vector.broadcast %34 : vector<1x128xf32> to vector<16x128xf32>
      %36 = arith.mulf %33, %35 : vector<16x128xf32>
      %c0_23 = arith.constant 0 : index
      %c0_24 = arith.constant 0 : index
      %37 = vector.load %arg8[%c0_23, %c0_24] : memref<1x128xf32, #tpu.memory_space<vmem>>, vector<1x128xf32>
      %38 = vector.broadcast %37 : vector<1x128xf32> to vector<16x128xf32>
      %39 = arith.addf %36, %38 : vector<16x128xf32>
      %c0_25 = arith.constant 0 : index
      %c0_26 = arith.constant 0 : index
      %40 = vector.load %arg9[%c0_25, %c0_26] : memref<16x128xf32, #tpu.memory_space<vmem>>, vector<16x128xf32>
      tpu.vector_store %arg9[%c0_25, %c0_26], %39 {strides = array<i32>} : memref<16x128xf32, #tpu.memory_space<vmem>>, vector<16x128xf32>,
    } else {
    }
    return
  }
  func.func @transform_0(%arg0: i32, %arg1: i32, %arg2: i32) -> (i32, i32) {
    %c0_i32 = arith.constant 0 : i32
    return %arg0, %arg2 : i32, i32
  }
  func.func @transform_1(%arg0: i32, %arg1: i32, %arg2: i32) -> (i32, i32) {
    %c0_i32 = arith.constant 0 : i32
    return %arg2, %arg1 : i32, i32
  }
  func.func @transform_2(%arg0: i32, %arg1: i32, %arg2: i32) -> (i32, i32) {
    %c0_i32 = arith.constant 0 : i32
    %c0_i32_0 = arith.constant 0 : i32
    return %c0_i32, %arg1 : i32, i32
  }
  func.func @transform_3(%arg0: i32, %arg1: i32, %arg2: i32) -> (i32, i32) {
    %c0_i32 = arith.constant 0 : i32
    return %arg0, %arg1 : i32, i32
  }
  func.func @transform_4(%arg0: i32, %arg1: i32, %arg2: i32) -> (i32, i32) {
    %c0_i32 = arith.constant 0 : i32
    %c0_i32_0 = arith.constant 0 : i32
    return %c0_i32, %arg1 : i32, i32
  }
  func.func @transform_5(%arg0: i32, %arg1: i32, %arg2: i32) -> (i32, i32) {
    %c0_i32 = arith.constant 0 : i32
    %c0_i32_0 = arith.constant 0 : i32
    return %c0_i32, %arg1 : i32, i32
  }
  func.func @transform_6(%arg0: i32, %arg1: i32, %arg2: i32) -> (i32, i32) {
    %c0_i32 = arith.constant 0 : i32
    return %arg0, %arg1 : i32, i32
  }
}

module attributes {stable_mosaic.version = 11 : i64} {
  func.func @_ecs_kernel(%arg0: memref<2x128xf32, #tpu.memory_space<vmem>>, %arg1: memref<1x1xf32, #tpu.memory_space<vmem>>) attributes {dimension_semantics = [], scalar_prefetch = 0 : i64, scratch_operands = 0 : i64, tpu.core_type = #tpu.core_type<tc>} {
    %c0 = arith.constant 0 : index
    %c0_0 = arith.constant 0 : index
    %0 = vector.load %arg0[%c0, %c0_0] : memref<2x128xf32, #tpu.memory_space<vmem>>, vector<2x128xf32>
    %1 = arith.mulf %0, %0 : vector<2x128xf32>
    %cst = arith.constant dense<0.000000e+00> : vector<2xf32>
    %2 = vector.multi_reduction <add>, %1, %cst [1] : vector<2x128xf32> to vector<2xf32>
    %3 = vector.shape_cast %2 : vector<2xf32> to vector<2x1xf32>
    %4 = math.sqrt %3 : vector<2x1xf32>
    %cst_1 = arith.constant 9.99999996E-13 : f32
    %5 = vector.broadcast %cst_1 : f32 to vector<2x1xf32>
    %6 = arith.maximumf %4, %5 : vector<2x1xf32>
    %7 = vector.broadcast %6 : vector<2x1xf32> to vector<2x128xf32>
    %8 = arith.divf %0, %7 : vector<2x128xf32>
    %cst_2 = arith.constant dense<0.000000e+00> : vector<2x2xf32>
    %9 = tpu.matmul %8, %8, %cst_2 {dimension_numbers = #tpu.dot_dimension_numbers<[1], [1], [0], [0], [0, 0, 1, 0], [], []>} : vector<2x128xf32>, vector<2x128xf32>, vector<2x2xf32> -> vector<2x2xf32>
    %10 = tpu.iota {dimensions = array<i32: 0>} : vector<2x2xi32>
    %11 = tpu.iota {dimensions = array<i32: 1>} : vector<2x2xi32>
    %12 = arith.cmpi eq, %10, %11 : vector<2x2xi32>
    %cst_3 = arith.constant 0.000000e+00 : f32
    %13 = vector.broadcast %cst_3 : f32 to vector<2x2xf32>
    %14 = arith.select %12, %13, %9 : vector<2x2xi1>, vector<2x2xf32>
    %cst_4 = arith.constant 0.000000e+00 : f32
    %15 = vector.broadcast %cst_4 : f32 to vector<2x2xf32>
    %16 = arith.maximumf %14, %15 : vector<2x2xf32>
    %cst_5 = arith.constant 3.000000e-01 : f32
    %17 = vector.broadcast %cst_5 : f32 to vector<2x2xf32>
    %18 = arith.subf %16, %17 : vector<2x2xf32>
    %19 = arith.mulf %18, %18 : vector<2x2xf32>
    %cst_6 = arith.constant 1.000000e+00 : f32
    %20 = vector.broadcast %cst_6 : f32 to vector<2x2xf32>
    %21 = arith.subf %20, %19 : vector<2x2xf32>
    %cst_7 = arith.constant dense<0.000000e+00> : vector<2xf32>
    %22 = vector.multi_reduction <add>, %21, %cst_7 [1] : vector<2x2xf32> to vector<2xf32>
    %23 = vector.shape_cast %22 : vector<2xf32> to vector<2x1xf32>
    %cst_8 = arith.constant dense<0.000000e+00> : vector<1xf32>
    %24 = vector.multi_reduction <add>, %23, %cst_8 [0] : vector<2x1xf32> to vector<1xf32>
    %25 = vector.shape_cast %24 : vector<1xf32> to vector<1x1xf32>
    %cst_9 = arith.constant 4.000000e+00 : f32
    %26 = vector.broadcast %cst_9 : f32 to vector<1x1xf32>
    %27 = arith.divf %25, %26 : vector<1x1xf32>
    %c0_10 = arith.constant 0 : index
    %c0_11 = arith.constant 0 : index
    %28 = vector.load %arg1[%c0_10, %c0_11] : memref<1x1xf32, #tpu.memory_space<vmem>>, vector<1x1xf32>
    tpu.vector_store %arg1[%c0_10, %c0_11], %27 {strides = array<i32>} : memref<1x1xf32, #tpu.memory_space<vmem>>, vector<1x1xf32>,
    return
  }
}

module attributes {stable_mosaic.version = 11 : i64} {
  func.func @_fused_linear_kernel(%arg0: i32, %arg1: i32, %arg2: i32, %arg3: memref<2x128xf32, #tpu.memory_space<vmem>>, %arg4: memref<128x128xbf16, #tpu.memory_space<vmem>>, %arg5: memref<1x128xf32, #tpu.memory_space<vmem>>, %arg6: memref<1x128xf32, #tpu.memory_space<vmem>>, %arg7: memref<1x128xf32, #tpu.memory_space<vmem>>, %arg8: memref<2x128xf32, #tpu.memory_space<vmem>>, %arg9: memref<2x128xf32, #tpu.memory_space<vmem>>) attributes {dimension_semantics = [#tpu.dimension_semantics<parallel>, #tpu.dimension_semantics<parallel>, #tpu.dimension_semantics<arbitrary>], iteration_bounds = array<i64: 1, 1, 1>, scalar_prefetch = 0 : i64, scratch_operands = 1 : i64, tpu.core_type = #tpu.core_type<tc>, window_params = [{transform_indices = @transform_0, window_bounds = array<i64: 2, 128>}, {transform_indices = @transform_1, window_bounds = array<i64: 128, 128>}, {transform_indices = @transform_2, window_bounds = array<i64: 1, 128>}, {transform_indices = @transform_3, window_bounds = array<i64: 1, 128>}, {transform_indices = @transform_4, window_bounds = array<i64: 1, 128>}, {transform_indices = @transform_5, window_bounds = array<i64: 2, 128>}]} {
    %c0_i32 = arith.constant 0 : i32
    %0 = arith.cmpi eq, %arg2, %c0_i32 : i32
    %1 = arith.extui %0 : i1 to i32
    %c0_i32_0 = arith.constant 0 : i32
    %2 = arith.cmpi ne, %1, %c0_i32_0 : i32
    scf.if %2 {
      %cst_10 = arith.constant 0.000000e+00 : f32
      %13 = vector.broadcast %cst_10 : f32 to vector<2x128xf32>
      %c0_11 = arith.constant 0 : index
      %c0_12 = arith.constant 0 : index
      %14 = vector.load %arg9[%c0_11, %c0_12] : memref<2x128xf32, #tpu.memory_space<vmem>>, vector<2x128xf32>
      tpu.vector_store %arg9[%c0_11, %c0_12], %13 {strides = array<i32>} : memref<2x128xf32, #tpu.memory_space<vmem>>, vector<2x128xf32>,
    } else {
    }
    %c0 = arith.constant 0 : index
    %c0_1 = arith.constant 0 : index
    %3 = vector.load %arg3[%c0, %c0_1] : memref<2x128xf32, #tpu.memory_space<vmem>>, vector<2x128xf32>
    %4 = arith.truncf %3 : vector<2x128xf32> to vector<2x128xbf16>
    %c0_2 = arith.constant 0 : index
    %c0_3 = arith.constant 0 : index
    %5 = vector.load %arg4[%c0_2, %c0_3] : memref<128x128xbf16, #tpu.memory_space<vmem>>, vector<128x128xbf16>
    %c0_4 = arith.constant 0 : index
    %c0_5 = arith.constant 0 : index
    %6 = vector.load %arg9[%c0_4, %c0_5] : memref<2x128xf32, #tpu.memory_space<vmem>>, vector<2x128xf32>
    %cst = arith.constant dense<0.000000e+00> : vector<2x128xf32>
    %7 = tpu.matmul %4, %5, %cst {dimension_numbers = #tpu.dot_dimension_numbers<[1], [0], [0], [1], [0, 0, 1, 1], [], []>} : vector<2x128xbf16>, vector<128x128xbf16>, vector<2x128xf32> -> vector<2x128xf32>
    %8 = arith.addf %6, %7 : vector<2x128xf32>
    %c0_6 = arith.constant 0 : index
    %c0_7 = arith.constant 0 : index
    %9 = vector.load %arg9[%c0_6, %c0_7] : memref<2x128xf32, #tpu.memory_space<vmem>>, vector<2x128xf32>
    tpu.vector_store %arg9[%c0_6, %c0_7], %8 {strides = array<i32>} : memref<2x128xf32, #tpu.memory_space<vmem>>, vector<2x128xf32>,
    %c0_i32_8 = arith.constant 0 : i32
    %10 = arith.cmpi eq, %arg2, %c0_i32_8 : i32
    %11 = arith.extui %10 : i1 to i32
    %c0_i32_9 = arith.constant 0 : i32
    %12 = arith.cmpi ne, %11, %c0_i32_9 : i32
    scf.if %12 {
      %c0_10 = arith.constant 0 : index
      %c0_11 = arith.constant 0 : index
      %13 = vector.load %arg9[%c0_10, %c0_11] : memref<2x128xf32, #tpu.memory_space<vmem>>, vector<2x128xf32>
      %c0_12 = arith.constant 0 : index
      %c0_13 = arith.constant 0 : index
      %14 = vector.load %arg5[%c0_12, %c0_13] : memref<1x128xf32, #tpu.memory_space<vmem>>, vector<1x128xf32>
      %15 = vector.broadcast %14 : vector<1x128xf32> to vector<2x128xf32>
      %16 = arith.addf %13, %15 : vector<2x128xf32>
      %cst_14 = arith.constant 0.000000e+00 : f32
      %17 = vector.broadcast %cst_14 : f32 to vector<2x128xf32>
      %18 = arith.maximumf %16, %17 : vector<2x128xf32>
      %cst_15 = arith.constant dense<0.000000e+00> : vector<2xf32>
      %19 = vector.multi_reduction <add>, %18, %cst_15 [1] : vector<2x128xf32> to vector<2xf32>
      %20 = vector.shape_cast %19 : vector<2xf32> to vector<2x1xf32>
      %cst_16 = arith.constant 1.280000e+02 : f32
      %21 = vector.broadcast %cst_16 : f32 to vector<2x1xf32>
      %22 = arith.divf %20, %21 : vector<2x1xf32>
      %23 = vector.broadcast %22 : vector<2x1xf32> to vector<2x128xf32>
      %24 = arith.subf %18, %23 : vector<2x128xf32>
      %25 = arith.mulf %24, %24 : vector<2x128xf32>
      %cst_17 = arith.constant dense<0.000000e+00> : vector<2xf32>
      %26 = vector.multi_reduction <add>, %25, %cst_17 [1] : vector<2x128xf32> to vector<2xf32>
      %27 = vector.shape_cast %26 : vector<2xf32> to vector<2x1xf32>
      %cst_18 = arith.constant 1.280000e+02 : f32
      %28 = vector.broadcast %cst_18 : f32 to vector<2x1xf32>
      %29 = arith.divf %27, %28 : vector<2x1xf32>
      %cst_19 = arith.constant 9.99999974E-6 : f32
      %30 = vector.broadcast %cst_19 : f32 to vector<2x1xf32>
      %31 = arith.addf %29, %30 : vector<2x1xf32>
      %32 = math.rsqrt %31 : vector<2x1xf32>
      %33 = vector.broadcast %32 : vector<2x1xf32> to vector<2x128xf32>
      %34 = arith.mulf %24, %33 : vector<2x128xf32>
      %c0_20 = arith.constant 0 : index
      %c0_21 = arith.constant 0 : index
      %35 = vector.load %arg6[%c0_20, %c0_21] : memref<1x128xf32, #tpu.memory_space<vmem>>, vector<1x128xf32>
      %36 = vector.broadcast %35 : vector<1x128xf32> to vector<2x128xf32>
      %37 = arith.mulf %34, %36 : vector<2x128xf32>
      %c0_22 = arith.constant 0 : index
      %c0_23 = arith.constant 0 : index
      %38 = vector.load %arg7[%c0_22, %c0_23] : memref<1x128xf32, #tpu.memory_space<vmem>>, vector<1x128xf32>
      %39 = vector.broadcast %38 : vector<1x128xf32> to vector<2x128xf32>
      %40 = arith.addf %37, %39 : vector<2x128xf32>
      %c0_24 = arith.constant 0 : index
      %c0_25 = arith.constant 0 : index
      %41 = vector.load %arg8[%c0_24, %c0_25] : memref<2x128xf32, #tpu.memory_space<vmem>>, vector<2x128xf32>
      tpu.vector_store %arg8[%c0_24, %c0_25], %40 {strides = array<i32>} : memref<2x128xf32, #tpu.memory_space<vmem>>, vector<2x128xf32>,
    } else {
    }
    return
  }
  func.func @transform_0(%arg0: i32, %arg1: i32, %arg2: i32) -> (i32, i32) {
    %c0_i32 = arith.constant 0 : i32
    return %arg0, %arg2 : i32, i32
  }
  func.func @transform_1(%arg0: i32, %arg1: i32, %arg2: i32) -> (i32, i32) {
    %c0_i32 = arith.constant 0 : i32
    return %arg2, %arg1 : i32, i32
  }
  func.func @transform_2(%arg0: i32, %arg1: i32, %arg2: i32) -> (i32, i32) {
    %c0_i32 = arith.constant 0 : i32
    %c0_i32_0 = arith.constant 0 : i32
    return %c0_i32, %arg1 : i32, i32
  }
  func.func @transform_3(%arg0: i32, %arg1: i32, %arg2: i32) -> (i32, i32) {
    %c0_i32 = arith.constant 0 : i32
    %c0_i32_0 = arith.constant 0 : i32
    return %c0_i32, %arg1 : i32, i32
  }
  func.func @transform_4(%arg0: i32, %arg1: i32, %arg2: i32) -> (i32, i32) {
    %c0_i32 = arith.constant 0 : i32
    %c0_i32_0 = arith.constant 0 : i32
    return %c0_i32, %arg1 : i32, i32
  }
  func.func @transform_5(%arg0: i32, %arg1: i32, %arg2: i32) -> (i32, i32) {
    %c0_i32 = arith.constant 0 : i32
    return %arg0, %arg1 : i32, i32
  }
}

module attributes {stable_mosaic.version = 11 : i64} {
  func.func @_expr_decoder_kernel(%arg0: i32, %arg1: memref<16x128xf32, #tpu.memory_space<vmem>>, %arg2: memref<128x128xbf16, #tpu.memory_space<vmem>>, %arg3: memref<1x128xf32, #tpu.memory_space<vmem>>, %arg4: memref<128x128xbf16, #tpu.memory_space<vmem>>, %arg5: memref<1x128xf32, #tpu.memory_space<vmem>>, %arg6: memref<1x128xf32, #tpu.memory_space<vmem>>, %arg7: memref<1x1xf32, #tpu.memory_space<vmem>>, %arg8: memref<16x1xf32, #tpu.memory_space<vmem>>) attributes {dimension_semantics = [#tpu.dimension_semantics<parallel>], iteration_bounds = array<i64: 1>, scalar_prefetch = 0 : i64, scratch_operands = 0 : i64, tpu.core_type = #tpu.core_type<tc>, window_params = [{transform_indices = @transform_0, window_bounds = array<i64: 16, 128>}, {pipeline_mode = #tpu.pipeline_mode<synchronous>, transform_indices = @transform_1, window_bounds = array<i64: 128, 128>}, {pipeline_mode = #tpu.pipeline_mode<synchronous>, transform_indices = @transform_2, window_bounds = array<i64: 1, 128>}, {pipeline_mode = #tpu.pipeline_mode<synchronous>, transform_indices = @transform_3, window_bounds = array<i64: 128, 128>}, {pipeline_mode = #tpu.pipeline_mode<synchronous>, transform_indices = @transform_4, window_bounds = array<i64: 1, 128>}, {pipeline_mode = #tpu.pipeline_mode<synchronous>, transform_indices = @transform_5, window_bounds = array<i64: 1, 128>}, {pipeline_mode = #tpu.pipeline_mode<synchronous>, transform_indices = @transform_6, window_bounds = array<i64: 1, 1>}, {transform_indices = @transform_7, window_bounds = array<i64: 16, 1>}]} {
    %c0 = arith.constant 0 : index
    %c0_0 = arith.constant 0 : index
    %0 = vector.load %arg1[%c0, %c0_0] : memref<16x128xf32, #tpu.memory_space<vmem>>, vector<16x128xf32>
    %c0_1 = arith.constant 0 : index
    %c0_2 = arith.constant 0 : index
    %1 = vector.load %arg2[%c0_1, %c0_2] : memref<128x128xbf16, #tpu.memory_space<vmem>>, vector<128x128xbf16>
    %2 = arith.truncf %0 : vector<16x128xf32> to vector<16x128xbf16>
    %cst = arith.constant dense<0.000000e+00> : vector<16x128xf32>
    %3 = tpu.matmul %2, %1, %cst {dimension_numbers = #tpu.dot_dimension_numbers<[1], [0], [0], [1], [0, 0, 1, 1], [], []>} : vector<16x128xbf16>, vector<128x128xbf16>, vector<16x128xf32> -> vector<16x128xf32>
    %c0_3 = arith.constant 0 : index
    %c0_4 = arith.constant 0 : index
    %4 = vector.load %arg3[%c0_3, %c0_4] : memref<1x128xf32, #tpu.memory_space<vmem>>, vector<1x128xf32>
    %5 = vector.broadcast %4 : vector<1x128xf32> to vector<16x128xf32>
    %6 = arith.addf %3, %5 : vector<16x128xf32>
    %cst_5 = arith.constant 0.000000e+00 : f32
    %7 = vector.broadcast %cst_5 : f32 to vector<16x128xf32>
    %8 = arith.cmpf oge, %6, %7 : vector<16x128xf32>
    %cst_6 = arith.constant 0.00999999977 : f32
    %9 = vector.broadcast %cst_6 : f32 to vector<16x128xf32>
    %10 = arith.mulf %9, %6 : vector<16x128xf32>
    %11 = arith.select %8, %6, %10 : vector<16x128xi1>, vector<16x128xf32>
    %c0_7 = arith.constant 0 : index
    %c0_8 = arith.constant 0 : index
    %12 = vector.load %arg4[%c0_7, %c0_8] : memref<128x128xbf16, #tpu.memory_space<vmem>>, vector<128x128xbf16>
    %13 = arith.truncf %11 : vector<16x128xf32> to vector<16x128xbf16>
    %cst_9 = arith.constant dense<0.000000e+00> : vector<16x128xf32>
    %14 = tpu.matmul %13, %12, %cst_9 {dimension_numbers = #tpu.dot_dimension_numbers<[1], [0], [0], [1], [0, 0, 1, 1], [], []>} : vector<16x128xbf16>, vector<128x128xbf16>, vector<16x128xf32> -> vector<16x128xf32>
    %c0_10 = arith.constant 0 : index
    %c0_11 = arith.constant 0 : index
    %15 = vector.load %arg5[%c0_10, %c0_11] : memref<1x128xf32, #tpu.memory_space<vmem>>, vector<1x128xf32>
    %16 = vector.broadcast %15 : vector<1x128xf32> to vector<16x128xf32>
    %17 = arith.addf %14, %16 : vector<16x128xf32>
    %cst_12 = arith.constant 0.000000e+00 : f32
    %18 = vector.broadcast %cst_12 : f32 to vector<16x128xf32>
    %19 = arith.cmpf oge, %17, %18 : vector<16x128xf32>
    %cst_13 = arith.constant 0.00999999977 : f32
    %20 = vector.broadcast %cst_13 : f32 to vector<16x128xf32>
    %21 = arith.mulf %20, %17 : vector<16x128xf32>
    %22 = arith.select %19, %17, %21 : vector<16x128xi1>, vector<16x128xf32>
    %c0_14 = arith.constant 0 : index
    %c0_15 = arith.constant 0 : index
    %23 = vector.load %arg6[%c0_14, %c0_15] : memref<1x128xf32, #tpu.memory_space<vmem>>, vector<1x128xf32>
    %24 = vector.broadcast %23 : vector<1x128xf32> to vector<16x128xf32>
    %25 = arith.mulf %22, %24 : vector<16x128xf32>
    %cst_16 = arith.constant dense<0.000000e+00> : vector<16xf32>
    %26 = vector.multi_reduction <add>, %25, %cst_16 [1] : vector<16x128xf32> to vector<16xf32>
    %27 = vector.shape_cast %26 : vector<16xf32> to vector<16x1xf32>
    %c0_17 = arith.constant 0 : index
    %c0_18 = arith.constant 0 : index
    %28 = vector.load %arg7[%c0_17, %c0_18] : memref<1x1xf32, #tpu.memory_space<vmem>>, vector<1x1xf32>
    %29 = vector.broadcast %28 : vector<1x1xf32> to vector<16x1xf32>
    %30 = arith.addf %27, %29 : vector<16x1xf32>
    %c0_19 = arith.constant 0 : index
    %c0_20 = arith.constant 0 : index
    %31 = vector.load %arg8[%c0_19, %c0_20] : memref<16x1xf32, #tpu.memory_space<vmem>>, vector<16x1xf32>
    tpu.vector_store %arg8[%c0_19, %c0_20], %30 {strides = array<i32>} : memref<16x1xf32, #tpu.memory_space<vmem>>, vector<16x1xf32>,
    return
  }
  func.func @transform_0(%arg0: i32) -> (i32, i32) {
    %c0_i32 = arith.constant 0 : i32
    %c0_i32_0 = arith.constant 0 : i32
    return %arg0, %c0_i32 : i32, i32
  }
  func.func @transform_1(%arg0: i32) -> (i32, i32) {
    %c0_i32 = arith.constant 0 : i32
    %c0_i32_0 = arith.constant 0 : i32
    %c0_i32_1 = arith.constant 0 : i32
    return %c0_i32, %c0_i32_0 : i32, i32
  }
  func.func @transform_2(%arg0: i32) -> (i32, i32) {
    %c0_i32 = arith.constant 0 : i32
    %c0_i32_0 = arith.constant 0 : i32
    %c0_i32_1 = arith.constant 0 : i32
    return %c0_i32, %c0_i32_0 : i32, i32
  }
  func.func @transform_3(%arg0: i32) -> (i32, i32) {
    %c0_i32 = arith.constant 0 : i32
    %c0_i32_0 = arith.constant 0 : i32
    %c0_i32_1 = arith.constant 0 : i32
    return %c0_i32, %c0_i32_0 : i32, i32
  }
  func.func @transform_4(%arg0: i32) -> (i32, i32) {
    %c0_i32 = arith.constant 0 : i32
    %c0_i32_0 = arith.constant 0 : i32
    %c0_i32_1 = arith.constant 0 : i32
    return %c0_i32, %c0_i32_0 : i32, i32
  }
  func.func @transform_5(%arg0: i32) -> (i32, i32) {
    %c0_i32 = arith.constant 0 : i32
    %c0_i32_0 = arith.constant 0 : i32
    %c0_i32_1 = arith.constant 0 : i32
    return %c0_i32, %c0_i32_0 : i32, i32
  }
  func.func @transform_6(%arg0: i32) -> (i32, i32) {
    %c0_i32 = arith.constant 0 : i32
    %c0_i32_0 = arith.constant 0 : i32
    %c0_i32_1 = arith.constant 0 : i32
    return %c0_i32, %c0_i32_0 : i32, i32
  }
  func.func @transform_7(%arg0: i32) -> (i32, i32) {
    %c0_i32 = arith.constant 0 : i32
    %c0_i32_0 = arith.constant 0 : i32
    return %arg0, %c0_i32 : i32, i32
  }
}

module attributes {stable_mosaic.version = 11 : i64} {
  func.func @_fused_linear_kernel(%arg0: i32, %arg1: i32, %arg2: i32, %arg3: memref<2x128xf32, #tpu.memory_space<vmem>>, %arg4: memref<128x5xbf16, #tpu.memory_space<vmem>>, %arg5: memref<1x5xf32, #tpu.memory_space<vmem>>, %arg6: memref<2x5xf32, #tpu.memory_space<vmem>>, %arg7: memref<2x5xf32, #tpu.memory_space<vmem>>) attributes {dimension_semantics = [#tpu.dimension_semantics<parallel>, #tpu.dimension_semantics<parallel>, #tpu.dimension_semantics<arbitrary>], iteration_bounds = array<i64: 1, 1, 1>, scalar_prefetch = 0 : i64, scratch_operands = 1 : i64, tpu.core_type = #tpu.core_type<tc>, window_params = [{transform_indices = @transform_0, window_bounds = array<i64: 2, 128>}, {transform_indices = @transform_1, window_bounds = array<i64: 128, 5>}, {transform_indices = @transform_2, window_bounds = array<i64: 1, 5>}, {transform_indices = @transform_3, window_bounds = array<i64: 2, 5>}]} {
    %c0_i32 = arith.constant 0 : i32
    %0 = arith.cmpi eq, %arg2, %c0_i32 : i32
    %1 = arith.extui %0 : i1 to i32
    %c0_i32_0 = arith.constant 0 : i32
    %2 = arith.cmpi ne, %1, %c0_i32_0 : i32
    scf.if %2 {
      %cst_10 = arith.constant 0.000000e+00 : f32
      %13 = vector.broadcast %cst_10 : f32 to vector<2x5xf32>
      %c0_11 = arith.constant 0 : index
      %c0_12 = arith.constant 0 : index
      %14 = vector.load %arg7[%c0_11, %c0_12] : memref<2x5xf32, #tpu.memory_space<vmem>>, vector<2x5xf32>
      tpu.vector_store %arg7[%c0_11, %c0_12], %13 {strides = array<i32>} : memref<2x5xf32, #tpu.memory_space<vmem>>, vector<2x5xf32>,
    } else {
    }
    %c0 = arith.constant 0 : index
    %c0_1 = arith.constant 0 : index
    %3 = vector.load %arg3[%c0, %c0_1] : memref<2x128xf32, #tpu.memory_space<vmem>>, vector<2x128xf32>
    %4 = arith.truncf %3 : vector<2x128xf32> to vector<2x128xbf16>
    %c0_2 = arith.constant 0 : index
    %c0_3 = arith.constant 0 : index
    %5 = vector.load %arg4[%c0_2, %c0_3] : memref<128x5xbf16, #tpu.memory_space<vmem>>, vector<128x5xbf16>
    %c0_4 = arith.constant 0 : index
    %c0_5 = arith.constant 0 : index
    %6 = vector.load %arg7[%c0_4, %c0_5] : memref<2x5xf32, #tpu.memory_space<vmem>>, vector<2x5xf32>
    %cst = arith.constant dense<0.000000e+00> : vector<2x5xf32>
    %7 = tpu.matmul %4, %5, %cst {dimension_numbers = #tpu.dot_dimension_numbers<[1], [0], [0], [1], [0, 0, 1, 1], [], []>} : vector<2x128xbf16>, vector<128x5xbf16>, vector<2x5xf32> -> vector<2x5xf32>
    %8 = arith.addf %6, %7 : vector<2x5xf32>
    %c0_6 = arith.constant 0 : index
    %c0_7 = arith.constant 0 : index
    %9 = vector.load %arg7[%c0_6, %c0_7] : memref<2x5xf32, #tpu.memory_space<vmem>>, vector<2x5xf32>
    tpu.vector_store %arg7[%c0_6, %c0_7], %8 {strides = array<i32>} : memref<2x5xf32, #tpu.memory_space<vmem>>, vector<2x5xf32>,
    %c0_i32_8 = arith.constant 0 : i32
    %10 = arith.cmpi eq, %arg2, %c0_i32_8 : i32
    %11 = arith.extui %10 : i1 to i32
    %c0_i32_9 = arith.constant 0 : i32
    %12 = arith.cmpi ne, %11, %c0_i32_9 : i32
    scf.if %12 {
      %c0_10 = arith.constant 0 : index
      %c0_11 = arith.constant 0 : index
      %13 = vector.load %arg7[%c0_10, %c0_11] : memref<2x5xf32, #tpu.memory_space<vmem>>, vector<2x5xf32>
      %c0_12 = arith.constant 0 : index
      %c0_13 = arith.constant 0 : index
      %14 = vector.load %arg5[%c0_12, %c0_13] : memref<1x5xf32, #tpu.memory_space<vmem>>, vector<1x5xf32>
      %15 = vector.broadcast %14 : vector<1x5xf32> to vector<2x5xf32>
      %16 = arith.addf %13, %15 : vector<2x5xf32>
      %c0_14 = arith.constant 0 : index
      %c0_15 = arith.constant 0 : index
      %17 = vector.load %arg6[%c0_14, %c0_15] : memref<2x5xf32, #tpu.memory_space<vmem>>, vector<2x5xf32>
      tpu.vector_store %arg6[%c0_14, %c0_15], %16 {strides = array<i32>} : memref<2x5xf32, #tpu.memory_space<vmem>>, vector<2x5xf32>,
    } else {
    }
    return
  }
  func.func @transform_0(%arg0: i32, %arg1: i32, %arg2: i32) -> (i32, i32) {
    %c0_i32 = arith.constant 0 : i32
    return %arg0, %arg2 : i32, i32
  }
  func.func @transform_1(%arg0: i32, %arg1: i32, %arg2: i32) -> (i32, i32) {
    %c0_i32 = arith.constant 0 : i32
    return %arg2, %arg1 : i32, i32
  }
  func.func @transform_2(%arg0: i32, %arg1: i32, %arg2: i32) -> (i32, i32) {
    %c0_i32 = arith.constant 0 : i32
    %c0_i32_0 = arith.constant 0 : i32
    return %c0_i32, %arg1 : i32, i32
  }
  func.func @transform_3(%arg0: i32, %arg1: i32, %arg2: i32) -> (i32, i32) {
    %c0_i32 = arith.constant 0 : i32
    return %arg0, %arg1 : i32, i32
  }
}

</mosaic_0001>

<bundles_post_ra>
// kernel: forward.20
= control target key start
LH: loop header
LB: loop body
LE: loop exit
PB: predicated region body
PF: predicated region fallthrough
CT: control target
= control target key end

     0   :  { %s677_s9 = smov 0   ;;  %s679_s10 = smov 0   ;;  %s775_s0 = inlined_call_operand.vmem [shape: f32[2,1,8], index: 0, kind: input, shape index: {}]   ;;  %s776_s1 = inlined_call_operand.vmem [shape: bf16[2,8,384], index: 1, kind: input, shape index: {}]   ;;  %s777_s2 = inlined_call_operand.vmem [shape: bf16[2,8,128], index: 2, kind: output, shape index: {}]  }
   0x1   :  { %s681_s11 = smov 0  }
   0x2 LB: > { %s24_s12 = sadd.s32 1, %s653_s10  ;;  %p565_p0 = scmp.ge.s32.totalorder %s657_s11, 1  ;;  %s657_s11 = sphi %s681_s11, %s12_s11   ;;  %s653_s10 = sphi %s679_s10, %s779_s10   ;;  %s649_s9 = sphi %s677_s9, %s778_s9  }
   0x3   : > { %p26_p1 = scmp.ge.s32.totalorder %s24_s12, 2  ;;  %p134_p2 = scmp.lt.s32.totalorder %s657_s11, 3 }
   0x5   : > { %s781_s12 = smov (%p26_p1, %s24_s12), 0  ;;  %p135_p3 = pnand %p565_p0, %p134_p2 }
   0x6   : > { %p161_p4 = scmp.lt.s32.totalorder (!%p135_p3), %s649_s9, 1  ;;  %s659_s20 = smov (!%p135_p3), 64  }
   0x7   : > { %138 = sbr.rel (%p135_p3) target bundleno = 1086 (0x43e), region = 28  ;;  %s660_s21 = smov (!%p135_p3), 32  }
   0x8   : > { %s661_s22 = smov (!%p135_p3), 96  }
   0xc   : > { %s783_s9 = smov (!%p161_p4, %s649_s9), 1  ;;  %vm187_vm0 = vcmask 261120   ;;  %vm212_vm1 = vcmask 64512   ;;  %vm228_vm2 = vcmask 1043456   ;;  %vm246_vm3 = vcmask 257024  }
   0xd   : > { %s590_s13 = smul.u32 12, %s783_s9  ;;  %s163_s19 = scalar_lea.vmem %s775_s0, %s783_s9  ;;  %vm323_vm4 = vcmask 519424   ;;  %vm400_vm5 = vcmask 781824   ;;  %vm477_vm6 = vcmask 1044224  }
   0xe   : > { %v715_v8 = vld [vmem:[%s163_s19] ss:$0 sm:$0xff]  ;;  %s567_s23 = sshll.u32 %s783_s9, 2 }
   0xf   : > { %s701_s16 = scalar_lea.vmem %s776_s1, %s590_s13  ;;  %s738_s26 = scalar_lea.vmem %s777_s2, %s567_s23 }
  0x10   : > { %v185_v0 = vld [vmem:[%s701_s16 + $0x4] sm:$0xf]  ;;  %v184_v2 = vld [vmem:[%s701_s16] sm:$0xf]  ;;  %v186_v24 = vld [vmem:[%s701_s16 + $0x8] sm:$0xf] }
  0x11   : > { %v192_v1 = vsel %vm187_vm0, %v185_v0, 0  ;;  %v583_v3 = vld [vmem:[%s701_s16] sm:$0xff]   ;;  %v230_v25 = vsel %vm228_vm2, %v186_v24, 0  ;;  %v250_v62 = vld [vmem:[%s701_s16 + $0x8] sm:$0xf] }
  0x12   : > { %201 = vmatpush.bf16.xpose.msra.mxu0 %v192_v1  ;;  %v585_v4 = vunpack.c.h.b16 %v583_v3  ;;  %v584_v6 = vunpack.c.l.b16 %v583_v3  ;;  %239 = vmatpush.bf16.msra.mxu1 %v230_v25  ;;  %v295_v0 = vunpack.c.l.b16 %v250_v62 }
  0x14   : > { %v335_v5 = vpack.c.b16 %v585_v4, %v585_v4  ;;  %v330_v7 = vpack.c.b16 %v584_v6, %v584_v6  ;;  %v327_v6 = vld [vmem:[%s701_s16 + $0x8] sm:$0xf] }
  0x16   : > { %336 = vrot.lane.b32.xlu2 %v335_v5, %s659_s20 }
  0x19   : > { %568 = vmatmul.msk.bf16.vlgmr.msra.gmra.mxu0 %vm187_vm0, %v184_v2  ;;  %v296_v2 = vpack.c.b16 %v295_v0, %v295_v0 }
  0x1e   : > { %413 = vrot.lane.b32.xlu2 %v335_v5, %s660_s21 }
  0x26   : > { %331 = vrot.lane.b32.xlu2 %v330_v7, %s659_s20 }
  0x2e   : > { %408 = vrot.lane.b32.xlu2 %v330_v7, %s660_s21 }
  0x70   : > { %v337_v14 = vpop.permute.xlu2 %336 }
  0x71   : > { %v342_v26 = vsel %vm187_vm0, %v337_v14, 0 }
  0x72   : > { %351 = vmatpush.bf16.xpose.msrb.mxu1 %v342_v26 }
  0x78   : > { %v414_v15 = vpop.permute.xlu2 %413 }
  0x79   : > { %v419_v20 = vsel %vm187_vm0, %v414_v15, 0 }
  0x7a   : > { %428 = vmatpush.bf16.xpose.msrb.mxu0 %v419_v20 }
  0x80   : > { %v332_v19 = vpop.permute.xlu2 %331 }
  0x88   : > { %v409_v23 = vpop.permute.xlu2 %408 }
  0x89   : > { %574 = vmatmul.msk.bf16.vlgmr.msrb.gmra.mxu0 %vm187_vm0, %v409_v23 }
  0x96   : > { %v203_v9 = vpop.f32.mrf.mxu0 }
  0x97   : > { %v207_v10 = vmul.f32 0.17677669, %v203_v9 }
  0x99   : > { %v211_v11 = vadd.f32 %v715_v8, %v207_v10 }
  0x9b   : > { %v213_v12 = vsel %vm212_vm1, %v211_v11, -inf }
  0x9c   : > { %214 = vmax.xlane.f32.xlu0 %v213_v12 }
  0x9e   : > { %v205_v13 = vpop.f32.mrf.mxu0 }
  0xb0   : > { %259 = vrot.lane.b32.xlu0 %v335_v5, %s661_s22 }
 0x106   : > { %v430_v33 = vpop.f32.mrf.mxu0 }
 0x107   : > { %v434_v34 = vmul.f32 0.17677669, %v430_v33 }
 0x109   : > { %v435_v35 = vadd.f32 %v715_v8, %v434_v34 }
 0x10b   : > { %v436_v36 = vsel %vm212_vm1, %v435_v35, -inf }
 0x10e   : > { %v432_v37 = vpop.f32.mrf.mxu0 }
 0x10f   : > { %v215_v16 = vpop.xlane.xlu0 %214 }
 0x110   : > { %v216_v17 = vsub.f32 %v211_v11, %v215_v16 }
 0x112   : > { %v217_v18 = vmul.f32 1.442695, %v216_v17 }
 0x114   : > { %619 = vpow2.f32 %v217_v18 }
 0x11a   : > { %v620_v21 = vpop.eup %619 }
 0x11b   : > { %v219_v22 = vsel %vm212_vm1, %v620_v21, 0.0 }
 0x11c   : > { %220 = vadd.xlane.f32.xlu1 %v219_v22 }
 0x122   : > { %v260_v27 = vpop.permute.xlu0 %259 }
 0x123   : > { %v265_v28 = vsel %vm187_vm0, %v260_v27, 0 }
 0x124   : > { %274 = vmatpush.bf16.xpose.msra.mxu2 %v265_v28 }
 0x135   : > { %254 = vrot.lane.b32.xlu1 %v330_v7, %s661_s22  ;;  %v372_v7 = vunpack.c.l.b16 %v327_v6 }
 0x137   : > { %v373_v9 = vpack.c.b16 %v372_v7, %v372_v7 }
 0x15f   : > { %437 = vmax.xlane.f32.xlu1 %v436_v36 }
 0x18f   : > { %v221_v29 = vpop.xlane.xlu1 %220 }
 0x190   : > { %621 = vrcp.f32 %v221_v29 }
 0x196   : > { %v622_v30 = vpop.eup %621 }
 0x197   : > { %v223_v31 = vmul.f32 %v622_v30, %v620_v21 }
 0x199   : > { %v224_v32 = vpack.c.bf16 %v223_v31, %v223_v31 }
 0x19b   : > { %569 = vmatmul.msk.bf16.vlgmr.msra.gmra.mxu1 %vm212_vm1, %v224_v32 }
 0x1a7   : > { %v255_v38 = vpop.permute.xlu1 %254 }
 0x1a8   : > { %570 = vmatmul.msk.bf16.vlgmr.msra.gmra.mxu2 %vm187_vm0, %v255_v38 }
 0x1ab   : > { %572 = vmatmul.msk.bf16.vlgmr.msrb.gmra.mxu1 %vm187_vm0, %v332_v19 }
 0x1d2   : > { %v438_v54 = vpop.xlane.xlu1 %437 }
 0x1d3   : > { %v439_v58 = vsub.f32 %v435_v35, %v438_v54 }
 0x1d5   : > { %v440_v60 = vmul.f32 1.442695, %v439_v58 }
 0x218   : > { %v241_v39 = vpop.f32.mrf.mxu1 }
 0x219   : > { %v245_v40 = vpack.c.bf16 %v241_v39, %v241_v39 }
 0x21b   : > { %247 = vst.msk [vmem:[%s738_s26] sm:$0xf] %vm246_vm3, %v245_v40 }
 0x220   : > { %v243_v41 = vpop.f32.mrf.mxu1 }
 0x228   : > { %v353_v42 = vpop.f32.mrf.mxu1 }
 0x229   : > { %v357_v43 = vmul.f32 0.17677669, %v353_v42 }
 0x22b   : > { %v276_v44 = vpop.f32.mrf.mxu2  ;;  %v358_v45 = vadd.f32 %v715_v8, %v357_v43 }
 0x22c   : > { %v280_v46 = vmul.f32 0.17677669, %v276_v44 }
 0x22d   : > { %v359_v47 = vsel %vm212_vm1, %v358_v45, -inf }
 0x22e   : > { %360 = vmax.xlane.f32.xlu2 %v359_v47  ;;  %v281_v48 = vadd.f32 %v715_v8, %v280_v46  ;;  %v404_v8 = vld [vmem:[%s701_s16 + $0x8] sm:$0xf] }
 0x22f   : > { %v449_v10 = vunpack.c.l.b16 %v404_v8 }
 0x230   : > { %v355_v49 = vpop.f32.mrf.mxu1  ;;  %v282_v50 = vsel %vm212_vm1, %v281_v48, -inf }
 0x231   : > { %283 = vmax.xlane.f32.xlu0 %v282_v50  ;;  %v450_v11 = vpack.c.b16 %v449_v10, %v449_v10 }
 0x233   : > { %v278_v51 = vpop.f32.mrf.mxu2 }
 0x246   : > { %297 = vrot.lane.b32.xlu2 %v296_v2, %s661_s22 }
 0x2a1   : > { %v361_v52 = vpop.xlane.xlu2 %360 }
 0x2a2   : > { %v362_v53 = vsub.f32 %v358_v45, %v361_v52 }
 0x2a4   : > { %v363_v55 = vmul.f32 1.442695, %v362_v53  ;;  %v284_v56 = vpop.xlane.xlu0 %283 }
 0x2a5   : > { %v285_v57 = vsub.f32 %v281_v48, %v284_v56 }
 0x2a6   : > { %623 = vpow2.f32 %v363_v55 }
 0x2a7   : > { %v286_v59 = vmul.f32 1.442695, %v285_v57 }
 0x2a9   : > { %625 = vpow2.f32 %v286_v59  ;;  %v298_v12 = vpop.permute.xlu2 %297 }
 0x2aa   : > { %627 = vpow2.f32 %v440_v60  ;;  %v303_v13 = vsel %vm228_vm2, %v298_v12, 0 }
 0x2ab   : > { %312 = vmatpush.bf16.msra.mxu3 %v303_v13 }
 0x2ac   : > { %v624_v61 = vpop.eup %623 }
 0x2ad   : > { %v365_v63 = vsel %vm212_vm1, %v624_v61, 0.0 }
 0x2ae   : > { %366 = vadd.xlane.f32.xlu1 %v365_v63 }
 0x2af   : > { %v626_v1 = vpop.eup %625 }
 0x2b0   : > { %v288_v3 = vsel %vm212_vm1, %v626_v1, 0.0  ;;  %v628_v4 = vpop.eup %627 }
 0x2b1   : > { %289 = vadd.xlane.f32.xlu0 %v288_v3  ;;  %v442_v5 = vsel %vm212_vm1, %v628_v4, 0.0 }
 0x2b9   : > { %443 = vadd.xlane.f32.xlu0 %v442_v5 }
 0x2c7   : > { %374 = vrot.lane.b32.xlu1 %v373_v9, %s659_s20 }
 0x2cd   : > { %451 = vrot.lane.b32.xlu0 %v450_v11, %s660_s21 }
 0x321   : > { %v367_v17 = vpop.xlane.xlu1 %366 }
 0x324   : > { %v290_v14 = vpop.xlane.xlu0 %289 }
 0x325   : > { %629 = vrcp.f32 %v290_v14 }
 0x326   : > { %631 = vrcp.f32 %v367_v17 }
 0x32b   : > { %v630_v15 = vpop.eup %629 }
 0x32c   : > { %v292_v16 = vmul.f32 %v630_v15, %v626_v1  ;;  %v444_v19 = vpop.xlane.xlu0 %443  ;;  %v632_v20 = vpop.eup %631 }
 0x32d   : > { %633 = vrcp.f32 %v444_v19  ;;  %v369_v22 = vmul.f32 %v632_v20, %v624_v61 }
 0x32e   : > { %v293_v18 = vpack.c.bf16 %v292_v16, %v292_v16 }
 0x32f   : > { %v370_v26 = vpack.c.bf16 %v369_v22, %v369_v22 }
 0x330   : > { %571 = vmatmul.msk.bf16.vlgmr.msra.gmra.mxu3 %vm212_vm1, %v293_v18 }
 0x333   : > { %v634_v24 = vpop.eup %633 }
 0x334   : > { %v446_v25 = vmul.f32 %v634_v24, %v628_v4 }
 0x336   : > { %v447_v29 = vpack.c.bf16 %v446_v25, %v446_v25 }
 0x339   : > { %v375_v21 = vpop.permute.xlu1 %374 }
 0x33a   : > { %v380_v23 = vsel %vm228_vm2, %v375_v21, 0 }
 0x33b   : > { %389 = vmatpush.bf16.msrb.mxu3 %v380_v23 }
 0x33f   : > { %v452_v27 = vpop.permute.xlu0 %451 }
 0x340   : > { %573 = vmatmul.msk.bf16.vlgmr.msrb.gmra.mxu3 %vm212_vm1, %v370_v26  ;;  %v457_v28 = vsel %vm228_vm2, %v452_v27, 0 }
 0x341   : > { %466 = vmatpush.bf16.msrb.mxu2 %v457_v28 }
 0x344   : > { %575 = vmatmul.msk.bf16.vlgmr.msrb.gmra.mxu2 %vm212_vm1, %v447_v29 }
 0x3b3   : > { %v314_v30 = vpop.f32.mrf.mxu3 }
 0x3b4   : > { %v318_v31 = vpack.c.bf16 %v314_v30, %v314_v30 }
 0x3b6   : > { %320 = vrot.lane.b32.xlu2 %v318_v31, %s660_s21 }
 0x3bb   : > { %v316_v32 = vpop.f32.mrf.mxu3 }
 0x3c3   : > { %v391_v33 = vpop.f32.mrf.mxu3 }
 0x3c4   : > { %v395_v34 = vpack.c.bf16 %v391_v33, %v391_v33 }
 0x3c6   : > { %397 = vrot.lane.b32.xlu2 %v395_v34, %s659_s20 }
 0x3c7   : > { %v468_v35 = vpop.f32.mrf.mxu2 }
 0x3c8   : > { %v472_v36 = vpack.c.bf16 %v468_v35, %v468_v35 }
 0x3ca   : > { %474 = vrot.lane.b32.xlu0 %v472_v36, %s661_s22 }
 0x3cb   : > { %v393_v37 = vpop.f32.mrf.mxu3 }
 0x3cf   : > { %v470_v38 = vpop.f32.mrf.mxu2 }
 0x410   : > { %v321_v39 = vpop.permute.xlu2 %320 }
 0x411   : > { %324 = vst.msk [vmem:[%s738_s26] sm:$0xf] %vm323_vm4, %v321_v39 }
 0x420   : > { %v398_v40 = vpop.permute.xlu2 %397 }
 0x421   : > { %401 = vst.msk [vmem:[%s738_s26] sm:$0xf] %vm400_vm5, %v398_v40 }
 0x43c   : > { %v475_v41 = vpop.permute.xlu0 %474 }
 0x43d   : > { %478 = vst.msk [vmem:[%s738_s26] sm:$0xf] %vm477_vm6, %v475_v41 }
 0x43e PF: > { %s12_s11 = sadd.s32 1, %s657_s11   ;;  %s778_s9 = smov %s653_s10 }
 0x43f   : > { %p9_p5 = scmp.ge.s32.totalorder %s12_s11, 4   ;;  %s779_s10 = smov %s781_s12 }
 0x441   :  { %11 = sbr.rel (!%p9_p5) target bundleno = 2 (0x2), region = 62 }

// kernel: forward.17
= control target key start
LH: loop header
LB: loop body
LE: loop exit
PB: predicated region body
PF: predicated region fallthrough
CT: control target
= control target key end

     0   :  { %v256_v0 = vmov 0   ;;  %v257_v29 = vmov 128.0   ;;  %s349_s0 = inlined_call_operand.vmem [shape: f32[16,1], index: 0, kind: input, shape index: {}]   ;;  %s350_s3 = inlined_call_operand.vmem [shape: bf16[128,128], index: 3, kind: input, shape index: {}]   ;;  %s351_s1 = inlined_call_operand.vmem [shape: f32[1,128], index: 1, kind: input, shape index: {}]   ;;  %s352_s2 = inlined_call_operand.vmem [shape: f32[1,128], index: 2, kind: input, shape index: {}]   ;;  %s353_s4 = inlined_call_operand.vmem [shape: f32[1,128], index: 4, kind: input, shape index: {}]   ;;  %s354_s5 = inlined_call_operand.vmem [shape: f32[1,128], index: 5, kind: input, shape index: {}]   ;;  %s355_s6 = inlined_call_operand.vmem [shape: f32[1,128], index: 6, kind: input, shape index: {}]   ;;  %s356_s7 = inlined_call_operand.vmem [shape: f32[16,128], index: 7, kind: output, shape index: {}]  }
   0x1   :  { %244 = vset.pattern.permute.xlu0 %v256_v0  ;;  %v26_v1 = vld [vmem:[%s349_s0] sm:$0xff]  ;;  %v241_v2 = vld [vmem:[%s350_s3 + $0x38] sm:$0xff]  ;;  %v240_v4 = vld [vmem:[%s350_s3 + $0x30] sm:$0xff]  ;;  %250 = vrcp.f32 %v257_v29 }
   0x2   :  { %v28_v3 = vmin.f32 %v26_v1, 512.0  ;;  %123 = vmatpush.bf16.msra.mxu0 %v241_v2  ;;  %v27_v5 = vld [vmem:[%s349_s0 + $0x8] sm:$0xff]  ;;  %v238_v8 = vld [vmem:[%s350_s3 + $0x20] sm:$0xff]  ;;  %v237_v9 = vld [vmem:[%s350_s3 + $0x18] sm:$0xff] }
   0x3   :  { %v239_v6 = vld [vmem:[%s350_s3 + $0x28] sm:$0xff]  ;;  %v29_v7 = vmin.f32 %v27_v5, 512.0  ;;  %v236_v10 = vld [vmem:[%s350_s3 + $0x10] sm:$0xff]  ;;  %v234_v12 = vld [vmem:[%s350_s3] sm:$0xff] }
   0x4   :  { %33 = vperm.xlu0 %244, %v28_v3   ;;  %v235_v11 = vld [vmem:[%s350_s3 + $0x8] sm:$0xff]  ;;  %v245_v13 = vld [vmem:[%s351_s1] ss:$0 sm:$0xff] }
   0x5   :  { %v246_v14 = vld [vmem:[%s352_s2] ss:$0 sm:$0xff] }
   0x6   :  { %124 = vmatpush.bf16.msra.mxu0 %v240_v4  ;;  %v247_v24 = vld [vmem:[%s353_s4] ss:$0 sm:$0xff] }
   0x7   :  { %v251_v30 = vpop.eup %250  ;;  %v248_v58 = vld [vmem:[%s354_s5] ss:$0 sm:$0xff] }
   0x8   :  { %v142_v31 = vmul.f32 128.0, %v251_v30  ;;  %vm146_vm0 = vweird.f32 %v251_v30  ;;  %v249_v61 = vld [vmem:[%s355_s6] ss:$0 sm:$0xff] }
   0xa   :  { %125 = vmatpush.bf16.msra.mxu0 %v239_v6  ;;  %v143_v32 = vsub.f32 1.0, %v142_v31 }
   0xc   :  { %38 = vperm.xlu0 %244, %v29_v7   ;;  %v144_v33 = vmul.f32 %v251_v30, %v143_v32 }
   0xe   :  { %126 = vmatpush.bf16.msra.mxu0 %v238_v8  ;;  %v145_v34 = vadd.f32 %v251_v30, %v144_v33 }
  0x10   :  { %v147_v35 = vsel %vm146_vm0, %v251_v30, %v145_v34 }
  0x12   :  { %127 = vmatpush.bf16.msra.mxu0 %v237_v9 }
  0x16   :  { %128 = vmatpush.bf16.msra.mxu0 %v236_v10 }
  0x1a   :  { %129 = vmatpush.bf16.msra.mxu0 %v235_v11 }
  0x1e   :  { %130 = vmatpush.bf16.msra.mxu0 %v234_v12 }
  0x76   :  { %v34_v15 = vpop.permute.xlu0 %33 }
  0x77   :  { %v44_v16 = vmul.f32 %v245_v13, %v34_v15 }
  0x79   :  { %v50_v17 = vadd.f32 %v246_v14, %v44_v16 }
  0x7b   :  { %v52_v21 = vmax.f32 %v50_v17, 0.0 }
  0x7e   :  { %v39_v18 = vpop.permute.xlu0 %38 }
  0x7f   :  { %v45_v19 = vmul.f32 %v245_v13, %v39_v18 }
  0x81   :  { %v51_v20 = vadd.f32 %v246_v14, %v45_v19 }
  0x83   :  { %v53_v22 = vmax.f32 %v51_v20, 0.0 }
  0x85   :  { %v54_v23 = vpack.c.bf16 %v53_v22, %v52_v21 }
  0x87   :  { %131 = vmatmul.bf16.vlgmr.msra.gmra.mxu0 %v54_v23 }
 0x104   :  { %v132_v25 = vpop.f32.mrf.mxu0 }
 0x105   :  { %v133_v26 = vadd.f32 %v247_v24, %v132_v25 }
 0x107   :  { %137 = vadd.xlane.f32.xlu1 %v133_v26 }
 0x10c   :  { %v134_v27 = vpop.f32.mrf.mxu0 }
 0x10d   :  { %v135_v28 = vadd.f32 %v247_v24, %v134_v27 }
 0x10f   :  { %139 = vadd.xlane.f32.xlu1 %v135_v28 }
 0x17a   :  { %v138_v36 = vpop.xlane.xlu1 %137 }
 0x17b   :  { %v148_v37 = vmul.f32 %v147_v35, %v138_v36 }
 0x17d   :  { %v150_v38 = vsub.f32 %v133_v26, %v148_v37 }
 0x17f   :  { %v152_v39 = vmul.f32 %v150_v38, %v150_v38 }
 0x181   :  { %154 = vadd.xlane.f32.xlu2 %v152_v39 }
 0x182   :  { %v140_v40 = vpop.xlane.xlu1 %139 }
 0x183   :  { %v149_v41 = vmul.f32 %v147_v35, %v140_v40 }
 0x185   :  { %v151_v42 = vsub.f32 %v135_v28, %v149_v41 }
 0x187   :  { %v153_v43 = vmul.f32 %v151_v42, %v151_v42 }
 0x189   :  { %156 = vadd.xlane.f32.xlu2 %v153_v43 }
 0x1f4   :  { %v155_v44 = vpop.xlane.xlu2 %154 }
 0x1f5   :  { %v158_v45 = vmul.f32 %v155_v44, %v147_v35 }
 0x1f7   :  { %v160_v46 = vadd.f32 1e-05, %v158_v45 }
 0x1f9   :  { %252 = vrsqrt.f32 %v160_v46  ;;  %vm168_vm2 = vweird.f32 %v160_v46 }
 0x1fc   :  { %v157_v47 = vpop.xlane.xlu2 %156 }
 0x1fd   :  { %v159_v48 = vmul.f32 %v157_v47, %v147_v35 }
 0x1ff   :  { %v253_v49 = vpop.eup %252  ;;  %v161_v50 = vadd.f32 1e-05, %v159_v48 }
 0x200   :  { %v163_v51 = vmul.f32 %v253_v49, %v160_v46  ;;  %vm169_vm1 = vweird.f32 %v253_v49 }
 0x201   :  { %254 = vrsqrt.f32 %v161_v50  ;;  %vm170_vm3 = vmor %vm168_vm2, %vm169_vm1  ;;  %vm178_vm5 = vweird.f32 %v161_v50 }
 0x202   :  { %v164_v52 = vmul.f32 %v253_v49, %v163_v51 }
 0x204   :  { %v165_v53 = vmul.f32 0.5, %v164_v52 }
 0x206   :  { %v166_v54 = vsub.f32 1.5, %v165_v53 }
 0x207   :  { %v255_v55 = vpop.eup %254 }
 0x208   :  { %v167_v56 = vmul.f32 %v253_v49, %v166_v54  ;;  %v173_v57 = vmul.f32 %v255_v55, %v161_v50  ;;  %vm179_vm4 = vweird.f32 %v255_v55 }
 0x209   :  { %vm180_vm6 = vmor %vm178_vm5, %vm179_vm4 }
 0x20a   :  { %v171_v59 = vsel %vm170_vm3, %v253_v49, %v167_v56  ;;  %v174_v60 = vmul.f32 %v255_v55, %v173_v57 }
 0x20b   :  { %v182_v62 = vmul.f32 %v171_v59, %v150_v38 }
 0x20c   :  { %v175_v63 = vmul.f32 0.5, %v174_v60 }
 0x20d   :  { %v188_v0 = vmul.f32 %v248_v58, %v182_v62 }
 0x20e   :  { %v176_v1 = vsub.f32 1.5, %v175_v63 }
 0x20f   :  { %v194_v2 = vadd.f32 %v249_v61, %v188_v0 }
 0x210   :  { %v177_v3 = vmul.f32 %v255_v55, %v176_v1 }
 0x211   :  { %196 = vst [vmem:[%s356_s7] sm:$0xff] %v194_v2 }
 0x212   :  { %v181_v4 = vsel %vm180_vm6, %v255_v55, %v177_v3 }
 0x213   :  { %v183_v5 = vmul.f32 %v181_v4, %v151_v42 }
 0x215   :  { %v189_v6 = vmul.f32 %v248_v58, %v183_v5 }
 0x217   :  { %v195_v7 = vadd.f32 %v249_v61, %v189_v6 }
 0x219   :  { %197 = vst [vmem:[%s356_s7 + $0x8] sm:$0xff] %v195_v7 }

// kernel: forward.18
= control target key start
LH: loop header
LB: loop body
LE: loop exit
PB: predicated region body
PF: predicated region fallthrough
CT: control target
= control target key end

     0   :  { %s868_s21 = smov 0   ;;  %s870_s22 = smov 0   ;;  %s942_s0 = inlined_call_operand.vmem [shape: f32[2,8,128], index: 0, kind: input, shape index: {}]   ;;  %s943_s1 = inlined_call_operand.vmem [shape: f32[1,1,128], index: 1, kind: input, shape index: {}]   ;;  %s944_s2 = inlined_call_operand.vmem [shape: f32[1,1,128], index: 2, kind: input, shape index: {}]   ;;  %s945_s3 = inlined_call_operand.vmem [shape: f32[2,1,128], index: 3, kind: input, shape index: {}]   ;;  %s946_s4 = inlined_call_operand.vmem [shape: f32[1,1,128], index: 4, kind: input, shape index: {}]   ;;  %s947_s5 = inlined_call_operand.vmem [shape: f32[1,1,128], index: 5, kind: input, shape index: {}]   ;;  %s948_s6 = inlined_call_operand.vmem [shape: f32[2,8,128], index: 6, kind: input, shape index: {}]   ;;  %s949_s7 = inlined_call_operand.vmem [shape: f32[2,8,128], index: 7, kind: input, shape index: {}]   ;;  %s950_s8 = inlined_call_operand.vmem [shape: f32[1,1,128], index: 8, kind: input, shape index: {}]   ;;  %s951_s9 = inlined_call_operand.vmem [shape: f32[1,1,128], index: 9, kind: input, shape index: {}]   ;;  %s952_s10 = inlined_call_operand.vmem [shape: f32[1,1,128], index: 10, kind: input, shape index: {}]   ;;  %s953_s11 = inlined_call_operand.vmem [shape: f32[1,1,128], index: 11, kind: input, shape index: {}]   ;;  %s954_s12 = inlined_call_operand.vmem [shape: f32[2,8,128], index: 12, kind: output, shape index: {}]  }
   0x1   :  { %s872_s23 = smov 0  }
   0x2 LB: > { %s34_s24 = sadd.s32 1, %s796_s22  ;;  %p733_p0 = scmp.ge.s32.totalorder %s800_s23, 1  ;;  %s800_s23 = sphi %s872_s23, %s22_s23   ;;  %s796_s22 = sphi %s870_s22, %s956_s22   ;;  %s792_s21 = sphi %s868_s21, %s955_s21  }
   0x3   : > { %p36_p1 = scmp.ge.s32.totalorder %s34_s24, 2  ;;  %p416_p2 = scmp.lt.s32.totalorder %s800_s23, 3 }
   0x5   : > { %s958_s24 = smov (%p36_p1, %s34_s24), 0  ;;  %p417_p3 = pnand %p733_p0, %p416_p2 }
   0x6   : > { %p479_p4 = scmp.lt.s32.totalorder (!%p417_p3), %s792_s21, 1 }
   0x7   : > { %420 = sbr.rel (%p417_p3) target bundleno = 306 (0x132), region = 68 }
   0xc   : > { %s960_s21 = smov (!%p479_p4, %s792_s21), 1  ;;  %vm551_vm0 = vcmask 1040384   ;;  %v802_v3 = vmov 128.0   ;;  %v584_v21 = vld [vmem:[%s953_s11] sm:$0x1] }
   0xd   : > { %s488_s27 = scalar_lea.vmem %s945_s3, %s960_s21  ;;  %s890_s28 = sshll.u32 %s960_s21, 3  ;;  %770 = vrcp.f32 %v802_v3  ;;  %v585_v23 = vadd.f32 6.1e-05, %v584_v21  ;;  %v549_v41 = vld [vmem:[%s946_s4] sm:$0x1] }
   0xe   : > { %v548_v0 = vld [vmem:[%s488_s27] sm:$0x1]  ;;  %s485_s13 = scalar_lea.vmem %s942_s0, %s890_s28  ;;  %s495_s30 = scalar_lea.vmem %s948_s6, %s890_s28 }
   0xf   : > { %v552_v1 = vsel %vm551_vm0, %v548_v0, 0.0  ;;  %v510_v2 = vld [vmem:[%s485_s13] sm:$0xff]  ;;  %vm592_vm8 = vweird.f32 %v585_v23  ;;  %s502_s15 = scalar_lea.vmem %s949_s7, %s890_s28  ;;  %s509_s27 = scalar_lea.vmem %s954_s12, %s890_s28 }
  0x10   : > { %553 = vadd.xlane.f32.xlu0 %v552_v1  ;;  %v550_v46 = vld [vmem:[%s947_s5] sm:$0x1] }
  0x11   : > { %v765_v48 = vld [vmem:[%s943_s1] ss:$0 sm:$0xff] }
  0x12   : > { %v766_v52 = vld [vmem:[%s944_s2] ss:$0 sm:$0xff] }
  0x13   : > { %v771_v4 = vpop.eup %770  ;;  %v580_v58 = vld [vmem:[%s495_s30] sm:$0xff] }
  0x14   : > { %v516_v5 = vmul.f32 128.0, %v771_v4  ;;  %vm520_vm1 = vweird.f32 %v771_v4  ;;  %v582_v60 = vld [vmem:[%s502_s15] sm:$0xff] }
  0x15   : > { %v767_v62 = vld [vmem:[%s952_s10] ss:$0 sm:$0xff] }
  0x16   : > { %v517_v6 = vsub.f32 1.0, %v516_v5 }
  0x18   : > { %513 = vadd.xlane.f32.xlu0 %v510_v2  ;;  %v518_v7 = vmul.f32 %v771_v4, %v517_v6 }
  0x1a   : > { %v519_v8 = vadd.f32 %v771_v4, %v518_v7 }
  0x1c   : > { %v521_v9 = vsel %vm520_vm1, %v771_v4, %v519_v8  ;;  %v769_v4 = vld [vmem:[%s951_s9] ss:$0 sm:$0xff] }
  0x83   : > { %v554_v10 = vpop.xlane.xlu0 %553 }
  0x84   : > { %v555_v11 = vmul.f32 %v554_v10, %v521_v9 }
  0x86   : > { %v556_v12 = vsub.f32 %v548_v0, %v555_v11 }
  0x88   : > { %v557_v13 = vmul.f32 %v556_v12, %v556_v12 }
  0x8a   : > { %v558_v14 = vsel %vm551_vm0, %v557_v13, 0.0 }
  0x8b   : > { %559 = vadd.xlane.f32.xlu1 %v558_v14  ;;  %v514_v15 = vpop.xlane.xlu0 %513 }
  0x8c   : > { %v522_v16 = vmul.f32 %v521_v9, %v514_v15 }
  0x8e   : > { %v523_v17 = vsub.f32 %v510_v2, %v522_v16  ;;  %v768_v2 = vld [vmem:[%s950_s8] ss:$0 sm:$0xff] }
  0x90   : > { %v524_v18 = vmul.f32 %v523_v17, %v523_v17 }
  0x93   : > { %525 = vadd.xlane.f32.xlu1 %v524_v18 }
  0xfe   : > { %v560_v19 = vpop.xlane.xlu1 %559 }
  0xff   : > { %v561_v20 = vmul.f32 %v560_v19, %v521_v9 }
 0x101   : > { %v562_v22 = vadd.f32 1e-05, %v561_v20 }
 0x103   : > { %772 = vrsqrt.f32 %v562_v22  ;;  %vm569_vm3 = vweird.f32 %v562_v22 }
 0x104   : > { %774 = vrsqrt.f32 %v585_v23 }
 0x106   : > { %v526_v24 = vpop.xlane.xlu1 %525 }
 0x107   : > { %v527_v25 = vmul.f32 %v526_v24, %v521_v9 }
 0x109   : > { %v773_v26 = vpop.eup %772  ;;  %v528_v27 = vadd.f32 1e-05, %v527_v25 }
 0x10a   : > { %v564_v28 = vmul.f32 %v773_v26, %v562_v22  ;;  %v775_v30 = vpop.eup %774  ;;  %vm570_vm2 = vweird.f32 %v773_v26 }
 0x10b   : > { %776 = vrsqrt.f32 %v528_v27  ;;  %v587_v33 = vmul.f32 %v775_v30, %v585_v23  ;;  %vm571_vm4 = vmor %vm569_vm3, %vm570_vm2  ;;  %vm535_vm6 = vweird.f32 %v528_v27  ;;  %vm593_vm9 = vweird.f32 %v775_v30 }
 0x10c   : > { %v565_v29 = vmul.f32 %v773_v26, %v564_v28  ;;  %vm594_vm10 = vmor %vm592_vm8, %vm593_vm9 }
 0x10d   : > { %v588_v38 = vmul.f32 %v775_v30, %v587_v33 }
 0x10e   : > { %v566_v31 = vmul.f32 0.5, %v565_v29 }
 0x10f   : > { %v589_v43 = vmul.f32 0.5, %v588_v38 }
 0x110   : > { %v567_v32 = vsub.f32 1.5, %v566_v31 }
 0x111   : > { %v777_v34 = vpop.eup %776  ;;  %v590_v49 = vsub.f32 1.5, %v589_v43 }
 0x112   : > { %v568_v35 = vmul.f32 %v773_v26, %v567_v32  ;;  %v530_v36 = vmul.f32 %v777_v34, %v528_v27  ;;  %vm536_vm5 = vweird.f32 %v777_v34 }
 0x113   : > { %vm537_vm7 = vmor %vm535_vm6, %vm536_vm5  ;;  %v591_v55 = vmul.f32 %v775_v30, %v590_v49 }
 0x114   : > { %v572_v37 = vsel %vm571_vm4, %v773_v26, %v568_v35  ;;  %v531_v39 = vmul.f32 %v777_v34, %v530_v36 }
 0x115   : > { %v573_v40 = vmul.f32 %v572_v37, %v556_v12  ;;  %v595_v61 = vsel %vm594_vm10, %v775_v30, %v591_v55 }
 0x116   : > { %v532_v42 = vmul.f32 0.5, %v531_v39  ;;  %v602_v0 = vperm.slane %v595_v61, 0 }
 0x117   : > { %v574_v45 = vmul.f32 %v573_v40, %v549_v41 }
 0x118   : > { %v533_v44 = vsub.f32 1.5, %v532_v42 }
 0x119   : > { %v575_v51 = vadd.f32 %v574_v45, %v550_v46 }
 0x11a   : > { %v534_v47 = vmul.f32 %v777_v34, %v533_v44 }
 0x11b   : > { %v577_v56 = vperm.slane %v575_v51, 0 }
 0x11c   : > { %v538_v50 = vsel %vm537_vm7, %v777_v34, %v534_v47 }
 0x11d   : > { %v539_v53 = vmul.f32 %v538_v50, %v523_v17 }
 0x11f   : > { %v543_v54 = vmul.f32 %v765_v48, %v539_v53 }
 0x121   : > { %v547_v57 = vadd.f32 %v766_v52, %v543_v54 }
 0x123   : > { %v579_v59 = vadd.f32 %v577_v56, %v547_v57 }
 0x125   : > { %v581_v63 = vadd.f32 %v580_v58, %v579_v59 }
 0x127   : > { %v583_v1 = vadd.f32 %v582_v60, %v581_v63 }
 0x129   : > { %v600_v3 = vsub.f32 %v583_v1, %v767_v62 }
 0x12b   : > { %v604_v5 = vmul.f32 %v602_v0, %v600_v3 }
 0x12d   : > { %v609_v6 = vmul.f32 %v768_v2, %v604_v5 }
 0x12f   : > { %v614_v7 = vadd.f32 %v769_v4, %v609_v6 }
 0x131   : > { %615 = vst [vmem:[%s509_s27] sm:$0xff] %v614_v7 }
 0x132 PF: > { %s22_s23 = sadd.s32 1, %s800_s23   ;;  %s955_s21 = smov %s796_s22 }
 0x133   : > { %p19_p5 = scmp.ge.s32.totalorder %s22_s23, 4   ;;  %s956_s22 = smov %s958_s24 }
 0x135   :  { %21 = sbr.rel (!%p19_p5) target bundleno = 2 (0x2), region = 107 }

// kernel: forward.19
= control target key start
LH: loop header
LB: loop body
LE: loop exit
PB: predicated region body
PF: predicated region fallthrough
CT: control target
= control target key end

     0   :  { %s587_s1 = inlined_call_operand.vmem [shape: bf16[128,384], index: 1, kind: input, shape index: {}]   ;;  %s588_s0 = inlined_call_operand.vmem [shape: f32[16,128], index: 0, kind: input, shape index: {}]   ;;  %s589_s2 = inlined_call_operand.vmem [shape: f32[1,384], index: 2, kind: input, shape index: {}]   ;;  %s590_s3 = inlined_call_operand.vmem [shape: bf16[16,384], index: 3, kind: output, shape index: {}]  }
   0x1   :  { %v368_v0 = vld [vmem:[%s587_s1 + $0xa8] sm:$0xf]  ;;  %v400_v1 = vld [vmem:[%s587_s1 + $0xb0] sm:$0xf0]  ;;  %v399_v2 = vld [vmem:[%s587_s1 + $0xac] sm:$0xf] }
   0x2   :  { %v369_v3 = vor.u32 %v400_v1, %v368_v0  ;;  %v370_v4 = vld [vmem:[%s587_s1 + $0xb4] sm:$0xf0]  ;;  %v376_v5 = vld [vmem:[%s587_s1 + $0xb0] sm:$0xf]  ;;  %v401_v6 = vld [vmem:[%s587_s1 + $0xb8] sm:$0xf0] }
   0x3   :  { %v373_v7 = vor.u32 %v399_v2, %v370_v4  ;;  %v377_v8 = vor.u32 %v401_v6, %v376_v5  ;;  %v356_v9 = vld [vmem:[%s587_s1 + $0x90] sm:$0xf]  ;;  %v397_v10 = vld [vmem:[%s587_s1 + $0x98] sm:$0xf0]  ;;  %v396_v11 = vld [vmem:[%s587_s1 + $0x94] sm:$0xf] }
   0x4   :  { %193 = vmatpush.bf16.msra.mxu0 %v369_v3  ;;  %v357_v12 = vor.u32 %v397_v10, %v356_v9  ;;  %v358_v13 = vld [vmem:[%s587_s1 + $0x9c] sm:$0xf0]  ;;  %v364_v14 = vld [vmem:[%s587_s1 + $0x98] sm:$0xf]  ;;  %v398_v15 = vld [vmem:[%s587_s1 + $0xa0] sm:$0xf0] }
   0x5   :  { %207 = vmatpush.bf16.msra.mxu1 %v373_v7  ;;  %221 = vmatpush.bf16.msra.mxu2 %v377_v8  ;;  %v361_v16 = vor.u32 %v396_v11, %v358_v13  ;;  %v365_v17 = vor.u32 %v398_v15, %v364_v14  ;;  %v344_v18 = vld [vmem:[%s587_s1 + $0x78] sm:$0xf]  ;;  %v394_v19 = vld [vmem:[%s587_s1 + $0x80] sm:$0xf0]  ;;  %v393_v20 = vld [vmem:[%s587_s1 + $0x7c] sm:$0xf] }
   0x6   :  { %v346_v21 = vld [vmem:[%s587_s1 + $0x84] sm:$0xf0]  ;;  %v352_v22 = vld [vmem:[%s587_s1 + $0x80] sm:$0xf]  ;;  %v395_v23 = vld [vmem:[%s587_s1 + $0x88] sm:$0xf0]  ;;  %v345_v24 = vor.u32 %v394_v19, %v344_v18 }
   0x7   :  { %v349_v25 = vor.u32 %v393_v20, %v346_v21  ;;  %v353_v26 = vor.u32 %v395_v23, %v352_v22  ;;  %v332_v27 = vld [vmem:[%s587_s1 + $0x60] sm:$0xf]  ;;  %v391_v28 = vld [vmem:[%s587_s1 + $0x68] sm:$0xf0]  ;;  %v390_v29 = vld [vmem:[%s587_s1 + $0x64] sm:$0xf] }
   0x8   :  { %194 = vmatpush.bf16.msra.mxu0 %v357_v12  ;;  %v334_v30 = vld [vmem:[%s587_s1 + $0x6c] sm:$0xf0]  ;;  %v340_v31 = vld [vmem:[%s587_s1 + $0x68] sm:$0xf]  ;;  %v392_v32 = vld [vmem:[%s587_s1 + $0x70] sm:$0xf0]  ;;  %v333_v33 = vor.u32 %v391_v28, %v332_v27 }
   0x9   :  { %208 = vmatpush.bf16.msra.mxu1 %v361_v16  ;;  %222 = vmatpush.bf16.msra.mxu2 %v365_v17  ;;  %v337_v34 = vor.u32 %v390_v29, %v334_v30  ;;  %v341_v35 = vor.u32 %v392_v32, %v340_v31  ;;  %v320_v36 = vld [vmem:[%s587_s1 + $0x48] sm:$0xf]  ;;  %v388_v37 = vld [vmem:[%s587_s1 + $0x50] sm:$0xf0]  ;;  %v387_v38 = vld [vmem:[%s587_s1 + $0x4c] sm:$0xf] }
   0xa   :  { %v322_v39 = vld [vmem:[%s587_s1 + $0x54] sm:$0xf0]  ;;  %v328_v40 = vld [vmem:[%s587_s1 + $0x50] sm:$0xf]  ;;  %v389_v41 = vld [vmem:[%s587_s1 + $0x58] sm:$0xf0]  ;;  %v321_v42 = vor.u32 %v388_v37, %v320_v36 }
   0xb   :  { %v325_v43 = vor.u32 %v387_v38, %v322_v39  ;;  %v329_v44 = vor.u32 %v389_v41, %v328_v40  ;;  %v308_v45 = vld [vmem:[%s587_s1 + $0x30] sm:$0xf]  ;;  %v385_v46 = vld [vmem:[%s587_s1 + $0x38] sm:$0xf0]  ;;  %v384_v47 = vld [vmem:[%s587_s1 + $0x34] sm:$0xf] }
   0xc   :  { %195 = vmatpush.bf16.msra.mxu0 %v345_v24  ;;  %v310_v48 = vld [vmem:[%s587_s1 + $0x3c] sm:$0xf0]  ;;  %v316_v49 = vld [vmem:[%s587_s1 + $0x38] sm:$0xf]  ;;  %v386_v50 = vld [vmem:[%s587_s1 + $0x40] sm:$0xf0]  ;;  %v309_v51 = vor.u32 %v385_v46, %v308_v45 }
   0xd   :  { %209 = vmatpush.bf16.msra.mxu1 %v349_v25  ;;  %223 = vmatpush.bf16.msra.mxu2 %v353_v26  ;;  %v313_v52 = vor.u32 %v384_v47, %v310_v48  ;;  %v317_v53 = vor.u32 %v386_v50, %v316_v49  ;;  %v296_v54 = vld [vmem:[%s587_s1 + $0x18] sm:$0xf]  ;;  %v382_v55 = vld [vmem:[%s587_s1 + $0x20] sm:$0xf0]  ;;  %v381_v56 = vld [vmem:[%s587_s1 + $0x1c] sm:$0xf] }
   0xe   :  { %v298_v57 = vld [vmem:[%s587_s1 + $0x24] sm:$0xf0]  ;;  %v304_v58 = vld [vmem:[%s587_s1 + $0x20] sm:$0xf]  ;;  %v383_v59 = vld [vmem:[%s587_s1 + $0x28] sm:$0xf0]  ;;  %v297_v60 = vor.u32 %v382_v55, %v296_v54 }
   0xf   :  { %v301_v61 = vor.u32 %v381_v56, %v298_v57  ;;  %v305_v62 = vor.u32 %v383_v59, %v304_v58  ;;  %v284_v63 = vld [vmem:[%s587_s1] sm:$0xf]  ;;  %v379_v0 = vld [vmem:[%s587_s1 + $0x8] sm:$0xf0]  ;;  %v378_v1 = vld [vmem:[%s587_s1 + $0x4] sm:$0xf] }
  0x10   :  { %196 = vmatpush.bf16.msra.mxu0 %v333_v33  ;;  %v286_v2 = vld [vmem:[%s587_s1 + $0xc] sm:$0xf0]  ;;  %v292_v3 = vld [vmem:[%s587_s1 + $0x8] sm:$0xf]  ;;  %v380_v4 = vld [vmem:[%s587_s1 + $0x10] sm:$0xf0]  ;;  %v285_v5 = vor.u32 %v379_v0, %v284_v63 }
  0x11   :  { %210 = vmatpush.bf16.msra.mxu1 %v337_v34  ;;  %224 = vmatpush.bf16.msra.mxu2 %v341_v35  ;;  %v24_v6 = vld [vmem:[%s588_s0] sm:$0xff]  ;;  %v25_v7 = vld [vmem:[%s588_s0 + $0x8] sm:$0xff]  ;;  %v289_v8 = vor.u32 %v378_v1, %v286_v2  ;;  %v293_v9 = vor.u32 %v380_v4, %v292_v3 }
  0x12   :  { %v26_v10 = vpack.c.bf16 %v25_v7, %v24_v6  ;;  %v256_v11 = vld [vmem:[%s589_s2] sm:$0x7] }
  0x13   :  { %v258_v12 = vperm.slane %v256_v11, 0  ;;  %v259_v13 = vperm.slane %v256_v11, 1  ;;  %v260_v19 = vperm.slane %v256_v11, 2 }
  0x14   :  { %197 = vmatpush.bf16.msra.mxu0 %v321_v42 }
  0x15   :  { %211 = vmatpush.bf16.msra.mxu1 %v325_v43  ;;  %225 = vmatpush.bf16.msra.mxu2 %v329_v44 }
  0x18   :  { %198 = vmatpush.bf16.msra.mxu0 %v309_v51 }
  0x19   :  { %212 = vmatpush.bf16.msra.mxu1 %v313_v52  ;;  %226 = vmatpush.bf16.msra.mxu2 %v317_v53 }
  0x1c   :  { %199 = vmatpush.bf16.msra.mxu0 %v297_v60 }
  0x1d   :  { %213 = vmatpush.bf16.msra.mxu1 %v301_v61  ;;  %227 = vmatpush.bf16.msra.mxu2 %v305_v62 }
  0x20   :  { %200 = vmatpush.bf16.msra.mxu0 %v285_v5 }
  0x21   :  { %214 = vmatpush.bf16.msra.mxu1 %v289_v8  ;;  %228 = vmatpush.bf16.msra.mxu2 %v293_v9 }
  0x23   :  { %201 = vmatmul.bf16.vlgmr.msra.gmra.mxu0 %v26_v10 }
  0x24   :  { %215 = vmatmul.bf16.vlgmr.msra.gmra.mxu1 %v26_v10  ;;  %229 = vmatmul.bf16.vlgmr.msra.gmra.mxu2 %v26_v10 }
  0xa0   :  { %v202_v14 = vpop.f32.mrf.mxu0 }
  0xa1   :  { %v264_v15 = vadd.f32 %v258_v12, %v202_v14  ;;  %v216_v16 = vpop.f32.mrf.mxu1 }
  0xa2   :  { %v265_v17 = vadd.f32 %v259_v13, %v216_v16 }
  0xa4   :  { %v270_v18 = vpack.c.bf16 %v265_v17, %v264_v15 }
  0xa6   :  { %274 = vst [vmem:[%s590_s3] sm:$0xff] %v270_v18 }
  0xa7   :  { %v230_v20 = vpop.f32.mrf.mxu2 }
  0xa8   :  { %v266_v21 = vadd.f32 %v260_v19, %v230_v20  ;;  %v204_v22 = vpop.f32.mrf.mxu0 }
  0xa9   :  { %v267_v23 = vadd.f32 %v258_v12, %v204_v22  ;;  %v218_v24 = vpop.f32.mrf.mxu1 }
  0xaa   :  { %v271_v25 = vpack.c.bf16 %v266_v21, %v266_v21  ;;  %v268_v26 = vadd.f32 %v259_v13, %v218_v24 }
  0xac   :  { %275 = vst [vmem:[%s590_s3 + $0x8] sm:$0xf] %v271_v25  ;;  %v272_v27 = vpack.c.bf16 %v268_v26, %v267_v23 }
  0xae   :  { %276 = vst [vmem:[%s590_s3 + $0xc] sm:$0xff] %v272_v27 }
  0xaf   :  { %v232_v28 = vpop.f32.mrf.mxu2 }
  0xb0   :  { %v269_v29 = vadd.f32 %v260_v19, %v232_v28 }
  0xb2   :  { %v273_v30 = vpack.c.bf16 %v269_v29, %v269_v29 }
  0xb4   :  { %277 = vst [vmem:[%s590_s3 + $0x14] sm:$0xf] %v273_v30 }

// kernel: forward.21
= control target key start
LH: loop header
LB: loop body
LE: loop exit
PB: predicated region body
PF: predicated region fallthrough
CT: control target
= control target key end

     0   :  { %v256_v18 = vmov 128.0   ;;  %s340_s1 = inlined_call_operand.vmem [shape: bf16[128,128], index: 1, kind: input, shape index: {}]   ;;  %s341_s2 = inlined_call_operand.vmem [shape: f32[1,128], index: 2, kind: input, shape index: {}]   ;;  %s342_s0 = inlined_call_operand.vmem [shape: bf16[16,128], index: 0, kind: input, shape index: {}]   ;;  %s343_s3 = inlined_call_operand.vmem [shape: f32[16,128], index: 3, kind: input, shape index: {}, may-alias: {3,6}]   ;;  %s344_s4 = inlined_call_operand.vmem [shape: f32[1,128], index: 4, kind: input, shape index: {}]   ;;  %s345_s5 = inlined_call_operand.vmem [shape: f32[1,128], index: 5, kind: input, shape index: {}]   ;;  %s346_s6 = inlined_call_operand.vmem [shape: f32[16,128], index: 6, kind: output, shape index: {}, may-alias: {3,6}]  }
   0x1   :  { %v245_v0 = vld [vmem:[%s340_s1 + $0x38] sm:$0xff]  ;;  %v244_v1 = vld [vmem:[%s340_s1 + $0x30] sm:$0xff]  ;;  %v243_v2 = vld [vmem:[%s340_s1 + $0x28] sm:$0xff]  ;;  %250 = vrcp.f32 %v256_v18 }
   0x2   :  { %103 = vmatpush.bf16.msra.mxu0 %v245_v0  ;;  %v242_v3 = vld [vmem:[%s340_s1 + $0x20] sm:$0xff]  ;;  %v241_v4 = vld [vmem:[%s340_s1 + $0x18] sm:$0xff]  ;;  %v240_v5 = vld [vmem:[%s340_s1 + $0x10] sm:$0xff] }
   0x3   :  { %v239_v6 = vld [vmem:[%s340_s1 + $0x8] sm:$0xff]  ;;  %v238_v7 = vld [vmem:[%s340_s1] sm:$0xff] }
   0x4   :  { %v237_v8 = vld [vmem:[%s342_s0] sm:$0xff]  ;;  %v133_v15 = vld [vmem:[%s343_s3 + $0x8] sm:$0xff] }
   0x5   :  { %v247_v9 = vld [vmem:[%s341_s2] ss:$0 sm:$0xff] }
   0x6   :  { %104 = vmatpush.bf16.msra.mxu0 %v244_v1  ;;  %v132_v11 = vld [vmem:[%s343_s3] sm:$0xff] }
   0x7   :  { %v251_v19 = vpop.eup %250  ;;  %v248_v47 = vld [vmem:[%s344_s4] ss:$0 sm:$0xff] }
   0x8   :  { %v141_v20 = vmul.f32 128.0, %v251_v19  ;;  %vm145_vm0 = vweird.f32 %v251_v19  ;;  %v249_v50 = vld [vmem:[%s345_s5] ss:$0 sm:$0xff] }
   0xa   :  { %105 = vmatpush.bf16.msra.mxu0 %v243_v2  ;;  %v142_v21 = vsub.f32 1.0, %v141_v20 }
   0xc   :  { %v143_v22 = vmul.f32 %v251_v19, %v142_v21 }
   0xe   :  { %106 = vmatpush.bf16.msra.mxu0 %v242_v3  ;;  %v144_v23 = vadd.f32 %v251_v19, %v143_v22 }
  0x10   :  { %v146_v24 = vsel %vm145_vm0, %v251_v19, %v144_v23 }
  0x12   :  { %107 = vmatpush.bf16.msra.mxu0 %v241_v4 }
  0x16   :  { %108 = vmatpush.bf16.msra.mxu0 %v240_v5 }
  0x1a   :  { %109 = vmatpush.bf16.msra.mxu0 %v239_v6 }
  0x1e   :  { %110 = vmatpush.bf16.msra.mxu0 %v238_v7 }
  0x21   :  { %111 = vmatmul.bf16.vlgmr.msra.gmra.mxu0 %v237_v8 }
  0x9e   :  { %v112_v10 = vpop.f32.mrf.mxu0 }
  0x9f   :  { %v130_v12 = vadd.f32 %v247_v9, %v112_v10 }
  0xa1   :  { %v134_v13 = vadd.f32 %v132_v11, %v130_v12 }
  0xa3   :  { %136 = vadd.xlane.f32.xlu0 %v134_v13 }
  0xa6   :  { %v114_v14 = vpop.f32.mrf.mxu0 }
  0xa7   :  { %v131_v16 = vadd.f32 %v247_v9, %v114_v14 }
  0xa9   :  { %v135_v17 = vadd.f32 %v133_v15, %v131_v16 }
  0xab   :  { %138 = vadd.xlane.f32.xlu0 %v135_v17 }
 0x116   :  { %v137_v25 = vpop.xlane.xlu0 %136 }
 0x117   :  { %v147_v26 = vmul.f32 %v146_v24, %v137_v25 }
 0x119   :  { %v149_v27 = vsub.f32 %v134_v13, %v147_v26 }
 0x11b   :  { %v151_v28 = vmul.f32 %v149_v27, %v149_v27 }
 0x11d   :  { %153 = vadd.xlane.f32.xlu1 %v151_v28 }
 0x11e   :  { %v139_v29 = vpop.xlane.xlu0 %138 }
 0x11f   :  { %v148_v30 = vmul.f32 %v146_v24, %v139_v29 }
 0x121   :  { %v150_v31 = vsub.f32 %v135_v17, %v148_v30 }
 0x123   :  { %v152_v32 = vmul.f32 %v150_v31, %v150_v31 }
 0x125   :  { %155 = vadd.xlane.f32.xlu1 %v152_v32 }
 0x190   :  { %v154_v33 = vpop.xlane.xlu1 %153 }
 0x191   :  { %v157_v34 = vmul.f32 %v154_v33, %v146_v24 }
 0x193   :  { %v159_v35 = vadd.f32 1e-05, %v157_v34 }
 0x195   :  { %252 = vrsqrt.f32 %v159_v35  ;;  %vm167_vm2 = vweird.f32 %v159_v35 }
 0x198   :  { %v156_v36 = vpop.xlane.xlu1 %155 }
 0x199   :  { %v158_v37 = vmul.f32 %v156_v36, %v146_v24 }
 0x19b   :  { %v253_v38 = vpop.eup %252  ;;  %v160_v39 = vadd.f32 1e-05, %v158_v37 }
 0x19c   :  { %v162_v40 = vmul.f32 %v253_v38, %v159_v35  ;;  %vm168_vm1 = vweird.f32 %v253_v38 }
 0x19d   :  { %254 = vrsqrt.f32 %v160_v39  ;;  %vm169_vm3 = vmor %vm167_vm2, %vm168_vm1  ;;  %vm177_vm5 = vweird.f32 %v160_v39 }
 0x19e   :  { %v163_v41 = vmul.f32 %v253_v38, %v162_v40 }
 0x1a0   :  { %v164_v42 = vmul.f32 0.5, %v163_v41 }
 0x1a2   :  { %v165_v43 = vsub.f32 1.5, %v164_v42 }
 0x1a3   :  { %v255_v44 = vpop.eup %254 }
 0x1a4   :  { %v166_v45 = vmul.f32 %v253_v38, %v165_v43  ;;  %v172_v46 = vmul.f32 %v255_v44, %v160_v39  ;;  %vm178_vm4 = vweird.f32 %v255_v44 }
 0x1a5   :  { %vm179_vm6 = vmor %vm177_vm5, %vm178_vm4 }
 0x1a6   :  { %v170_v48 = vsel %vm169_vm3, %v253_v38, %v166_v45  ;;  %v173_v49 = vmul.f32 %v255_v44, %v172_v46 }
 0x1a7   :  { %v181_v51 = vmul.f32 %v170_v48, %v149_v27 }
 0x1a8   :  { %v174_v52 = vmul.f32 0.5, %v173_v49 }
 0x1a9   :  { %v187_v53 = vmul.f32 %v248_v47, %v181_v51 }
 0x1aa   :  { %v175_v54 = vsub.f32 1.5, %v174_v52 }
 0x1ab   :  { %v193_v55 = vadd.f32 %v249_v50, %v187_v53 }
 0x1ac   :  { %v176_v56 = vmul.f32 %v255_v44, %v175_v54 }
 0x1ad   :  { %195 = vst [vmem:[%s346_s6] sm:$0xff] %v193_v55 }
 0x1ae   :  { %v180_v57 = vsel %vm179_vm6, %v255_v44, %v176_v56 }
 0x1af   :  { %v182_v58 = vmul.f32 %v180_v57, %v150_v31 }
 0x1b1   :  { %v188_v59 = vmul.f32 %v248_v47, %v182_v58 }
 0x1b3   :  { %v194_v60 = vadd.f32 %v249_v50, %v188_v59 }
 0x1b5   :  { %196 = vst [vmem:[%s346_s6 + $0x8] sm:$0xff] %v194_v60 }

// kernel: forward.22
= control target key start
LH: loop header
LB: loop body
LE: loop exit
PB: predicated region body
PF: predicated region fallthrough
CT: control target
= control target key end

     0   :  { %s401_s1 = inlined_call_operand.vmem [shape: bf16[128,256], index: 1, kind: input, shape index: {}]   ;;  %s402_s0 = inlined_call_operand.vmem [shape: f32[16,128], index: 0, kind: input, shape index: {}]   ;;  %s403_s2 = inlined_call_operand.vmem [shape: f32[1,256], index: 2, kind: input, shape index: {}]   ;;  %s404_s3 = inlined_call_operand.vmem [shape: bf16[16,256], index: 3, kind: output, shape index: {}]  }
   0x1   :  { %v248_v0 = vld [vmem:[%s401_s1 + $0x70] sm:$0xf]  ;;  %v269_v1 = vld [vmem:[%s401_s1 + $0x74] sm:$0xf0]  ;;  %v268_v2 = vld [vmem:[%s401_s1 + $0x74] sm:$0xf] }
   0x2   :  { %v249_v3 = vor.u32 %v269_v1, %v248_v0  ;;  %v250_v4 = vld [vmem:[%s401_s1 + $0x78] sm:$0xf0]  ;;  %v240_v5 = vld [vmem:[%s401_s1 + $0x60] sm:$0xf]  ;;  %v267_v6 = vld [vmem:[%s401_s1 + $0x64] sm:$0xf0] }
   0x3   :  { %v253_v7 = vor.u32 %v268_v2, %v250_v4  ;;  %v266_v8 = vld [vmem:[%s401_s1 + $0x64] sm:$0xf]  ;;  %v242_v9 = vld [vmem:[%s401_s1 + $0x68] sm:$0xf0]  ;;  %v241_v10 = vor.u32 %v267_v6, %v240_v5  ;;  %v232_v12 = vld [vmem:[%s401_s1 + $0x50] sm:$0xf] }
   0x4   :  { %125 = vmatpush.bf16.msra.mxu0 %v249_v3  ;;  %v245_v11 = vor.u32 %v266_v8, %v242_v9  ;;  %v265_v13 = vld [vmem:[%s401_s1 + $0x54] sm:$0xf0]  ;;  %v264_v14 = vld [vmem:[%s401_s1 + $0x54] sm:$0xf]  ;;  %v234_v15 = vld [vmem:[%s401_s1 + $0x58] sm:$0xf0] }
   0x5   :  { %139 = vmatpush.bf16.msra.mxu1 %v253_v7  ;;  %v233_v16 = vor.u32 %v265_v13, %v232_v12  ;;  %v237_v17 = vor.u32 %v264_v14, %v234_v15  ;;  %v224_v18 = vld [vmem:[%s401_s1 + $0x40] sm:$0xf]  ;;  %v263_v19 = vld [vmem:[%s401_s1 + $0x44] sm:$0xf0]  ;;  %v262_v20 = vld [vmem:[%s401_s1 + $0x44] sm:$0xf] }
   0x6   :  { %v226_v21 = vld [vmem:[%s401_s1 + $0x48] sm:$0xf0]  ;;  %v225_v22 = vor.u32 %v263_v19, %v224_v18  ;;  %v216_v24 = vld [vmem:[%s401_s1 + $0x30] sm:$0xf]  ;;  %v261_v25 = vld [vmem:[%s401_s1 + $0x34] sm:$0xf0] }
   0x7   :  { %v229_v23 = vor.u32 %v262_v20, %v226_v21  ;;  %v260_v26 = vld [vmem:[%s401_s1 + $0x34] sm:$0xf]  ;;  %v218_v27 = vld [vmem:[%s401_s1 + $0x38] sm:$0xf0]  ;;  %v217_v28 = vor.u32 %v261_v25, %v216_v24  ;;  %v208_v30 = vld [vmem:[%s401_s1 + $0x20] sm:$0xf] }
   0x8   :  { %126 = vmatpush.bf16.msra.mxu0 %v241_v10  ;;  %v221_v29 = vor.u32 %v260_v26, %v218_v27  ;;  %v259_v31 = vld [vmem:[%s401_s1 + $0x24] sm:$0xf0]  ;;  %v258_v32 = vld [vmem:[%s401_s1 + $0x24] sm:$0xf]  ;;  %v210_v33 = vld [vmem:[%s401_s1 + $0x28] sm:$0xf0] }
   0x9   :  { %140 = vmatpush.bf16.msra.mxu1 %v245_v11  ;;  %v209_v34 = vor.u32 %v259_v31, %v208_v30  ;;  %v213_v35 = vor.u32 %v258_v32, %v210_v33  ;;  %v200_v36 = vld [vmem:[%s401_s1 + $0x10] sm:$0xf]  ;;  %v257_v37 = vld [vmem:[%s401_s1 + $0x14] sm:$0xf0]  ;;  %v256_v38 = vld [vmem:[%s401_s1 + $0x14] sm:$0xf] }
   0xa   :  { %v202_v39 = vld [vmem:[%s401_s1 + $0x18] sm:$0xf0]  ;;  %v201_v40 = vor.u32 %v257_v37, %v200_v36  ;;  %v192_v42 = vld [vmem:[%s401_s1] sm:$0xf]  ;;  %v255_v43 = vld [vmem:[%s401_s1 + $0x4] sm:$0xf0] }
   0xb   :  { %v205_v41 = vor.u32 %v256_v38, %v202_v39  ;;  %v254_v44 = vld [vmem:[%s401_s1 + $0x4] sm:$0xf]  ;;  %v194_v45 = vld [vmem:[%s401_s1 + $0x8] sm:$0xf0]  ;;  %v193_v46 = vor.u32 %v255_v43, %v192_v42  ;;  %v168_v51 = vld [vmem:[%s403_s2] sm:$0x3] }
   0xc   :  { %127 = vmatpush.bf16.msra.mxu0 %v233_v16  ;;  %v22_v47 = vld [vmem:[%s402_s0] sm:$0xff]  ;;  %v23_v48 = vld [vmem:[%s402_s0 + $0x8] sm:$0xff]  ;;  %v197_v49 = vor.u32 %v254_v44, %v194_v45  ;;  %v170_v52 = vperm.slane %v168_v51, 0  ;;  %v171_v53 = vperm.slane %v168_v51, 1 }
   0xd   :  { %141 = vmatpush.bf16.msra.mxu1 %v237_v17  ;;  %v24_v50 = vpack.c.bf16 %v23_v48, %v22_v47 }
  0x10   :  { %128 = vmatpush.bf16.msra.mxu0 %v225_v22 }
  0x11   :  { %142 = vmatpush.bf16.msra.mxu1 %v229_v23 }
  0x14   :  { %129 = vmatpush.bf16.msra.mxu0 %v217_v28 }
  0x15   :  { %143 = vmatpush.bf16.msra.mxu1 %v221_v29 }
  0x18   :  { %130 = vmatpush.bf16.msra.mxu0 %v209_v34 }
  0x19   :  { %144 = vmatpush.bf16.msra.mxu1 %v213_v35 }
  0x1c   :  { %131 = vmatpush.bf16.msra.mxu0 %v201_v40 }
  0x1d   :  { %145 = vmatpush.bf16.msra.mxu1 %v205_v41 }
  0x20   :  { %132 = vmatpush.bf16.msra.mxu0 %v193_v46 }
  0x21   :  { %146 = vmatpush.bf16.msra.mxu1 %v197_v49 }
  0x23   :  { %133 = vmatmul.bf16.vlgmr.msra.gmra.mxu0 %v24_v50 }
  0x24   :  { %147 = vmatmul.bf16.vlgmr.msra.gmra.mxu1 %v24_v50 }
  0xa0   :  { %v134_v54 = vpop.f32.mrf.mxu0 }
  0xa1   :  { %v174_v55 = vadd.f32 %v170_v52, %v134_v54  ;;  %v148_v56 = vpop.f32.mrf.mxu1 }
  0xa2   :  { %v175_v57 = vadd.f32 %v171_v53, %v148_v56 }
  0xa3   :  { %v178_v58 = vmax.f32 %v174_v55, 0.0 }
  0xa4   :  { %v179_v59 = vmax.f32 %v175_v57, 0.0 }
  0xa6   :  { %v182_v60 = vpack.c.bf16 %v179_v59, %v178_v58 }
  0xa8   :  { %184 = vst [vmem:[%s404_s3] sm:$0xff] %v182_v60  ;;  %v136_v61 = vpop.f32.mrf.mxu0 }
  0xa9   :  { %v176_v62 = vadd.f32 %v170_v52, %v136_v61  ;;  %v150_v63 = vpop.f32.mrf.mxu1 }
  0xaa   :  { %v177_v0 = vadd.f32 %v171_v53, %v150_v63 }
  0xab   :  { %v180_v1 = vmax.f32 %v176_v62, 0.0 }
  0xac   :  { %v181_v2 = vmax.f32 %v177_v0, 0.0 }
  0xae   :  { %v183_v3 = vpack.c.bf16 %v181_v2, %v180_v1 }
  0xb0   :  { %185 = vst [vmem:[%s404_s3 + $0x8] sm:$0xff] %v183_v3 }

// kernel: forward.23
= control target key start
LH: loop header
LB: loop body
LE: loop exit
PB: predicated region body
PF: predicated region fallthrough
CT: control target
= control target key end

     0   :  { %v383_v35 = vmov 128.0   ;;  %s500_s1 = inlined_call_operand.vmem [shape: bf16[256,128], index: 1, kind: input, shape index: {}]   ;;  %s501_s0 = inlined_call_operand.vmem [shape: bf16[16,256], index: 0, kind: input, shape index: {}]   ;;  %s502_s2 = inlined_call_operand.vmem [shape: f32[1,128], index: 2, kind: input, shape index: {}]   ;;  %s503_s3 = inlined_call_operand.vmem [shape: f32[16,128], index: 3, kind: input, shape index: {}, may-alias: {3,6}]   ;;  %s504_s4 = inlined_call_operand.vmem [shape: f32[1,128], index: 4, kind: input, shape index: {}]   ;;  %s505_s5 = inlined_call_operand.vmem [shape: f32[1,128], index: 5, kind: input, shape index: {}]   ;;  %s506_s6 = inlined_call_operand.vmem [shape: f32[16,128], index: 6, kind: output, shape index: {}, may-alias: {3,6}]  }
   0x1   :  { %v364_v0 = vld [vmem:[%s500_s1 + $0x38] sm:$0xff]  ;;  %v363_v2 = vld [vmem:[%s500_s1 + $0x30] sm:$0xff]  ;;  %v362_v4 = vld [vmem:[%s500_s1 + $0x28] sm:$0xff]  ;;  %377 = vrcp.f32 %v383_v35 }
   0x2   :  { %v372_v1 = vld [vmem:[%s500_s1 + $0x78] sm:$0xff]  ;;  %171 = vmatpush.bf16.msra.mxu0 %v364_v0  ;;  %v371_v3 = vld [vmem:[%s500_s1 + $0x70] sm:$0xff]  ;;  %v370_v5 = vld [vmem:[%s500_s1 + $0x68] sm:$0xff] }
   0x3   :  { %185 = vmatpush.bf16.msra.mxu1 %v372_v1  ;;  %v361_v6 = vld [vmem:[%s500_s1 + $0x20] sm:$0xff]  ;;  %v360_v8 = vld [vmem:[%s500_s1 + $0x18] sm:$0xff]  ;;  %v359_v10 = vld [vmem:[%s500_s1 + $0x10] sm:$0xff] }
   0x4   :  { %v369_v7 = vld [vmem:[%s500_s1 + $0x60] sm:$0xff]  ;;  %v368_v9 = vld [vmem:[%s500_s1 + $0x58] sm:$0xff]  ;;  %v367_v11 = vld [vmem:[%s500_s1 + $0x50] sm:$0xff] }
   0x5   :  { %v358_v12 = vld [vmem:[%s500_s1 + $0x8] sm:$0xff]  ;;  %v357_v14 = vld [vmem:[%s500_s1] sm:$0xff] }
   0x6   :  { %172 = vmatpush.bf16.msra.mxu0 %v363_v2  ;;  %v366_v13 = vld [vmem:[%s500_s1 + $0x48] sm:$0xff]  ;;  %v365_v15 = vld [vmem:[%s500_s1 + $0x40] sm:$0xff] }
   0x7   :  { %186 = vmatpush.bf16.msra.mxu1 %v371_v3  ;;  %v285_v16 = vld [vmem:[%s501_s0] sm:$0xf]  ;;  %v356_v17 = vld [vmem:[%s501_s0 + $0x4] sm:$0xf0]  ;;  %v355_v18 = vld [vmem:[%s501_s0 + $0x4] sm:$0xf]  ;;  %v378_v36 = vpop.eup %377 }
   0x8   :  { %v287_v19 = vld [vmem:[%s501_s0 + $0x8] sm:$0xf0]  ;;  %v286_v20 = vor.u32 %v356_v17, %v285_v16  ;;  %v374_v22 = vld [vmem:[%s502_s2] ss:$0 sm:$0xff]  ;;  %v223_v37 = vmul.f32 128.0, %v378_v36  ;;  %vm227_vm0 = vweird.f32 %v378_v36 }
   0x9   :  { %v290_v21 = vor.u32 %v355_v18, %v287_v19  ;;  %v214_v26 = vld [vmem:[%s503_s3] sm:$0xff]  ;;  %v215_v32 = vld [vmem:[%s503_s3 + $0x8] sm:$0xff] }
   0xa   :  { %173 = vmatpush.bf16.msra.mxu0 %v362_v4  ;;  %v224_v38 = vsub.f32 1.0, %v223_v37  ;;  %v375_v0 = vld [vmem:[%s504_s4] ss:$0 sm:$0xff] }
   0xb   :  { %187 = vmatpush.bf16.msra.mxu1 %v370_v5  ;;  %v376_v3 = vld [vmem:[%s505_s5] ss:$0 sm:$0xff] }
   0xc   :  { %v225_v39 = vmul.f32 %v378_v36, %v224_v38 }
   0xe   :  { %174 = vmatpush.bf16.msra.mxu0 %v361_v6  ;;  %v226_v40 = vadd.f32 %v378_v36, %v225_v39 }
   0xf   :  { %188 = vmatpush.bf16.msra.mxu1 %v369_v7 }
  0x10   :  { %v228_v41 = vsel %vm227_vm0, %v378_v36, %v226_v40 }
  0x12   :  { %175 = vmatpush.bf16.msra.mxu0 %v360_v8 }
  0x13   :  { %189 = vmatpush.bf16.msra.mxu1 %v368_v9 }
  0x16   :  { %176 = vmatpush.bf16.msra.mxu0 %v359_v10 }
  0x17   :  { %190 = vmatpush.bf16.msra.mxu1 %v367_v11 }
  0x1a   :  { %177 = vmatpush.bf16.msra.mxu0 %v358_v12 }
  0x1b   :  { %191 = vmatpush.bf16.msra.mxu1 %v366_v13 }
  0x1e   :  { %178 = vmatpush.bf16.msra.mxu0 %v357_v14 }
  0x1f   :  { %192 = vmatpush.bf16.msra.mxu1 %v365_v15 }
  0x21   :  { %179 = vmatmul.bf16.vlgmr.msra.gmra.mxu0 %v286_v20 }
  0x22   :  { %193 = vmatmul.bf16.vlgmr.msra.gmra.mxu1 %v290_v21 }
  0x9e   :  { %v180_v23 = vpop.f32.mrf.mxu0 }
  0x9f   :  { %v194_v24 = vpop.f32.mrf.mxu1 }
  0xa0   :  { %v195_v25 = vadd.f32 %v194_v24, %v180_v23 }
  0xa2   :  { %v212_v27 = vadd.f32 %v374_v22, %v195_v25 }
  0xa4   :  { %v216_v28 = vadd.f32 %v214_v26, %v212_v27 }
  0xa6   :  { %218 = vadd.xlane.f32.xlu0 %v216_v28  ;;  %v182_v29 = vpop.f32.mrf.mxu0 }
  0xa7   :  { %v196_v30 = vpop.f32.mrf.mxu1 }
  0xa8   :  { %v197_v31 = vadd.f32 %v196_v30, %v182_v29 }
  0xaa   :  { %v213_v33 = vadd.f32 %v374_v22, %v197_v31 }
  0xac   :  { %v217_v34 = vadd.f32 %v215_v32, %v213_v33 }
  0xae   :  { %220 = vadd.xlane.f32.xlu0 %v217_v34 }
 0x119   :  { %v219_v42 = vpop.xlane.xlu0 %218 }
 0x11a   :  { %v229_v43 = vmul.f32 %v228_v41, %v219_v42 }
 0x11c   :  { %v231_v44 = vsub.f32 %v216_v28, %v229_v43 }
 0x11e   :  { %v233_v45 = vmul.f32 %v231_v44, %v231_v44 }
 0x120   :  { %235 = vadd.xlane.f32.xlu1 %v233_v45 }
 0x121   :  { %v221_v46 = vpop.xlane.xlu0 %220 }
 0x122   :  { %v230_v47 = vmul.f32 %v228_v41, %v221_v46 }
 0x124   :  { %v232_v48 = vsub.f32 %v217_v34, %v230_v47 }
 0x126   :  { %v234_v49 = vmul.f32 %v232_v48, %v232_v48 }
 0x128   :  { %237 = vadd.xlane.f32.xlu1 %v234_v49 }
 0x193   :  { %v236_v50 = vpop.xlane.xlu1 %235 }
 0x194   :  { %v239_v51 = vmul.f32 %v236_v50, %v228_v41 }
 0x196   :  { %v241_v52 = vadd.f32 1e-05, %v239_v51 }
 0x198   :  { %379 = vrsqrt.f32 %v241_v52  ;;  %vm249_vm2 = vweird.f32 %v241_v52 }
 0x19b   :  { %v238_v53 = vpop.xlane.xlu1 %237 }
 0x19c   :  { %v240_v54 = vmul.f32 %v238_v53, %v228_v41 }
 0x19e   :  { %v380_v55 = vpop.eup %379  ;;  %v242_v56 = vadd.f32 1e-05, %v240_v54 }
 0x19f   :  { %v244_v57 = vmul.f32 %v380_v55, %v241_v52  ;;  %vm250_vm1 = vweird.f32 %v380_v55 }
 0x1a0   :  { %381 = vrsqrt.f32 %v242_v56  ;;  %vm251_vm3 = vmor %vm249_vm2, %vm250_vm1  ;;  %vm259_vm5 = vweird.f32 %v242_v56 }
 0x1a1   :  { %v245_v58 = vmul.f32 %v380_v55, %v244_v57 }
 0x1a3   :  { %v246_v59 = vmul.f32 0.5, %v245_v58 }
 0x1a5   :  { %v247_v60 = vsub.f32 1.5, %v246_v59 }
 0x1a6   :  { %v382_v61 = vpop.eup %381 }
 0x1a7   :  { %v248_v62 = vmul.f32 %v380_v55, %v247_v60  ;;  %v254_v63 = vmul.f32 %v382_v61, %v242_v56  ;;  %vm260_vm4 = vweird.f32 %v382_v61 }
 0x1a8   :  { %vm261_vm6 = vmor %vm259_vm5, %vm260_vm4 }
 0x1a9   :  { %v252_v1 = vsel %vm251_vm3, %v380_v55, %v248_v62  ;;  %v255_v2 = vmul.f32 %v382_v61, %v254_v63 }
 0x1aa   :  { %v263_v4 = vmul.f32 %v252_v1, %v231_v44 }
 0x1ab   :  { %v256_v5 = vmul.f32 0.5, %v255_v2 }
 0x1ac   :  { %v269_v6 = vmul.f32 %v375_v0, %v263_v4 }
 0x1ad   :  { %v257_v7 = vsub.f32 1.5, %v256_v5 }
 0x1ae   :  { %v275_v8 = vadd.f32 %v376_v3, %v269_v6 }
 0x1af   :  { %v258_v9 = vmul.f32 %v382_v61, %v257_v7 }
 0x1b0   :  { %277 = vst [vmem:[%s506_s6] sm:$0xff] %v275_v8 }
 0x1b1   :  { %v262_v10 = vsel %vm261_vm6, %v382_v61, %v258_v9 }
 0x1b2   :  { %v264_v11 = vmul.f32 %v262_v10, %v232_v48 }
 0x1b4   :  { %v270_v12 = vmul.f32 %v375_v0, %v264_v11 }
 0x1b6   :  { %v276_v13 = vadd.f32 %v376_v3, %v270_v12 }
 0x1b8   :  { %278 = vst [vmem:[%s506_s6 + $0x8] sm:$0xff] %v276_v13 }

// kernel: forward.33
= control target key start
LH: loop header
LB: loop body
LE: loop exit
PB: predicated region body
PF: predicated region fallthrough
CT: control target
= control target key end

     0   :  { %vm11_vm0 = vcmask 1041408   ;;  %s165_s0 = inlined_call_operand.vmem [shape: f32[2,128], index: 0, kind: input, shape index: {}]   ;;  %s166_s1 = inlined_call_operand.hbm [shape: f32[1,1], index: 1, kind: output, shape index: {}]  }
   0x1   :  { %v9_v0 = vld [vmem:[%s165_s0] sm:$0x3] }
   0x2   :  { %6 = vsyncpa [#allocation3], 0  ;;  %v10_v1 = vmul.f32 %v9_v0, %v9_v0  ;;  %v63_v26 = vlaneseq  ;;  %vm73_vm8 = vcmask 9216   ;;  %v145_v36 = vmov 4.0   ;;  %s146_s0 = smov [#allocation2]   ;;  %s101_s11 = sshll.u32 %s166_s1, 4  ;;  %s102_s11 = int_to_ptr.hbm [resolvable:$true] %s101_s11 }
   0x3   :  { %s99_s8 = sshll.u32 %s146_s0, 4  ;;  %vm92_vm10 = vcmask 0   ;;  %s100_s8 = int_to_ptr.vmem [resolvable:$true] %s99_s8 }
   0x4   :  { %v12_v2 = vsel %vm11_vm0, %v10_v1, 0.0  ;;  %v64_v27 = vshrl.u32 %v63_v26, 7  ;;  %v66_v28 = vand.u32 127, %v63_v26 }
   0x5   :  { %13 = vadd.xlane.f32.xlu0 %v12_v2 }
   0x6   :  { %vm67_vm7 = vcmp.eq.s32.totalorder %v64_v27, %v66_v28 }
  0x78   :  { %v14_v3 = vpop.xlane.xlu0 %13 }
  0x79   :  { %113 = vrsqrt.f32 %v14_v3  ;;  %vm22_vm1 = vcmp.eq.f32.partialorder %v14_v3, inf  ;;  %v25_v11 = vand.u32 2147483648, %v14_v3  ;;  %vm24_vm2 = vcmp.eq.f32.partialorder %v14_v3, 0.0 }
  0x7f   :  { %v114_v4 = vpop.eup %113 }
  0x80   :  { %v16_v5 = vmul.f32 %v114_v4, %v14_v3 }
  0x82   :  { %v17_v6 = vmul.f32 %v114_v4, %v16_v5 }
  0x84   :  { %v18_v7 = vmul.f32 0.5, %v17_v6 }
  0x86   :  { %v19_v8 = vsub.f32 1.5, %v18_v7 }
  0x88   :  { %v20_v9 = vmul.f32 %v114_v4, %v19_v8 }
  0x8a   :  { %v21_v10 = vmul.f32 %v20_v9, %v14_v3 }
  0x8c   :  { %v23_v12 = vsel %vm22_vm1, %v14_v3, %v21_v10 }
  0x8d   :  { %v26_v13 = vsel %vm24_vm2, %v25_v11, %v23_v12 }
  0x8e   :  { %v27_v14 = vmax.f32 %v26_v13, 1e-12 }
  0x90   :  { %115 = vrcp.f32 %v27_v14  ;;  %v39_v18 = vand.u32 2147483648, %v27_v14  ;;  %v37_v20 = vand.u32 2147483647, %v27_v14  ;;  %vm33_vm4 = vweird.f32 %v27_v14 }
  0x91   :  { %117 = vrcp.f32 %v145_v36 }
  0x92   :  { %v40_v22 = vor.u32 1.1754944e-38, %v39_v18  ;;  %vm38_vm6 = vcmp.eq.f32.partialorder %v37_v20, 8.507059e+37 }
  0x96   :  { %v116_v15 = vpop.eup %115 }
  0x97   :  { %v29_v16 = vmul.f32 %v116_v15, %v27_v14  ;;  %vm34_vm3 = vweird.f32 %v116_v15  ;;  %v118_v37 = vpop.eup %117 }
  0x98   :  { %vm35_vm5 = vmor %vm33_vm4, %vm34_vm3  ;;  %v85_v38 = vmul.f32 4.0, %v118_v37  ;;  %vm89_vm9 = vweird.f32 %v118_v37 }
  0x99   :  { %v30_v17 = vsub.f32 1.0, %v29_v16 }
  0x9a   :  { %v86_v39 = vsub.f32 1.0, %v85_v38 }
  0x9b   :  { %v31_v19 = vmul.f32 %v116_v15, %v30_v17 }
  0x9c   :  { %v87_v43 = vmul.f32 %v118_v37, %v86_v39 }
  0x9d   :  { %v32_v21 = vadd.f32 %v116_v15, %v31_v19 }
  0x9e   :  { %v88_v46 = vadd.f32 %v118_v37, %v87_v43 }
  0x9f   :  { %v36_v23 = vsel %vm35_vm5, %v116_v15, %v32_v21 }
  0xa0   :  { %v41_v24 = vsel %vm38_vm6, %v40_v22, %v36_v23  ;;  %v90_v49 = vsel %vm89_vm9, %v118_v37, %v88_v46 }
  0xa1   :  { %v42_v25 = vmul.f32 %v41_v24, %v9_v0 }
  0xa3   :  { %58 = vmatpush.xpose.msra.mxu0 %v42_v25 }
  0xa6   :  { %59 = vmatmul.f32.vlgmr.msra.gmra.mxu0 %v42_v25 }
 0x123   :  { %v60_v29 = vpop.f32.mrf.mxu0 }
 0x124   :  { %v68_v30 = vsel %vm67_vm7, 0.0, %v60_v29 }
 0x125   :  { %v69_v31 = vmax.f32 %v68_v30, 0.0 }
 0x127   :  { %v110_v32 = vadd.f32 -0.3, %v69_v31 }
 0x129   :  { %v71_v33 = vmul.f32 %v110_v32, %v110_v32 }
 0x12b   :  { %v72_v34 = vsub.f32 1.0, %v71_v33 }
 0x12d   :  { %v74_v35 = vsel %vm73_vm8, %v72_v34, 0.0 }
 0x12e   :  { %75 = vadd.xlane.f32.xlu0 %v74_v35 }
 0x1a1   :  { %v76_v40 = vpop.xlane.xlu0 %75 }
 0x1a2   :  { %v77_v41 = vsel %vm11_vm0, %v76_v40, 0.0 }
 0x1a3   :  { %v78_v42 = vrot.slane %v77_v41, 4 }
 0x1a5   :  { %v79_v44 = vadd.f32 %v78_v42, %v77_v41 }
 0x1a7   :  { %v80_v45 = vrot.slane %v79_v44, 2 }
 0x1a9   :  { %v81_v47 = vadd.f32 %v80_v45, %v79_v44 }
 0x1ab   :  { %v82_v48 = vrot.slane %v81_v47, 1 }
 0x1ad   :  { %v83_v50 = vadd.f32 %v82_v48, %v81_v47 }
 0x1af   :  { %v91_v51 = vmul.f32 %v90_v49, %v83_v50 }
 0x1b1   :  { %93 = vst.msk [vmem:[#allocation2] sm:$0x1] %vm92_vm10, %v91_v51 }
 0x1b2   :  { %104 = dma.vmem_to_hbm [thread:$0]  %s100_s8, 16, %s102_s11, [#allocation3]  }
 0x1b3   :  { %143 = dma.done.wait [#allocation3], 16  }
 0x1b4   :  { %144 = vsyncadd [#allocation3], 4294967280 }
 0x1b5   :  { %109 = vsyncpa [#allocation3], 1 }

// kernel: forward.30
= control target key start
LH: loop header
LB: loop body
LE: loop exit
PB: predicated region body
PF: predicated region fallthrough
CT: control target
= control target key end

     0   :  { %v211_v2 = vmov 0.0   ;;  %vm117_vm0 = vcmask 1041408   ;;  %v212_v20 = vmov 128.0   ;;  %s284_s1 = inlined_call_operand.vmem [shape: bf16[128,128], index: 1, kind: input, shape index: {}]   ;;  %s285_s0 = inlined_call_operand.vmem [shape: f32[2,128], index: 0, kind: input, shape index: {}]   ;;  %s286_s2 = inlined_call_operand.vmem [shape: f32[1,128], index: 2, kind: input, shape index: {}]   ;;  %s287_s3 = inlined_call_operand.vmem [shape: f32[1,128], index: 3, kind: input, shape index: {}]   ;;  %s288_s4 = inlined_call_operand.vmem [shape: f32[1,128], index: 4, kind: input, shape index: {}]   ;;  %s289_s5 = inlined_call_operand.vmem [shape: f32[2,128], index: 5, kind: output, shape index: {}]  }
   0x1   :  { %v201_v0 = vld [vmem:[%s284_s1 + $0x38] sm:$0xff]  ;;  %v200_v1 = vld [vmem:[%s284_s1 + $0x30] sm:$0xff]  ;;  %24 = vst [vmem:[#allocation2] sm:$0x3] %v211_v2  ;;  %v199_v3 = vld [vmem:[%s284_s1 + $0x28] sm:$0xff]  ;;  %207 = vrcp.f32 %v212_v20 }
   0x2   :  { %92 = vmatpush.bf16.msra.mxu0 %v201_v0  ;;  %v198_v4 = vld [vmem:[%s284_s1 + $0x20] sm:$0xff]  ;;  %v197_v5 = vld [vmem:[%s284_s1 + $0x18] sm:$0xff]  ;;  %v196_v6 = vld [vmem:[%s284_s1 + $0x10] sm:$0xff] }
   0x3   :  { %v195_v7 = vld [vmem:[%s284_s1 + $0x8] sm:$0xff]  ;;  %v194_v8 = vld [vmem:[%s284_s1] sm:$0xff] }
   0x4   :  { %v25_v9 = vld [vmem:[%s285_s0] sm:$0x3] }
   0x5   :  { %v26_v10 = vpack.c.bf16 %v25_v9, %v25_v9  ;;  %v204_v14 = vld [vmem:[%s286_s2] ss:$0 sm:$0xff] }
   0x6   :  { %93 = vmatpush.bf16.msra.mxu0 %v200_v1  ;;  %v205_v41 = vld [vmem:[%s287_s3] ss:$0 sm:$0xff] }
   0x7   :  { %v208_v21 = vpop.eup %207  ;;  %v206_v43 = vld [vmem:[%s288_s4] ss:$0 sm:$0xff] }
   0x8   :  { %v43_v11 = vld [vmem:[#allocation2] sm:$0x3]  ;;  %v122_v22 = vmul.f32 128.0, %v208_v21  ;;  %vm126_vm1 = vweird.f32 %v208_v21 }
   0xa   :  { %94 = vmatpush.bf16.msra.mxu0 %v199_v3  ;;  %v123_v23 = vsub.f32 1.0, %v122_v22 }
   0xc   :  { %v124_v24 = vmul.f32 %v208_v21, %v123_v23 }
   0xe   :  { %95 = vmatpush.bf16.msra.mxu0 %v198_v4  ;;  %v125_v25 = vadd.f32 %v208_v21, %v124_v24 }
  0x10   :  { %v127_v26 = vsel %vm126_vm1, %v208_v21, %v125_v25 }
  0x12   :  { %96 = vmatpush.bf16.msra.mxu0 %v197_v5 }
  0x16   :  { %97 = vmatpush.bf16.msra.mxu0 %v196_v6 }
  0x1a   :  { %98 = vmatpush.bf16.msra.mxu0 %v195_v7 }
  0x1e   :  { %99 = vmatpush.bf16.msra.mxu0 %v194_v8 }
  0x21   :  { %100 = vmatmul.bf16.vlgmr.msra.gmra.mxu0 %v26_v10 }
  0x9e   :  { %v101_v12 = vpop.f32.mrf.mxu0 }
  0x9f   :  { %v105_v13 = vadd.f32 %v101_v12, %v43_v11 }
  0xa1   :  { %106 = vst [vmem:[#allocation2] sm:$0x3] %v105_v13 }
  0xa6   :  { %v103_v15 = vpop.f32.mrf.mxu0 }
  0xa8   :  { %v110_v16 = vld [vmem:[#allocation2] sm:$0x3] }
  0xa9   :  { %v115_v17 = vadd.f32 %v204_v14, %v110_v16 }
  0xab   :  { %v116_v18 = vmax.f32 %v115_v17, 0.0 }
  0xad   :  { %v118_v19 = vsel %vm117_vm0, %v116_v18, 0.0 }
  0xae   :  { %119 = vadd.xlane.f32.xlu0 %v118_v19 }
 0x121   :  { %v120_v27 = vpop.xlane.xlu0 %119 }
 0x122   :  { %v128_v28 = vmul.f32 %v127_v26, %v120_v27 }
 0x124   :  { %v129_v29 = vsub.f32 %v116_v18, %v128_v28 }
 0x126   :  { %v130_v30 = vmul.f32 %v129_v29, %v129_v29 }
 0x128   :  { %v131_v31 = vsel %vm117_vm0, %v130_v30, 0.0 }
 0x129   :  { %132 = vadd.xlane.f32.xlu0 %v131_v31 }
 0x19c   :  { %v133_v32 = vpop.xlane.xlu0 %132 }
 0x19d   :  { %v134_v33 = vmul.f32 %v133_v32, %v127_v26 }
 0x19f   :  { %v135_v34 = vadd.f32 1e-05, %v134_v33 }
 0x1a1   :  { %209 = vrsqrt.f32 %v135_v34  ;;  %vm142_vm3 = vweird.f32 %v135_v34 }
 0x1a7   :  { %v210_v35 = vpop.eup %209 }
 0x1a8   :  { %v137_v36 = vmul.f32 %v210_v35, %v135_v34  ;;  %vm143_vm2 = vweird.f32 %v210_v35 }
 0x1a9   :  { %vm144_vm4 = vmor %vm142_vm3, %vm143_vm2 }
 0x1aa   :  { %v138_v37 = vmul.f32 %v210_v35, %v137_v36 }
 0x1ac   :  { %v139_v38 = vmul.f32 0.5, %v138_v37 }
 0x1ae   :  { %v140_v39 = vsub.f32 1.5, %v139_v38 }
 0x1b0   :  { %v141_v40 = vmul.f32 %v210_v35, %v140_v39 }
 0x1b2   :  { %v145_v42 = vsel %vm144_vm4, %v210_v35, %v141_v40 }
 0x1b3   :  { %v146_v44 = vmul.f32 %v145_v42, %v129_v29 }
 0x1b5   :  { %v151_v45 = vmul.f32 %v205_v41, %v146_v44 }
 0x1b7   :  { %v156_v46 = vadd.f32 %v206_v43, %v151_v45 }
 0x1b9   :  { %157 = vst [vmem:[%s289_s5] sm:$0x3] %v156_v46 }

// kernel: forward.29
= control target key start
LH: loop header
LB: loop body
LE: loop exit
PB: predicated region body
PF: predicated region fallthrough
CT: control target
= control target key end

     0   :  { %vm224_vm4 = vcmask 7168   ;;  %s427_s1 = inlined_call_operand.vmem [shape: bf16[128,128], index: 1, kind: input, shape index: {}]   ;;  %s428_s3 = inlined_call_operand.vmem [shape: bf16[128,128], index: 3, kind: input, shape index: {}]   ;;  %s429_s2 = inlined_call_operand.vmem [shape: f32[1,128], index: 2, kind: input, shape index: {}]   ;;  %s430_s0 = inlined_call_operand.vmem [shape: f32[16,128], index: 0, kind: input, shape index: {}]   ;;  %s431_s4 = inlined_call_operand.vmem [shape: f32[1,128], index: 4, kind: input, shape index: {}]   ;;  %s432_s5 = inlined_call_operand.vmem [shape: f32[1,128], index: 5, kind: input, shape index: {}]   ;;  %s433_s6 = inlined_call_operand.<no memory space> [shape: f32[1,1], index: 6, kind: input, shape index: {}]   ;;  %s434_s7 = inlined_call_operand.vmem [shape: f32[16,1], index: 7, kind: output, shape index: {}]  }
   0x1   :  { %v302_v0 = vld [vmem:[%s427_s1 + $0x38] sm:$0xff]  ;;  %v301_v1 = vld [vmem:[%s427_s1 + $0x30] sm:$0xff]  ;;  %v300_v4 = vld [vmem:[%s427_s1 + $0x28] sm:$0xff]  ;;  %v12_v29 = vstv %s433_s6 }
   0x2   :  { %99 = vmatpush.bf16.msra.mxu0 %v302_v0  ;;  %v310_v2 = vld [vmem:[%s428_s3 + $0x38] sm:$0xff]  ;;  %v309_v3 = vld [vmem:[%s428_s3 + $0x30] sm:$0xff]  ;;  %v308_v5 = vld [vmem:[%s428_s3 + $0x28] sm:$0xff]  ;;  %13 = vst [vmem:[#allocation2] sm:$0x1] %v12_v29 }
   0x3   :  { %188 = vmatpush.bf16.msra.mxu1 %v310_v2  ;;  %v299_v6 = vld [vmem:[%s427_s1 + $0x20] sm:$0xff]  ;;  %v298_v8 = vld [vmem:[%s427_s1 + $0x18] sm:$0xff]  ;;  %v297_v9 = vld [vmem:[%s427_s1 + $0x10] sm:$0xff] }
   0x4   :  { %v307_v7 = vld [vmem:[%s428_s3 + $0x20] sm:$0xff]  ;;  %v296_v10 = vld [vmem:[%s427_s1 + $0x8] sm:$0xff]  ;;  %v306_v15 = vld [vmem:[%s428_s3 + $0x18] sm:$0xff] }
   0x5   :  { %v295_v11 = vld [vmem:[%s427_s1] sm:$0xff]  ;;  %v29_v13 = vld [vmem:[%s430_s0 + $0x8] sm:$0xff]  ;;  %v305_v16 = vld [vmem:[%s428_s3 + $0x10] sm:$0xff] }
   0x6   :  { %100 = vmatpush.bf16.msra.mxu0 %v301_v1  ;;  %v28_v12 = vld [vmem:[%s430_s0] sm:$0xff]  ;;  %v304_v17 = vld [vmem:[%s428_s3 + $0x8] sm:$0xff] }
   0x7   :  { %189 = vmatpush.bf16.msra.mxu1 %v309_v3  ;;  %v46_v14 = vpack.c.bf16 %v29_v13, %v28_v12  ;;  %v303_v18 = vld [vmem:[%s428_s3] sm:$0xff] }
   0x8   :  { %v311_v20 = vld [vmem:[%s429_s2] ss:$0 sm:$0xff] }
   0x9   :  { %v312_v30 = vld [vmem:[%s431_s4] ss:$0 sm:$0xff] }
   0xa   :  { %101 = vmatpush.bf16.msra.mxu0 %v300_v4  ;;  %v313_v33 = vld [vmem:[%s432_s5] ss:$0 sm:$0xff] }
   0xb   :  { %190 = vmatpush.bf16.msra.mxu1 %v308_v5  ;;  %v314_v42 = vld [vmem:[#allocation2] ss:$0 sm:$0xff] }
   0xe   :  { %102 = vmatpush.bf16.msra.mxu0 %v299_v6 }
   0xf   :  { %191 = vmatpush.bf16.msra.mxu1 %v307_v7 }
  0x12   :  { %103 = vmatpush.bf16.msra.mxu0 %v298_v8 }
  0x13   :  { %192 = vmatpush.bf16.msra.mxu1 %v306_v15 }
  0x16   :  { %104 = vmatpush.bf16.msra.mxu0 %v297_v9 }
  0x17   :  { %193 = vmatpush.bf16.msra.mxu1 %v305_v16 }
  0x1a   :  { %105 = vmatpush.bf16.msra.mxu0 %v296_v10 }
  0x1b   :  { %194 = vmatpush.bf16.msra.mxu1 %v304_v17 }
  0x1e   :  { %106 = vmatpush.bf16.msra.mxu0 %v295_v11 }
  0x1f   :  { %195 = vmatpush.bf16.msra.mxu1 %v303_v18 }
  0x21   :  { %107 = vmatmul.bf16.vlgmr.msra.gmra.mxu0 %v46_v14 }
  0x9e   :  { %v108_v19 = vpop.f32.mrf.mxu0 }
  0x9f   :  { %v109_v21 = vadd.f32 %v311_v20, %v108_v19 }
  0xa1   :  { %v115_v23 = vmul.f32 0.01, %v109_v21  ;;  %vm113_vm0 = vcmp.ge.f32.partialorder %v109_v21, 0.0 }
  0xa3   :  { %v117_v26 = vsel %vm113_vm0, %v109_v21, %v115_v23 }
  0xa6   :  { %v110_v22 = vpop.f32.mrf.mxu0 }
  0xa7   :  { %v111_v24 = vadd.f32 %v311_v20, %v110_v22 }
  0xa9   :  { %v116_v25 = vmul.f32 0.01, %v111_v24  ;;  %vm114_vm1 = vcmp.ge.f32.partialorder %v111_v24, 0.0 }
  0xab   :  { %v118_v27 = vsel %vm114_vm1, %v111_v24, %v116_v25 }
  0xac   :  { %v135_v28 = vpack.c.bf16 %v118_v27, %v117_v26 }
  0xae   :  { %196 = vmatmul.bf16.vlgmr.msra.gmra.mxu1 %v135_v28 }
 0x12b   :  { %v197_v31 = vpop.f32.mrf.mxu1 }
 0x12c   :  { %v198_v32 = vadd.f32 %v312_v30, %v197_v31 }
 0x12e   :  { %v204_v34 = vmul.f32 0.01, %v198_v32  ;;  %vm202_vm2 = vcmp.ge.f32.partialorder %v198_v32, 0.0 }
 0x130   :  { %v206_v35 = vsel %vm202_vm2, %v198_v32, %v204_v34 }
 0x131   :  { %v212_v36 = vmul.f32 %v313_v33, %v206_v35 }
 0x133   :  { %v199_v37 = vpop.f32.mrf.mxu1  ;;  %214 = vadd.xlane.f32.xlu0 %v212_v36 }
 0x134   :  { %v200_v38 = vadd.f32 %v312_v30, %v199_v37 }
 0x136   :  { %v205_v39 = vmul.f32 0.01, %v200_v38  ;;  %vm203_vm3 = vcmp.ge.f32.partialorder %v200_v38, 0.0 }
 0x138   :  { %v207_v40 = vsel %vm203_vm3, %v200_v38, %v205_v39 }
 0x139   :  { %v213_v41 = vmul.f32 %v313_v33, %v207_v40 }
 0x13b   :  { %216 = vadd.xlane.f32.xlu0 %v213_v41 }
 0x1a6   :  { %v215_v43 = vpop.xlane.xlu0 %214 }
 0x1a7   :  { %v222_v44 = vadd.f32 %v314_v42, %v215_v43 }
 0x1a9   :  { %225 = vst.msk [vmem:[%s434_s7] sm:$0xff] %vm224_vm4, %v222_v44 }
 0x1ae   :  { %v217_v45 = vpop.xlane.xlu0 %216 }
 0x1af   :  { %v223_v46 = vadd.f32 %v314_v42, %v217_v45 }
 0x1b1   :  { %226 = vst.msk [vmem:[%s434_s7 + $0x8] sm:$0xff] %vm224_vm4, %v223_v46 }

// kernel: forward.32
= control target key start
LH: loop header
LB: loop body
LE: loop exit
PB: predicated region body
PF: predicated region fallthrough
CT: control target
= control target key end

     0   :  { %vm19_vm0 = vcmask 33792   ;;  %v199_v2 = vmov 0.0   ;;  %s257_s0 = inlined_call_operand.vmem [shape: f32[2,128], index: 0, kind: input, shape index: {}]   ;;  %s258_s1 = inlined_call_operand.vmem [shape: bf16[128,5], index: 1, kind: input, shape index: {}]   ;;  %s259_s2 = inlined_call_operand.vmem [shape: f32[1,5], index: 2, kind: input, shape index: {}]   ;;  %s260_s3 = inlined_call_operand.hbm [shape: f32[2,5], index: 3, kind: output, shape index: {}]  }
   0x1   :  { %v169_v0 = vld [vmem:[%s258_s1 + $0x38] sm:$0xff]  ;;  %v168_v1 = vld [vmem:[%s258_s1 + $0x30] sm:$0xff]  ;;  %20 = vst.msk [vmem:[#allocation2] sm:$0x3] %vm19_vm0, %v199_v2 }
   0x2   :  { %88 = vmatpush.bf16.msra.mxu0 %v169_v0 }
   0x3   :  { %8 = vsyncpa [#allocation4], 0  ;;  %v167_v3 = vld [vmem:[%s258_s1 + $0x28] sm:$0xff]  ;;  %v166_v4 = vld [vmem:[%s258_s1 + $0x20] sm:$0xff]  ;;  %s200_s5 = smov [#allocation3]   ;;  %s121_s8 = sshll.u32 %s260_s3, 4  ;;  %s122_s8 = int_to_ptr.hbm [resolvable:$true] %s121_s8 }
   0x4   :  { %v165_v5 = vld [vmem:[%s258_s1 + $0x18] sm:$0xff]  ;;  %v164_v6 = vld [vmem:[%s258_s1 + $0x10] sm:$0xff]  ;;  %v163_v7 = vld [vmem:[%s258_s1 + $0x8] sm:$0xff]  ;;  %s119_s6 = sshll.u32 %s200_s5, 4  ;;  %s120_s6 = int_to_ptr.vmem [resolvable:$true] %s119_s6 }
   0x5   :  { %v162_v8 = vld [vmem:[%s258_s1] sm:$0xff] }
   0x6   :  { %89 = vmatpush.bf16.msra.mxu0 %v168_v1  ;;  %v21_v9 = vld [vmem:[%s257_s0] sm:$0x3] }
   0x7   :  { %v22_v10 = vpack.c.bf16 %v21_v9, %v21_v9  ;;  %v172_v14 = vld [vmem:[%s259_s2] ss:$0 sm:$0xff] }
   0x8   :  { %v39_v11 = vld [vmem:[#allocation2] sm:$0x3] }
   0xa   :  { %90 = vmatpush.bf16.msra.mxu0 %v167_v3 }
   0xe   :  { %91 = vmatpush.bf16.msra.mxu0 %v166_v4 }
  0x12   :  { %92 = vmatpush.bf16.msra.mxu0 %v165_v5 }
  0x16   :  { %93 = vmatpush.bf16.msra.mxu0 %v164_v6 }
  0x1a   :  { %94 = vmatpush.bf16.msra.mxu0 %v163_v7 }
  0x1e   :  { %95 = vmatpush.bf16.msra.mxu0 %v162_v8 }
  0x21   :  { %96 = vmatmul.bf16.vlgmr.msra.gmra.mxu0 %v22_v10 }
  0x9e   :  { %v97_v12 = vpop.f32.mrf.mxu0 }
  0x9f   :  { %v101_v13 = vadd.f32 %v97_v12, %v39_v11 }
  0xa1   :  { %103 = vst.msk [vmem:[#allocation2] sm:$0x3] %vm19_vm0, %v101_v13 }
  0xa6   :  { %v99_v15 = vpop.f32.mrf.mxu0 }
  0xa8   :  { %v107_v16 = vld [vmem:[#allocation2] sm:$0x3] }
  0xa9   :  { %v112_v17 = vadd.f32 %v172_v14, %v107_v16 }
  0xab   :  { %113 = vst.msk [vmem:[#allocation3] sm:$0x3] %vm19_vm0, %v112_v17 }
  0xac   :  { %124 = dma.vmem_to_hbm [thread:$0]  %s120_s6, 32, %s122_s8, [#allocation4]  }
  0xad   :  { %197 = dma.done.wait [#allocation4], 32  }
  0xae   :  { %198 = vsyncadd [#allocation4], 4294967264 }
  0xaf   :  { %129 = vsyncpa [#allocation4], 1 }

</bundles_post_ra>
